<compile_context>
chip_gen: v7x
topology: tpu7x:2x2x1
jax: 0.10.0
libtpu: 0.0.40
codegen_flags: <defaults>
</compile_context>

<pallas_src>
import jax
import jax.numpy as jnp
from jax.experimental import pallas as pl
from jax.experimental.pallas import tpu as pltpu

HID_PAD = 1024   # hidden dim 1000 padded to a multiple of 128
OUT_PAD = 128    # output dim 2 padded to one full lane group


def _round_up(n, m):
    return ((n + m - 1) // m) * m


def encoder_kernel(x_ref, w1_ref, b1_ref, w2_ref, b2_ref, w3_ref, b3_ref,
                   out_ref):
    # lin1 + (dropout = identity) + relu   (bf16 MXU, f32 accumulate)
    h1 = jnp.dot(x_ref[...], w1_ref[...],
                 preferred_element_type=jnp.float32) + b1_ref[...]
    h1 = jnp.maximum(h1, 0.0).astype(jnp.bfloat16)
    # lin2 + (dropout = identity) + relu
    h2 = jnp.dot(h1, w2_ref[...],
                 preferred_element_type=jnp.float32) + b2_ref[...]
    h2 = jnp.maximum(h2, 0.0).astype(jnp.bfloat16)
    # lin3gauss (lane-dense 128-wide output block)
    out_ref[...] = jnp.dot(h2, w3_ref[...],
                           preferred_element_type=jnp.float32) + b3_ref[...]


def encoder_forward(x, w1, b1, w2, b2, w3, b3, *, tm=256):
    """x: (B, 784) f32. Weights are (in, out) f32; biases are (1, out) f32.

    Returns (B, out_dim) f32 (out_dim = w3.shape[1], i.e. 2)."""
    B, d_in = x.shape
    out_dim = w3.shape[1]

    # --- wrapper-side padding / casts (all zero-padded -> exact results) ---
    w1p = jnp.pad(w1, ((0, 0), (0, HID_PAD - w1.shape[1]))).astype(jnp.bfloat16)
    b1p = jnp.pad(b1, ((0, 0), (0, HID_PAD - b1.shape[1])))
    w2p = jnp.pad(w2, ((0, HID_PAD - w2.shape[0]),
                       (0, HID_PAD - w2.shape[1]))).astype(jnp.bfloat16)
    b2p = jnp.pad(b2, ((0, 0), (0, HID_PAD - b2.shape[1])))
    w3p = jnp.pad(w3, ((0, HID_PAD - w3.shape[0]),
                       (0, OUT_PAD - w3.shape[1]))).astype(jnp.bfloat16)
    b3p = jnp.pad(b3, ((0, 0), (0, OUT_PAD - b3.shape[1])))

    # batch tile: multiple of 8 sublanes, capped at tm; pad batch to a multiple
    TM = min(tm, _round_up(max(B, 1), 8))
    B_pad = _round_up(B, TM)
    x_pad = jnp.pad(x, ((0, B_pad - B), (0, 0))).astype(jnp.bfloat16)

    grid = (B_pad // TM,)
    const = lambda i: (0, 0)   # weights/biases: same block every step (resident)

    out_padded = pl.pallas_call(
        encoder_kernel,
        out_shape=jax.ShapeDtypeStruct((B_pad, OUT_PAD), jnp.float32),
        grid_spec=pltpu.PrefetchScalarGridSpec(
            num_scalar_prefetch=0,
            grid=grid,
            in_specs=[
                pl.BlockSpec((TM, d_in), lambda i: (i, 0)),        # x tile
                pl.BlockSpec((d_in, HID_PAD), const),              # w1
                pl.BlockSpec((1, HID_PAD), const),                 # b1
                pl.BlockSpec((HID_PAD, HID_PAD), const),           # w2
                pl.BlockSpec((1, HID_PAD), const),                 # b2
                pl.BlockSpec((HID_PAD, OUT_PAD), const),           # w3
                pl.BlockSpec((1, OUT_PAD), const),                 # b3
            ],
            out_specs=pl.BlockSpec((TM, OUT_PAD), lambda i: (i, 0)),
        ),
        compiler_params=pltpu.CompilerParams(
            dimension_semantics=("parallel",),
            vmem_limit_bytes=32 << 20,
        ),
    )(x_pad, w1p, b1p, w2p, b2p, w3p, b3p)

    return out_padded[:B, :out_dim]


def init_params(key):
    """Deterministic init mimicking nn.Linear default (uniform +-1/sqrt(fan_in)).

    Returns weights already transposed to (in_features, out_features), f32."""
    dims = [(784, 1000), (1000, 1000), (1000, 2)]
    params = []
    for (fan_in, fan_out) in dims:
        key, kw, kb = jax.random.split(key, 3)
        bound = 1.0 / jnp.sqrt(jnp.float32(fan_in))
        w = jax.random.uniform(kw, (fan_in, fan_out), jnp.float32,
                               minval=-bound, maxval=bound)
        b = jax.random.uniform(kb, (1, fan_out), jnp.float32,
                               minval=-bound, maxval=bound)
        params += [w, b]
    return params


def _reference(x, w1, b1, w2, b2, w3, b3):
    # plain-JAX reference mirroring the kernel's bf16-MXU / f32-accumulate path
    h = jnp.dot(x.astype(jnp.bfloat16), w1.astype(jnp.bfloat16),
                preferred_element_type=jnp.float32) + b1
    h = jnp.maximum(h, 0.0)
    h = jnp.dot(h.astype(jnp.bfloat16), w2.astype(jnp.bfloat16),
                preferred_element_type=jnp.float32) + b2
    h = jnp.maximum(h, 0.0)
    return jnp.dot(h.astype(jnp.bfloat16), w3.astype(jnp.bfloat16),
                   preferred_element_type=jnp.float32) + b3


if __name__ == "__main__":
    key = jax.random.PRNGKey(0)
    key, kx = jax.random.split(key)

    w1, b1, w2, b2, w3, b3 = init_params(key)

    # small batch (single grid step)
    B = 8
    x = jax.random.normal(kx, (B, 784), jnp.float32)
    out = jax.block_until_ready(encoder_forward(x, w1, b1, w2, b2, w3, b3))
    ref = _reference(x, w1, b1, w2, b2, w3, b3)
    assert out.shape == (B, 2)
    assert jnp.allclose(out, ref, atol=1e-2, rtol=1e-2)

    # moderate batch exercising multiple grid tiles + batch padding
    key, kx2 = jax.random.split(key)
    B2 = 300
    x2 = jax.random.normal(kx2, (B2, 784), jnp.float32)
    out2 = jax.block_until_ready(
        encoder_forward(x2, w1, b1, w2, b2, w3, b3, tm=128))
    ref2 = _reference(x2, w1, b1, w2, b2, w3, b3)
    assert out2.shape == (B2, 2)
    assert jnp.allclose(out2, ref2, atol=1e-2, rtol=1e-2)

    print("KERNEL_OK")
</pallas_src>

<mosaic_0001>
module attributes {stable_mosaic.version = 11 : i64} {
  func.func @encoder_kernel(%arg0: i32, %arg1: memref<8x784xbf16, #tpu.memory_space<vmem>>, %arg2: memref<784x1024xbf16, #tpu.memory_space<vmem>>, %arg3: memref<1x1024xf32, #tpu.memory_space<vmem>>, %arg4: memref<1024x1024xbf16, #tpu.memory_space<vmem>>, %arg5: memref<1x1024xf32, #tpu.memory_space<vmem>>, %arg6: memref<1024x128xbf16, #tpu.memory_space<vmem>>, %arg7: memref<1x128xf32, #tpu.memory_space<vmem>>, %arg8: memref<8x128xf32, #tpu.memory_space<vmem>>) attributes {dimension_semantics = [#tpu.dimension_semantics<parallel>], iteration_bounds = array<i64: 1>, scalar_prefetch = 0 : i64, scratch_operands = 0 : i64, tpu.core_type = #tpu.core_type<tc>, window_params = [{transform_indices = @transform_0, window_bounds = array<i64: 8, 784>}, {pipeline_mode = #tpu.pipeline_mode<synchronous>, transform_indices = @transform_1, window_bounds = array<i64: 784, 1024>}, {pipeline_mode = #tpu.pipeline_mode<synchronous>, transform_indices = @transform_2, window_bounds = array<i64: 1, 1024>}, {pipeline_mode = #tpu.pipeline_mode<synchronous>, transform_indices = @transform_3, window_bounds = array<i64: 1024, 1024>}, {pipeline_mode = #tpu.pipeline_mode<synchronous>, transform_indices = @transform_4, window_bounds = array<i64: 1, 1024>}, {pipeline_mode = #tpu.pipeline_mode<synchronous>, transform_indices = @transform_5, window_bounds = array<i64: 1024, 128>}, {pipeline_mode = #tpu.pipeline_mode<synchronous>, transform_indices = @transform_6, window_bounds = array<i64: 1, 128>}, {transform_indices = @transform_7, window_bounds = array<i64: 8, 128>}]} {
    %c0 = arith.constant 0 : index
    %c0_0 = arith.constant 0 : index
    %0 = vector.load %arg1[%c0, %c0_0] : memref<8x784xbf16, #tpu.memory_space<vmem>>, vector<8x784xbf16>
    %c0_1 = arith.constant 0 : index
    %c0_2 = arith.constant 0 : index
    %1 = vector.load %arg2[%c0_1, %c0_2] : memref<784x1024xbf16, #tpu.memory_space<vmem>>, vector<784x1024xbf16>
    %cst = arith.constant dense<0.000000e+00> : vector<8x1024xf32>
    %2 = tpu.matmul %0, %1, %cst {dimension_numbers = #tpu.dot_dimension_numbers<[1], [0], [0], [1], [0, 0, 1, 1], [], []>} : vector<8x784xbf16>, vector<784x1024xbf16>, vector<8x1024xf32> -> vector<8x1024xf32>
    %c0_3 = arith.constant 0 : index
    %c0_4 = arith.constant 0 : index
    %3 = vector.load %arg3[%c0_3, %c0_4] : memref<1x1024xf32, #tpu.memory_space<vmem>>, vector<1x1024xf32>
    %4 = vector.broadcast %3 : vector<1x1024xf32> to vector<8x1024xf32>
    %5 = arith.addf %2, %4 : vector<8x1024xf32>
    %cst_5 = arith.constant 0.000000e+00 : f32
    %6 = vector.broadcast %cst_5 : f32 to vector<8x1024xf32>
    %7 = arith.maximumf %5, %6 : vector<8x1024xf32>
    %8 = arith.truncf %7 : vector<8x1024xf32> to vector<8x1024xbf16>
    %c0_6 = arith.constant 0 : index
    %c0_7 = arith.constant 0 : index
    %9 = vector.load %arg4[%c0_6, %c0_7] : memref<1024x1024xbf16, #tpu.memory_space<vmem>>, vector<1024x1024xbf16>
    %cst_8 = arith.constant dense<0.000000e+00> : vector<8x1024xf32>
    %10 = tpu.matmul %8, %9, %cst_8 {dimension_numbers = #tpu.dot_dimension_numbers<[1], [0], [0], [1], [0, 0, 1, 1], [], []>} : vector<8x1024xbf16>, vector<1024x1024xbf16>, vector<8x1024xf32> -> vector<8x1024xf32>
    %c0_9 = arith.constant 0 : index
    %c0_10 = arith.constant 0 : index
    %11 = vector.load %arg5[%c0_9, %c0_10] : memref<1x1024xf32, #tpu.memory_space<vmem>>, vector<1x1024xf32>
    %12 = vector.broadcast %11 : vector<1x1024xf32> to vector<8x1024xf32>
    %13 = arith.addf %10, %12 : vector<8x1024xf32>
    %cst_11 = arith.constant 0.000000e+00 : f32
    %14 = vector.broadcast %cst_11 : f32 to vector<8x1024xf32>
    %15 = arith.maximumf %13, %14 : vector<8x1024xf32>
    %16 = arith.truncf %15 : vector<8x1024xf32> to vector<8x1024xbf16>
    %c0_12 = arith.constant 0 : index
    %c0_13 = arith.constant 0 : index
    %17 = vector.load %arg6[%c0_12, %c0_13] : memref<1024x128xbf16, #tpu.memory_space<vmem>>, vector<1024x128xbf16>
    %cst_14 = arith.constant dense<0.000000e+00> : vector<8x128xf32>
    %18 = tpu.matmul %16, %17, %cst_14 {dimension_numbers = #tpu.dot_dimension_numbers<[1], [0], [0], [1], [0, 0, 1, 1], [], []>} : vector<8x1024xbf16>, vector<1024x128xbf16>, vector<8x128xf32> -> vector<8x128xf32>
    %c0_15 = arith.constant 0 : index
    %c0_16 = arith.constant 0 : index
    %19 = vector.load %arg7[%c0_15, %c0_16] : memref<1x128xf32, #tpu.memory_space<vmem>>, vector<1x128xf32>
    %20 = vector.broadcast %19 : vector<1x128xf32> to vector<8x128xf32>
    %21 = arith.addf %18, %20 : vector<8x128xf32>
    %c0_17 = arith.constant 0 : index
    %c0_18 = arith.constant 0 : index
    %22 = vector.load %arg8[%c0_17, %c0_18] : memref<8x128xf32, #tpu.memory_space<vmem>>, vector<8x128xf32>
    tpu.vector_store %arg8[%c0_17, %c0_18], %21 {strides = array<i32>} : memref<8x128xf32, #tpu.memory_space<vmem>>, vector<8x128xf32>,
    return
  }
  func.func @transform_0(%arg0: i32) -> (i32, i32) {
    %c0_i32 = arith.constant 0 : i32
    %c0_i32_0 = arith.constant 0 : i32
    return %arg0, %c0_i32 : i32, i32
  }
  func.func @transform_1(%arg0: i32) -> (i32, i32) {
    %c0_i32 = arith.constant 0 : i32
    %c0_i32_0 = arith.constant 0 : i32
    %c0_i32_1 = arith.constant 0 : i32
    return %c0_i32, %c0_i32_0 : i32, i32
  }
  func.func @transform_2(%arg0: i32) -> (i32, i32) {
    %c0_i32 = arith.constant 0 : i32
    %c0_i32_0 = arith.constant 0 : i32
    %c0_i32_1 = arith.constant 0 : i32
    return %c0_i32, %c0_i32_0 : i32, i32
  }
  func.func @transform_3(%arg0: i32) -> (i32, i32) {
    %c0_i32 = arith.constant 0 : i32
    %c0_i32_0 = arith.constant 0 : i32
    %c0_i32_1 = arith.constant 0 : i32
    return %c0_i32, %c0_i32_0 : i32, i32
  }
  func.func @transform_4(%arg0: i32) -> (i32, i32) {
    %c0_i32 = arith.constant 0 : i32
    %c0_i32_0 = arith.constant 0 : i32
    %c0_i32_1 = arith.constant 0 : i32
    return %c0_i32, %c0_i32_0 : i32, i32
  }
  func.func @transform_5(%arg0: i32) -> (i32, i32) {
    %c0_i32 = arith.constant 0 : i32
    %c0_i32_0 = arith.constant 0 : i32
    %c0_i32_1 = arith.constant 0 : i32
    return %c0_i32, %c0_i32_0 : i32, i32
  }
  func.func @transform_6(%arg0: i32) -> (i32, i32) {
    %c0_i32 = arith.constant 0 : i32
    %c0_i32_0 = arith.constant 0 : i32
    %c0_i32_1 = arith.constant 0 : i32
    return %c0_i32, %c0_i32_0 : i32, i32
  }
  func.func @transform_7(%arg0: i32) -> (i32, i32) {
    %c0_i32 = arith.constant 0 : i32
    %c0_i32_0 = arith.constant 0 : i32
    return %arg0, %c0_i32 : i32, i32
  }
}

</mosaic_0001>

<bundles_post_ra>
// kernel: tpu_custom_call.1
= control target key start
LH: loop header
LB: loop body
LE: loop exit
PB: predicated region body
PF: predicated region fallthrough
CT: control target
= control target key end

     0   :  { %12 = vsyncpa [#allocation3], 0  ;;  %s9496_s0 = inlined_call_operand.hbm [shape: bf16[8,784], index: 0, kind: input, shape index: {}]   ;;  %s9497_s1 = inlined_call_operand.hbm [shape: bf16[784,1024], index: 1, kind: input, shape index: {}]   ;;  %s9498_s2 = inlined_call_operand.hbm [shape: f32[1,1024], index: 2, kind: input, shape index: {}]   ;;  %s9499_s3 = inlined_call_operand.hbm [shape: bf16[1024,1024], index: 3, kind: input, shape index: {}]   ;;  %s9500_s4 = inlined_call_operand.hbm [shape: f32[1,1024], index: 4, kind: input, shape index: {}]   ;;  %s9501_s5 = inlined_call_operand.hbm [shape: bf16[1024,128], index: 5, kind: input, shape index: {}]   ;;  %s9502_s6 = inlined_call_operand.hbm [shape: f32[1,128], index: 6, kind: input, shape index: {}]   ;;  %s9503_s7 = inlined_call_operand.hbm [shape: f32[8,128], index: 7, kind: output, shape index: {}]  }
   0x1   :  { %13 = vsyncpa [#allocation6], 0 }
   0x2   :  { %14 = vsyncpa [#allocation9], 0 }
   0x3   :  { %15 = vsyncpa [#allocation12], 0 }
   0x4   :  { %16 = vsyncpa [#allocation4], 0  ;;  %s9149_s24 = smov [#allocation5]   ;;  %s8963_s28 = scalar_lea.hbm %s9497_s1, 50176 }
   0x5   :  { %s32_s25 = sshll.u32 %s9149_s24, 4  ;;  %p8964_p0 = scmp.ne.s32.totalorder %s9497_s1, %s8963_s28  ;;  %s33_s25 = int_to_ptr.vmem [resolvable:$true] %s32_s25 }
   0x6   :  { %p8967_p1 = scmp.lt.u32.totalorder %s8963_s28, %s9497_s1 }
   0x8   :  { %p8969_p2 = pnand %p8967_p1, %p8964_p0 }
   0xa   :  { %8972 = shalt.err (!%p8969_p2)
}
   0xb   :  { %s8973_s10 = scalar_lea.vmem %s33_s25, 50176  ;;  %p8978_p4 = scmp.lt.s32.totalorder %s33_s25, %s33_s25 }
   0xc   :  { %p8974_p3 = scmp.ne.s32.totalorder %s33_s25, %s8973_s10  ;;  %p8979_p5 = scmp.lt.s32.totalorder %s8973_s10, %s8973_s10 }
   0xe   :  { %p8980_p6 = por %p8979_p5, %p8978_p4 }
  0x10   :  { %p8981_p7 = pnand %p8980_p6, %p8974_p3 }
  0x12   :  { %8984 = shalt.err (!%p8981_p7)
}
  0x13   :  { %s9150_s11 = smov 512   ;;  %s9151_s12 = smov 32  }
  0x14   :  { %38 = dma.hbm_to_vmem [thread:$0]  %s9497_s1, 50176, %s33_s25, [#allocation6], %s9150_s11, %s9150_s11, %s9151_s12  }
  0x15   :  { %s9152_s15 = smov [#allocation8]   ;;  %s9153_s17 = smov [#allocation11]  }
  0x16   :  { %s54_s16 = sshll.u32 %s9152_s15, 4  ;;  %s76_s18 = sshll.u32 %s9153_s17, 4  ;;  %s55_s16 = int_to_ptr.vmem [resolvable:$true] %s54_s16  ;;  %s77_s18 = int_to_ptr.vmem [resolvable:$true] %s76_s18 }
  0x17   :  { %s8985_s21 = scalar_lea.hbm %s9499_s3, 65536 }
  0x18   :  { %p8986_p8 = scmp.ne.s32.totalorder %s9499_s3, %s8985_s21  ;;  %p8989_p9 = scmp.lt.u32.totalorder %s8985_s21, %s9499_s3 }
  0x1a   :  { %p8991_p10 = pnand %p8989_p9, %p8986_p8 }
  0x1c   :  { %8994 = shalt.err (!%p8991_p10)
}
  0x1d   :  { %s8995_s1 = scalar_lea.vmem %s55_s16, 65536  ;;  %p9000_p12 = scmp.lt.s32.totalorder %s55_s16, %s55_s16 }
  0x1e   :  { %p8996_p11 = scmp.ne.s32.totalorder %s55_s16, %s8995_s1  ;;  %p9001_p13 = scmp.lt.s32.totalorder %s8995_s1, %s8995_s1 }
  0x20   :  { %p9002_p0 = por %p9001_p13, %p9000_p12 }
  0x22   :  { %p9003_p1 = pnand %p9002_p0, %p8996_p11 }
  0x24   :  { %9006 = shalt.err (!%p9003_p1)
}
  0x25   :  { %60 = dma.hbm_to_vmem [thread:$0]  %s9499_s3, 65536, %s55_s16, [#allocation9], %s9150_s11, %s9150_s11, %s9151_s12  }
  0x26   :  { %s9007_s30 = scalar_lea.hbm %s9501_s5, 8192 }
  0x27   :  { %p9008_p2 = scmp.ne.s32.totalorder %s9501_s5, %s9007_s30  ;;  %p9011_p3 = scmp.lt.u32.totalorder %s9007_s30, %s9501_s5 }
  0x29   :  { %p9013_p4 = pnand %p9011_p3, %p9008_p2 }
  0x2b   :  { %9016 = shalt.err (!%p9013_p4)
}
  0x2c   :  { %s9017_s14 = scalar_lea.vmem %s77_s18, 8192  ;;  %p9022_p6 = scmp.lt.s32.totalorder %s77_s18, %s77_s18 }
  0x2d   :  { %p9018_p5 = scmp.ne.s32.totalorder %s77_s18, %s9017_s14  ;;  %p9023_p7 = scmp.lt.s32.totalorder %s9017_s14, %s9017_s14 }
  0x2f   :  { %p9024_p8 = por %p9023_p7, %p9022_p6 }
  0x31   :  { %p9025_p9 = pnand %p9024_p8, %p9018_p5 }
  0x33   :  { %9028 = shalt.err (!%p9025_p9)
}
  0x34   :  { %s9154_s3 = smov 64   ;;  %s9155_s11 = smov 4  }
  0x35   :  { %82 = dma.hbm_to_vmem [thread:$0]  %s9501_s5, 8192, %s77_s18, [#allocation12], %s9154_s3, %s9154_s3, %s9155_s11  }
  0x36   :  { %s9156_s16 = smov [#allocation2]   ;;  %s9157_s19 = smov [#allocation7]  }
  0x37   :  { %s23_s17 = sshll.u32 %s9156_s16, 4  ;;  %s45_s20 = sshll.u32 %s9157_s19, 4  ;;  %s24_s17 = int_to_ptr.vmem [resolvable:$true] %s23_s17  ;;  %s46_s20 = int_to_ptr.vmem [resolvable:$true] %s45_s20 }
  0x38   :  { %s9029_s23 = scalar_lea.hbm %s9496_s0, 448 }
  0x39   :  { %p9030_p10 = scmp.ne.s32.totalorder %s9496_s0, %s9029_s23  ;;  %p9033_p11 = scmp.lt.u32.totalorder %s9029_s23, %s9496_s0 }
  0x3b   :  { %p9035_p12 = pnand %p9033_p11, %p9030_p10 }
  0x3d   :  { %9038 = shalt.err (!%p9035_p12)
}
  0x3e   :  { %s9039_s5 = scalar_lea.vmem %s24_s17, 448  ;;  %p9044_p0 = scmp.lt.s32.totalorder %s24_s17, %s24_s17 }
  0x3f   :  { %p9040_p13 = scmp.ne.s32.totalorder %s24_s17, %s9039_s5  ;;  %p9045_p1 = scmp.lt.s32.totalorder %s9039_s5, %s9039_s5 }
  0x41   :  { %p9046_p2 = por %p9045_p1, %p9044_p0 }
  0x43   :  { %p9047_p3 = pnand %p9046_p2, %p9040_p13 }
  0x45   :  { %9050 = shalt.err (!%p9047_p3)
}
  0x46   :  { %26 = dma.hbm_to_vmem [thread:$0]  %s9496_s0, 448, %s24_s17, [#allocation3]  }
  0x47   :  { %s9051_s30 = scalar_lea.hbm %s9498_s2, 128 }
  0x48   :  { %p9052_p4 = scmp.ne.s32.totalorder %s9498_s2, %s9051_s30  ;;  %p9055_p5 = scmp.lt.u32.totalorder %s9051_s30, %s9498_s2 }
  0x4a   :  { %p9057_p6 = pnand %p9055_p5, %p9052_p4 }
  0x4c   :  { %9060 = shalt.err (!%p9057_p6)
}
  0x4d   :  { %s9061_s14 = scalar_lea.vmem %s46_s20, 128  ;;  %p9066_p8 = scmp.lt.s32.totalorder %s46_s20, %s46_s20 }
  0x4e   :  { %p9062_p7 = scmp.ne.s32.totalorder %s46_s20, %s9061_s14  ;;  %p9067_p9 = scmp.lt.s32.totalorder %s9061_s14, %s9061_s14 }
  0x50   :  { %p9068_p10 = por %p9067_p9, %p9066_p8 }
  0x52   :  { %p9069_p11 = pnand %p9068_p10, %p9062_p7 }
  0x54   :  { %9072 = shalt.err (!%p9069_p11)
}
  0x55   :  { %48 = dma.hbm_to_vmem [thread:$0]  %s9498_s2, 128, %s46_s20, [#allocation6]  }
  0x56   :  { %s9158_s11 = smov [#allocation10]   ;;  %s9159_s15 = smov [#allocation13]  }
  0x57   :  { %s67_s12 = sshll.u32 %s9158_s11, 4  ;;  %s89_s16 = sshll.u32 %s9159_s15, 4  ;;  %s68_s12 = int_to_ptr.vmem [resolvable:$true] %s67_s12  ;;  %s90_s16 = int_to_ptr.vmem [resolvable:$true] %s89_s16 }
  0x58   :  { %s9073_s21 = scalar_lea.hbm %s9500_s4, 128 }
  0x59   :  { %p9074_p12 = scmp.ne.s32.totalorder %s9500_s4, %s9073_s21  ;;  %p9077_p13 = scmp.lt.u32.totalorder %s9073_s21, %s9500_s4 }
  0x5b   :  { %p9079_p0 = pnand %p9077_p13, %p9074_p12 }
  0x5d   :  { %9082 = shalt.err (!%p9079_p0)
}
  0x5e   :  { %s9083_s2 = scalar_lea.vmem %s68_s12, 128  ;;  %p9088_p2 = scmp.lt.s32.totalorder %s68_s12, %s68_s12 }
  0x5f   :  { %p9084_p1 = scmp.ne.s32.totalorder %s68_s12, %s9083_s2  ;;  %p9089_p3 = scmp.lt.s32.totalorder %s9083_s2, %s9083_s2 }
  0x61   :  { %p9090_p4 = por %p9089_p3, %p9088_p2 }
  0x63   :  { %p9091_p5 = pnand %p9090_p4, %p9084_p1 }
  0x65   :  { %9094 = shalt.err (!%p9091_p5)
}
  0x66   :  { %70 = dma.hbm_to_vmem [thread:$0]  %s9500_s4, 128, %s68_s12, [#allocation9]  }
  0x67   :  { %s9095_s18 = scalar_lea.hbm %s9502_s6, 16 }
  0x68   :  { %p9096_p6 = scmp.ne.s32.totalorder %s9502_s6, %s9095_s18  ;;  %p9099_p7 = scmp.lt.u32.totalorder %s9095_s18, %s9502_s6 }
  0x6a   :  { %p9101_p8 = pnand %p9099_p7, %p9096_p6 }
  0x6c   :  { %9104 = shalt.err (!%p9101_p8)
}
  0x6d   :  { %s9105_s8 = scalar_lea.vmem %s90_s16, 16  ;;  %s9109_s9 = scalar_lea.vmem %s90_s16, 32 }
  0x6e   :  { %p9106_p9 = scmp.ne.s32.totalorder %s90_s16, %s9105_s8  ;;  %p9110_p10 = scmp.lt.s32.totalorder %s90_s16, %s90_s16 }
  0x6f   :  { %p9111_p11 = scmp.lt.s32.totalorder %s9109_s9, %s9105_s8 }
  0x71   :  { %p9112_p12 = por %p9111_p11, %p9110_p10 }
  0x73   :  { %p9113_p13 = pnand %p9112_p12, %p9106_p9 }
  0x75   :  { %9116 = shalt.err (!%p9113_p13)
}
  0x76   :  { %92 = dma.hbm_to_vmem [thread:$0]  %s9502_s6, 16, %s90_s16, [#allocation12]  }
  0x77   :  { %9139 = dma.done.wait [#allocation3], 448  }
  0x78   :  { %9140 = vsyncadd [#allocation3], 4294966848 }
  0x79   :  { %9141 = dma.done.wait [#allocation6], 50304  }
  0x7a   :  { %9142 = vsyncadd [#allocation6], 4294916992 }
  0x7b   :  { %9143 = dma.done.wait [#allocation9], 65664  }
  0x7c   :  { %9144 = vsyncadd [#allocation9], 4294901632 }
  0x7d   :  { %9145 = dma.done.wait [#allocation12], 8208  }
  0x7e   :  { %9146 = vsyncadd [#allocation12], 4294959088  ;;  %v119_v0 = vld [vmem:[#allocation5] sm:$0xff]  ;;  %v120_v2 = vld [vmem:[#allocation5 + $0x8] sm:$0xff]  ;;  %vm2537_vm0 = vcmask 130048   ;;  %s9161_s6 = smov [#allocation14]  }
  0x7f   :  { %v123_v1 = vld [vmem:[#allocation5 + $0x20] sm:$0xff]  ;;  %v124_v4 = vld [vmem:[#allocation5 + $0x28] sm:$0xff]  ;;  %s7685_s13 = sshll.u32 %s9161_s6, 4  ;;  %s7686_s13 = int_to_ptr.vmem [resolvable:$true] %s7685_s13 }
  0x80   :  { %v7705_v3 = vcombine.high %v119_v0, %v123_v1  ;;  %v7704_v5 = vcombine.low %v119_v0, %v123_v1  ;;  %v127_v6 = vld [vmem:[#allocation5 + $0x40] sm:$0xff]  ;;  %v7707_v8 = vcombine.high %v120_v2, %v124_v4  ;;  %v7706_v9 = vcombine.low %v120_v2, %v124_v4  ;;  %v128_v11 = vld [vmem:[#allocation5 + $0x48] sm:$0xff]  ;;  %s9117_s14 = scalar_lea.vmem %s7686_s13, 128  ;;  %p9122_p1 = scmp.lt.s32.totalorder %s7686_s13, %s7686_s13 }
  0x81   :  { %v131_v7 = vld [vmem:[#allocation5 + $0x60] sm:$0xff]  ;;  %v132_v12 = vld [vmem:[#allocation5 + $0x68] sm:$0xff]  ;;  %p9118_p0 = scmp.ne.s32.totalorder %s7686_s13, %s9117_s14  ;;  %p9123_p2 = scmp.lt.s32.totalorder %s9117_s14, %s9117_s14 }
  0x82   :  { %v7713_v10 = vcombine.high %v127_v6, %v131_v7  ;;  %v135_v13 = vld [vmem:[#allocation5 + $0x80] sm:$0xff]  ;;  %2541 = vmatprep.subr.bf16.mxu0 %v7705_v3  ;;  %v7715_v14 = vcombine.high %v128_v11, %v132_v12  ;;  %v136_v16 = vld [vmem:[#allocation5 + $0x88] sm:$0xff]  ;;  %2705 = vmatprep.subr.bf16.mxu1 %v7707_v8  ;;  %v7712_v18 = vcombine.low %v127_v6, %v131_v7 }
  0x83   :  { %v139_v15 = vld [vmem:[#allocation5 + $0xa0] sm:$0xff]  ;;  %v140_v17 = vld [vmem:[#allocation5 + $0xa8] sm:$0xff]  ;;  %2542 = vmatpush1.bf16.msra.mxu0 %v7704_v5  ;;  %2706 = vmatpush1.bf16.msra.mxu1 %v7706_v9  ;;  %v7714_v19 = vcombine.low %v128_v11, %v132_v12  ;;  %p9124_p3 = por %p9123_p2, %p9122_p1 }
  0x84   :  { %2543 = vmatprep.subr.bf16.mxu0 %v7713_v10  ;;  %v7721_v20 = vcombine.high %v135_v13, %v139_v15  ;;  %2707 = vmatprep.subr.bf16.mxu1 %v7715_v14  ;;  %v7723_v21 = vcombine.high %v136_v16, %v140_v17  ;;  %v143_v22 = vld [vmem:[#allocation5 + $0xc0] sm:$0xff]  ;;  %v144_v24 = vld [vmem:[#allocation5 + $0xc8] sm:$0xff]  ;;  %v7720_v26 = vcombine.low %v135_v13, %v139_v15 }
  0x85   :  { %v147_v23 = vld [vmem:[#allocation5 + $0xe0] sm:$0xff]  ;;  %v148_v25 = vld [vmem:[#allocation5 + $0xe8] sm:$0xff]  ;;  %v7722_v27 = vcombine.low %v136_v16, %v140_v17  ;;  %p9125_p4 = pnand %p9124_p3, %p9118_p0 }
  0x86   :  { %v7729_v28 = vcombine.high %v143_v22, %v147_v23  ;;  %v7731_v29 = vcombine.high %v144_v24, %v148_v25  ;;  %v151_v30 = vld [vmem:[#allocation5 + $0x100] sm:$0xff]  ;;  %v152_v32 = vld [vmem:[#allocation5 + $0x108] sm:$0xff]  ;;  %v7728_v34 = vcombine.low %v143_v22, %v147_v23  ;;  %v7730_v35 = vcombine.low %v144_v24, %v148_v25 }
  0x87   :  { %2544 = vmatpush1.bf16.msra.mxu0 %v7712_v18  ;;  %2708 = vmatpush1.bf16.msra.mxu1 %v7714_v19  ;;  %v155_v31 = vld [vmem:[#allocation5 + $0x120] sm:$0xff]  ;;  %v156_v33 = vld [vmem:[#allocation5 + $0x128] sm:$0xff] }
  0x88   :  { %2545 = vmatprep.subr.bf16.mxu0 %v7721_v20  ;;  %2709 = vmatprep.subr.bf16.mxu1 %v7723_v21  ;;  %v7737_v36 = vcombine.high %v151_v30, %v155_v31  ;;  %v7739_v37 = vcombine.high %v152_v32, %v156_v33  ;;  %v159_v38 = vld [vmem:[#allocation5 + $0x140] sm:$0xff]  ;;  %v160_v40 = vld [vmem:[#allocation5 + $0x148] sm:$0xff]  ;;  %v7736_v42 = vcombine.low %v151_v30, %v155_v31 }
  0x89   :  { %v163_v39 = vld [vmem:[#allocation5 + $0x160] sm:$0xff]  ;;  %v164_v41 = vld [vmem:[#allocation5 + $0x168] sm:$0xff]  ;;  %v7738_v43 = vcombine.low %v152_v32, %v156_v33 }
  0x8a   :  { %v7745_v44 = vcombine.high %v159_v38, %v163_v39  ;;  %v7747_v45 = vcombine.high %v160_v40, %v164_v41  ;;  %v167_v46 = vld [vmem:[#allocation5 + $0x180] sm:$0xff]  ;;  %v168_v48 = vld [vmem:[#allocation5 + $0x188] sm:$0xff]  ;;  %v7744_v50 = vcombine.low %v159_v38, %v163_v39  ;;  %v7746_v51 = vcombine.low %v160_v40, %v164_v41 }
  0x8b   :  { %2546 = vmatpush1.bf16.msra.mxu0 %v7720_v26  ;;  %2710 = vmatpush1.bf16.msra.mxu1 %v7722_v27  ;;  %v171_v47 = vld [vmem:[#allocation5 + $0x1a0] sm:$0xff]  ;;  %v172_v49 = vld [vmem:[#allocation5 + $0x1a8] sm:$0xff] }
  0x8c   :  { %2547 = vmatprep.subr.bf16.mxu0 %v7729_v28  ;;  %2711 = vmatprep.subr.bf16.mxu1 %v7731_v29  ;;  %v7753_v52 = vcombine.high %v167_v46, %v171_v47  ;;  %v9286_v53 = vld [vmem:[#allocation2] sm:$0xff]  ;;  %v7755_v54 = vcombine.high %v168_v48, %v172_v49  ;;  %v7752_v60 = vcombine.low %v167_v46, %v171_v47 }
  0x8d   :  { %v175_v55 = vld [vmem:[#allocation5 + $0x1c0] sm:$0xff]  ;;  %v9290_v57 = vcombine.high %v9286_v53, %v9286_v53  ;;  %v176_v58 = vld [vmem:[#allocation5 + $0x1c8] sm:$0xff]  ;;  %v7754_v61 = vcombine.low %v168_v48, %v172_v49 }
  0x8e   :  { %v179_v56 = vld [vmem:[#allocation5 + $0x1e0] sm:$0xff]  ;;  %v180_v59 = vld [vmem:[#allocation5 + $0x1e8] sm:$0xff] }
  0x8f   :  { %2548 = vmatpush1.bf16.msra.mxu0 %v7728_v34  ;;  %2712 = vmatpush1.bf16.msra.mxu1 %v7730_v35  ;;  %v7761_v62 = vcombine.high %v175_v55, %v179_v56  ;;  %v7763_v63 = vcombine.high %v176_v58, %v180_v59  ;;  %v183_v0 = vld [vmem:[#allocation5 + $0x200] sm:$0xff]  ;;  %v184_v2 = vld [vmem:[#allocation5 + $0x208] sm:$0xff]  ;;  %v7760_v4 = vcombine.low %v175_v55, %v179_v56 }
  0x90   :  { %2549 = vmatprep.subr.bf16.mxu0 %v7737_v36  ;;  %2713 = vmatprep.subr.bf16.mxu1 %v7739_v37  ;;  %v187_v1 = vld [vmem:[#allocation5 + $0x220] sm:$0xff]  ;;  %v188_v3 = vld [vmem:[#allocation5 + $0x228] sm:$0xff]  ;;  %v7762_v5 = vcombine.low %v176_v58, %v180_v59 }
  0x91   :  { %2573 = vmatprep.mubr.bf16.mxu0 %v9290_v57  ;;  %2737 = vmatprep.mubr.bf16.mxu1 %v9290_v57  ;;  %v7769_v6 = vcombine.high %v183_v0, %v187_v1  ;;  %v7771_v7 = vcombine.high %v184_v2, %v188_v3  ;;  %v191_v8 = vld [vmem:[#allocation5 + $0x240] sm:$0xff]  ;;  %v192_v10 = vld [vmem:[#allocation5 + $0x248] sm:$0xff]  ;;  %v7768_v12 = vcombine.low %v183_v0, %v187_v1 }
  0x92   :  { %v195_v9 = vld [vmem:[#allocation5 + $0x260] sm:$0xff]  ;;  %v196_v11 = vld [vmem:[#allocation5 + $0x268] sm:$0xff]  ;;  %v7770_v13 = vcombine.low %v184_v2, %v188_v3 }
  0x93   :  { %2550 = vmatpush1.bf16.msra.mxu0 %v7736_v42  ;;  %2714 = vmatpush1.bf16.msra.mxu1 %v7738_v43  ;;  %v7777_v14 = vcombine.high %v191_v8, %v195_v9  ;;  %v7779_v15 = vcombine.high %v192_v10, %v196_v11  ;;  %v199_v16 = vld [vmem:[#allocation5 + $0x280] sm:$0xff]  ;;  %v200_v18 = vld [vmem:[#allocation5 + $0x288] sm:$0xff]  ;;  %v7776_v20 = vcombine.low %v191_v8, %v195_v9 }
  0x94   :  { %2551 = vmatprep.subr.bf16.mxu0 %v7745_v44  ;;  %2715 = vmatprep.subr.bf16.mxu1 %v7747_v45  ;;  %v203_v17 = vld [vmem:[#allocation5 + $0x2a0] sm:$0xff]  ;;  %v204_v19 = vld [vmem:[#allocation5 + $0x2a8] sm:$0xff]  ;;  %v7778_v21 = vcombine.low %v192_v10, %v196_v11 }
  0x95   :  { %v7785_v22 = vcombine.high %v199_v16, %v203_v17  ;;  %v7787_v23 = vcombine.high %v200_v18, %v204_v19  ;;  %v207_v24 = vld [vmem:[#allocation5 + $0x2c0] sm:$0xff]  ;;  %v208_v26 = vld [vmem:[#allocation5 + $0x2c8] sm:$0xff]  ;;  %v7784_v28 = vcombine.low %v199_v16, %v203_v17  ;;  %v7786_v29 = vcombine.low %v200_v18, %v204_v19 }
  0x96   :  { %v211_v25 = vld [vmem:[#allocation5 + $0x2e0] sm:$0xff]  ;;  %v212_v27 = vld [vmem:[#allocation5 + $0x2e8] sm:$0xff] }
  0x97   :  { %2552 = vmatpush1.bf16.msra.mxu0 %v7744_v50  ;;  %2716 = vmatpush1.bf16.msra.mxu1 %v7746_v51  ;;  %v7793_v30 = vcombine.high %v207_v24, %v211_v25  ;;  %v7795_v31 = vcombine.high %v208_v26, %v212_v27  ;;  %v215_v32 = vld [vmem:[#allocation5 + $0x300] sm:$0xff]  ;;  %v216_v34 = vld [vmem:[#allocation5 + $0x308] sm:$0xff]  ;;  %v7792_v36 = vcombine.low %v207_v24, %v211_v25 }
  0x98   :  { %2553 = vmatprep.subr.bf16.mxu0 %v7753_v52  ;;  %2717 = vmatprep.subr.bf16.mxu1 %v7755_v54  ;;  %v219_v33 = vld [vmem:[#allocation5 + $0x320] sm:$0xff]  ;;  %v220_v35 = vld [vmem:[#allocation5 + $0x328] sm:$0xff]  ;;  %v7794_v37 = vcombine.low %v208_v26, %v212_v27 }
  0x99   :  { %v7801_v38 = vcombine.high %v215_v32, %v219_v33  ;;  %v7803_v39 = vcombine.high %v216_v34, %v220_v35  ;;  %v223_v40 = vld [vmem:[#allocation5 + $0x340] sm:$0xff]  ;;  %v224_v42 = vld [vmem:[#allocation5 + $0x348] sm:$0xff]  ;;  %v7800_v44 = vcombine.low %v215_v32, %v219_v33  ;;  %v7802_v45 = vcombine.low %v216_v34, %v220_v35 }
  0x9a   :  { %v227_v41 = vld [vmem:[#allocation5 + $0x360] sm:$0xff]  ;;  %v228_v43 = vld [vmem:[#allocation5 + $0x368] sm:$0xff] }
  0x9b   :  { %2554 = vmatpush1.bf16.msra.mxu0 %v7752_v60  ;;  %2718 = vmatpush1.bf16.msra.mxu1 %v7754_v61  ;;  %v7809_v46 = vcombine.high %v223_v40, %v227_v41  ;;  %v7811_v47 = vcombine.high %v224_v42, %v228_v43  ;;  %v231_v48 = vld [vmem:[#allocation5 + $0x380] sm:$0xff]  ;;  %v232_v50 = vld [vmem:[#allocation5 + $0x388] sm:$0xff]  ;;  %v7808_v52 = vcombine.low %v223_v40, %v227_v41 }
  0x9c   :  { %2555 = vmatprep.subr.bf16.mxu0 %v7761_v62  ;;  %2719 = vmatprep.subr.bf16.mxu1 %v7763_v63  ;;  %v235_v49 = vld [vmem:[#allocation5 + $0x3a0] sm:$0xff]  ;;  %v236_v51 = vld [vmem:[#allocation5 + $0x3a8] sm:$0xff]  ;;  %v7810_v54 = vcombine.low %v224_v42, %v228_v43 }
  0x9d   :  { %v7817_v55 = vcombine.high %v231_v48, %v235_v49  ;;  %v7819_v56 = vcombine.high %v232_v50, %v236_v51  ;;  %v239_v58 = vld [vmem:[#allocation5 + $0x3c0] sm:$0xff]  ;;  %v240_v60 = vld [vmem:[#allocation5 + $0x3c8] sm:$0xff]  ;;  %v7816_v62 = vcombine.low %v231_v48, %v235_v49  ;;  %v7818_v63 = vcombine.low %v232_v50, %v236_v51 }
  0x9e   :  { %v243_v59 = vld [vmem:[#allocation5 + $0x3e0] sm:$0xff]  ;;  %v244_v61 = vld [vmem:[#allocation5 + $0x3e8] sm:$0xff] }
  0x9f   :  { %2556 = vmatpush1.bf16.msra.mxu0 %v7760_v4  ;;  %2720 = vmatpush1.bf16.msra.mxu1 %v7762_v5  ;;  %v7825_v0 = vcombine.high %v239_v58, %v243_v59  ;;  %v7827_v1 = vcombine.high %v240_v60, %v244_v61  ;;  %v247_v2 = vld [vmem:[#allocation5 + $0x400] sm:$0xff]  ;;  %v248_v4 = vld [vmem:[#allocation5 + $0x408] sm:$0xff] }
  0xa0   :  { %2557 = vmatprep.subr.bf16.mxu0 %v7769_v6  ;;  %2721 = vmatprep.subr.bf16.mxu1 %v7771_v7  ;;  %v251_v3 = vld [vmem:[#allocation5 + $0x420] sm:$0xff]  ;;  %v252_v5 = vld [vmem:[#allocation5 + $0x428] sm:$0xff]  ;;  %v7824_v6 = vcombine.low %v239_v58, %v243_v59  ;;  %v7826_v7 = vcombine.low %v240_v60, %v244_v61 }
  0xa1   :  { %v7833_v8 = vcombine.high %v247_v2, %v251_v3  ;;  %v7835_v9 = vcombine.high %v248_v4, %v252_v5  ;;  %v255_v10 = vld [vmem:[#allocation5 + $0x440] sm:$0xff]  ;;  %v7832_v16 = vcombine.low %v247_v2, %v251_v3  ;;  %v7834_v19 = vcombine.low %v248_v4, %v252_v5 }
  0xa2   :  { %v259_v11 = vld [vmem:[#allocation5 + $0x460] sm:$0xff] }
  0xa3   :  { %2558 = vmatpush1.bf16.msra.mxu0 %v7768_v12  ;;  %2722 = vmatpush1.bf16.msra.mxu1 %v7770_v13  ;;  %v9296_v12 = vcombine.low %v9286_v53, %v9286_v53  ;;  %v256_v13 = vld [vmem:[#allocation5 + $0x448] sm:$0xff]  ;;  %v263_v17 = vld [vmem:[#allocation5 + $0x480] sm:$0xff]  ;;  %v7840_v24 = vcombine.low %v255_v10, %v259_v11 }
  0xa4   :  { %2559 = vmatprep.subr.bf16.mxu0 %v7777_v14  ;;  %2723 = vmatprep.subr.bf16.mxu1 %v7779_v15  ;;  %v260_v14 = vld [vmem:[#allocation5 + $0x468] sm:$0xff]  ;;  %v267_v18 = vld [vmem:[#allocation5 + $0x4a0] sm:$0xff] }
  0xa5   :  { %v9298_v15 = vld [vmem:[#allocation2 + $0x8] sm:$0xff]  ;;  %v7842_v25 = vcombine.low %v256_v13, %v260_v14  ;;  %v7849_v26 = vcombine.high %v263_v17, %v267_v18  ;;  %v7848_v32 = vcombine.low %v263_v17, %v267_v18  ;;  %v279_v33 = vld [vmem:[#allocation5 + $0x500] sm:$0xff] }
  0xa6   :  { %v264_v53 = vld [vmem:[#allocation5 + $0x488] sm:$0xff]  ;;  %v283_v34 = vld [vmem:[#allocation5 + $0x520] sm:$0xff] }
  0xa7   :  { %2560 = vmatpush1.bf16.msra.mxu0 %v7776_v20  ;;  %2724 = vmatpush1.bf16.msra.mxu1 %v7778_v21  ;;  %v7841_v20 = vcombine.high %v255_v10, %v259_v11  ;;  %v7843_v21 = vcombine.high %v256_v13, %v260_v14  ;;  %v287_v41 = vld [vmem:[#allocation5 + $0x540] sm:$0xff]  ;;  %v7864_v48 = vcombine.low %v279_v33, %v283_v34  ;;  %v320_v17 = vld [vmem:[#allocation5 + $0x648] sm:$0xff] }
  0xa8   :  { %2561 = vmatprep.subr.bf16.mxu0 %v7785_v22  ;;  %2725 = vmatprep.subr.bf16.mxu1 %v7787_v23  ;;  %v9302_v22 = vcombine.high %v9298_v15, %v9298_v15  ;;  %v268_v23 = vld [vmem:[#allocation5 + $0x4a8] sm:$0xff]  ;;  %v291_v42 = vld [vmem:[#allocation5 + $0x560] sm:$0xff] }
  0xa9   :  { %v7851_v27 = vcombine.high %v264_v53, %v268_v23  ;;  %v7850_v35 = vcombine.low %v264_v53, %v268_v23  ;;  %v7873_v50 = vcombine.high %v287_v41, %v291_v42  ;;  %v295_v51 = vld [vmem:[#allocation5 + $0x580] sm:$0xff]  ;;  %v7872_v58 = vcombine.low %v287_v41, %v291_v42  ;;  %v344_v41 = vld [vmem:[#allocation5 + $0x708] sm:$0xff] }
  0xaa   :  { %v303_v61 = vld [vmem:[#allocation5 + $0x5c0] sm:$0xff] }
  0xab   :  { %2562 = vmatpush1.bf16.msra.mxu0 %v7784_v28  ;;  %2726 = vmatpush1.bf16.msra.mxu1 %v7786_v29  ;;  %v271_v28 = vld [vmem:[#allocation5 + $0x4c0] sm:$0xff] }
  0xac   :  { %2563 = vmatprep.subr.bf16.mxu0 %v7793_v30  ;;  %2727 = vmatprep.subr.bf16.mxu1 %v7795_v31  ;;  %v275_v29 = vld [vmem:[#allocation5 + $0x4e0] sm:$0xff]  ;;  %v272_v30 = vld [vmem:[#allocation5 + $0x4c8] sm:$0xff] }
  0xad   :  { %v276_v31 = vld [vmem:[#allocation5 + $0x4e8] sm:$0xff]  ;;  %v7856_v40 = vcombine.low %v271_v28, %v275_v29  ;;  %v311_v5 = vld [vmem:[#allocation5 + $0x600] sm:$0xff] }
  0xae   :  { %v7858_v43 = vcombine.low %v272_v30, %v276_v31  ;;  %v319_v14 = vld [vmem:[#allocation5 + $0x640] sm:$0xff] }
  0xaf   :  { %2564 = vmatpush1.bf16.msra.mxu0 %v7792_v36  ;;  %2728 = vmatpush1.bf16.msra.mxu1 %v7794_v37  ;;  %v7857_v36 = vcombine.high %v271_v28, %v275_v29  ;;  %v280_v37 = vld [vmem:[#allocation5 + $0x508] sm:$0xff]  ;;  %v327_v23 = vld [vmem:[#allocation5 + $0x680] sm:$0xff] }
  0xb0   :  { %2565 = vmatprep.subr.bf16.mxu0 %v7801_v38  ;;  %2729 = vmatprep.subr.bf16.mxu1 %v7803_v39  ;;  %v284_v38 = vld [vmem:[#allocation5 + $0x528] sm:$0xff]  ;;  %v7859_v39 = vcombine.high %v272_v30, %v276_v31  ;;  %v335_v31 = vld [vmem:[#allocation5 + $0x6c0] sm:$0xff] }
  0xb1   :  { %v7866_v49 = vcombine.low %v280_v37, %v284_v38 }
  0xb3   :  { %2566 = vmatpush1.bf16.msra.mxu0 %v7800_v44  ;;  %2730 = vmatpush1.bf16.msra.mxu1 %v7802_v45  ;;  %v7865_v44 = vcombine.high %v279_v33, %v283_v34  ;;  %v288_v45 = vld [vmem:[#allocation5 + $0x548] sm:$0xff] }
  0xb4   :  { %2567 = vmatprep.subr.bf16.mxu0 %v7809_v46  ;;  %2731 = vmatprep.subr.bf16.mxu1 %v7811_v47  ;;  %v292_v46 = vld [vmem:[#allocation5 + $0x568] sm:$0xff]  ;;  %v7867_v47 = vcombine.high %v280_v37, %v284_v38 }
  0xb5   :  { %v7874_v59 = vcombine.low %v288_v45, %v292_v46  ;;  %v336_v33 = vld [vmem:[#allocation5 + $0x6c8] sm:$0xff] }
  0xb7   :  { %2568 = vmatpush1.bf16.msra.mxu0 %v7808_v52  ;;  %2732 = vmatpush1.bf16.msra.mxu1 %v7810_v54  ;;  %v299_v52 = vld [vmem:[#allocation5 + $0x5a0] sm:$0xff]  ;;  %v296_v54 = vld [vmem:[#allocation5 + $0x588] sm:$0xff] }
  0xb8   :  { %2569 = vmatprep.subr.bf16.mxu0 %v7817_v55  ;;  %2733 = vmatprep.subr.bf16.mxu1 %v7819_v56  ;;  %v7875_v55 = vcombine.high %v288_v45, %v292_v46  ;;  %v300_v56 = vld [vmem:[#allocation5 + $0x5a8] sm:$0xff]  ;;  %v7881_v60 = vcombine.high %v295_v51, %v299_v52  ;;  %v7880_v2 = vcombine.low %v295_v51, %v299_v52 }
  0xb9   :  { %v7882_v3 = vcombine.low %v296_v54, %v300_v56  ;;  %v356_v51 = vld [vmem:[#allocation5 + $0x768] sm:$0xff] }
  0xbb   :  { %2570 = vmatpush1.bf16.msra.mxu0 %v7816_v62  ;;  %2734 = vmatpush1.bf16.msra.mxu1 %v7818_v63  ;;  %v307_v62 = vld [vmem:[#allocation5 + $0x5e0] sm:$0xff]  ;;  %v304_v63 = vld [vmem:[#allocation5 + $0x5c8] sm:$0xff] }
  0xbc   :  { %2571 = vmatprep.subr.bf16.mxu0 %v7825_v0  ;;  %2735 = vmatprep.subr.bf16.mxu1 %v7827_v1  ;;  %v7883_v0 = vcombine.high %v296_v54, %v300_v56  ;;  %v308_v1 = vld [vmem:[#allocation5 + $0x5e8] sm:$0xff]  ;;  %v7889_v4 = vcombine.high %v303_v61, %v307_v62  ;;  %v7888_v10 = vcombine.low %v303_v61, %v307_v62  ;;  %v359_v56 = vld [vmem:[#allocation5 + $0x780] sm:$0xff] }
  0xbd   :  { %v7890_v11 = vcombine.low %v304_v63, %v308_v1  ;;  %v364_v61 = vld [vmem:[#allocation5 + $0x7a8] sm:$0xff] }
  0xbf   :  { %2572 = vmatpush1.bf16.msra.mxu0 %v7824_v6  ;;  %2736 = vmatpush1.bf16.msra.mxu1 %v7826_v7  ;;  %v315_v6 = vld [vmem:[#allocation5 + $0x620] sm:$0xff]  ;;  %v312_v7 = vld [vmem:[#allocation5 + $0x608] sm:$0xff] }
  0xc0   :  { %2582 = vmatprep.subr.bf16.mxu0 %v7833_v8  ;;  %2746 = vmatprep.subr.bf16.mxu1 %v7835_v9  ;;  %v7891_v8 = vcombine.high %v304_v63, %v308_v1  ;;  %v316_v9 = vld [vmem:[#allocation5 + $0x628] sm:$0xff]  ;;  %v7897_v13 = vcombine.high %v311_v5, %v315_v6  ;;  %v367_v1 = vld [vmem:[#allocation5 + $0x7c0] sm:$0xff] }
  0xc1   :  { %v7899_v18 = vcombine.high %v312_v7, %v316_v9 }
  0xc2   :  { %2574 = vmatmul.mubr.bf16.vlgmr.msra.gmra.mrb[0].mxu0 %v9296_v12  ;;  %2738 = vmatmul.mubr.bf16.vlgmr.msra.gmra.mrb[0].mxu1 %v9296_v12 }
  0xc3   :  { %2583 = vmatpush1.bf16.msra.mxu0 %v7832_v16  ;;  %2747 = vmatpush1.bf16.msra.mxu1 %v7834_v19  ;;  %v323_v16 = vld [vmem:[#allocation5 + $0x660] sm:$0xff]  ;;  %v324_v19 = vld [vmem:[#allocation5 + $0x668] sm:$0xff] }
  0xc4   :  { %2584 = vmatprep.subr.bf16.mxu0 %v7841_v20  ;;  %2748 = vmatprep.subr.bf16.mxu1 %v7843_v21  ;;  %v7896_v20 = vcombine.low %v311_v5, %v315_v6  ;;  %v7898_v21 = vcombine.low %v312_v7, %v316_v9  ;;  %v7905_v53 = vcombine.high %v319_v14, %v323_v16  ;;  %v372_v5 = vld [vmem:[#allocation5 + $0x7e8] sm:$0xff]  ;;  %v375_v9 = vld [vmem:[#allocation5 + $0x800] sm:$0xff] }
  0xc5   :  { %2614 = vmatprep.mubr.bf16.mxu0 %v9302_v22  ;;  %2778 = vmatprep.mubr.bf16.mxu1 %v9302_v22  ;;  %v7904_v28 = vcombine.low %v319_v14, %v323_v16  ;;  %v7906_v29 = vcombine.low %v320_v17, %v324_v19  ;;  %v380_v14 = vld [vmem:[#allocation5 + $0x828] sm:$0xff] }
  0xc7   :  { %2585 = vmatpush1.bf16.msra.mxu0 %v7840_v24  ;;  %2749 = vmatpush1.bf16.msra.mxu1 %v7842_v25  ;;  %v331_v24 = vld [vmem:[#allocation5 + $0x6a0] sm:$0xff]  ;;  %v328_v25 = vld [vmem:[#allocation5 + $0x688] sm:$0xff] }
  0xc8   :  { %2586 = vmatprep.subr.bf16.mxu0 %v7849_v26  ;;  %2750 = vmatprep.subr.bf16.mxu1 %v7851_v27  ;;  %v7907_v26 = vcombine.high %v320_v17, %v324_v19  ;;  %v332_v27 = vld [vmem:[#allocation5 + $0x6a8] sm:$0xff]  ;;  %v7913_v30 = vcombine.high %v327_v23, %v331_v24  ;;  %v383_v19 = vld [vmem:[#allocation5 + $0x840] sm:$0xff] }
  0xc9   :  { %v7915_v34 = vcombine.high %v328_v25, %v332_v27  ;;  %v7914_v37 = vcombine.low %v328_v25, %v332_v27  ;;  %v9312_v25 = vld [vmem:[#allocation2 + $0x10] sm:$0xff] }
  0xcb   :  { %2587 = vmatpush1.bf16.msra.mxu0 %v7848_v32  ;;  %2751 = vmatpush1.bf16.msra.mxu1 %v7850_v35  ;;  %v339_v32 = vld [vmem:[#allocation5 + $0x6e0] sm:$0xff]  ;;  %v340_v35 = vld [vmem:[#allocation5 + $0x6e8] sm:$0xff] }
  0xcc   :  { %2588 = vmatprep.subr.bf16.mxu0 %v7857_v36  ;;  %2752 = vmatprep.subr.bf16.mxu1 %v7859_v39  ;;  %v7912_v36 = vcombine.low %v327_v23, %v331_v24  ;;  %v7921_v38 = vcombine.high %v335_v31, %v339_v32  ;;  %v343_v39 = vld [vmem:[#allocation5 + $0x700] sm:$0xff]  ;;  %v7923_v42 = vcombine.high %v336_v33, %v340_v35  ;;  %v388_v24 = vld [vmem:[#allocation5 + $0x868] sm:$0xff] }
  0xcd   :  { %v7922_v45 = vcombine.low %v336_v33, %v340_v35  ;;  %v9310_v23 = vcombine.low %v9298_v15, %v9298_v15  ;;  %v392_v15 = vld [vmem:[#allocation5 + $0x888] sm:$0xff] }
  0xce   :  { %v396_v33 = vld [vmem:[#allocation5 + $0x8a8] sm:$0xff] }
  0xcf   :  { %2589 = vmatpush1.bf16.msra.mxu0 %v7856_v40  ;;  %2753 = vmatpush1.bf16.msra.mxu1 %v7858_v43  ;;  %v347_v40 = vld [vmem:[#allocation5 + $0x720] sm:$0xff]  ;;  %v348_v43 = vld [vmem:[#allocation5 + $0x728] sm:$0xff] }
  0xd0   :  { %2590 = vmatprep.subr.bf16.mxu0 %v7865_v44  ;;  %2754 = vmatprep.subr.bf16.mxu1 %v7867_v47  ;;  %v7920_v44 = vcombine.low %v335_v31, %v339_v32  ;;  %v7929_v46 = vcombine.high %v343_v39, %v347_v40  ;;  %v351_v47 = vld [vmem:[#allocation5 + $0x740] sm:$0xff]  ;;  %v7928_v52 = vcombine.low %v343_v39, %v347_v40  ;;  %v400_v40 = vld [vmem:[#allocation5 + $0x8c8] sm:$0xff] }
  0xd1   :  { %v7930_v54 = vcombine.low %v344_v41, %v348_v43  ;;  %v395_v31 = vld [vmem:[#allocation5 + $0x8a0] sm:$0xff]  ;;  %v9316_v32 = vcombine.high %v9312_v25, %v9312_v25 }
  0xd2   :  { %v403_v39 = vld [vmem:[#allocation5 + $0x8e0] sm:$0xff] }
  0xd3   :  { %2591 = vmatpush1.bf16.msra.mxu0 %v7864_v48  ;;  %2755 = vmatpush1.bf16.msra.mxu1 %v7866_v49  ;;  %v355_v48 = vld [vmem:[#allocation5 + $0x760] sm:$0xff]  ;;  %v352_v49 = vld [vmem:[#allocation5 + $0x748] sm:$0xff] }
  0xd4   :  { %2592 = vmatprep.subr.bf16.mxu0 %v7873_v50  ;;  %2756 = vmatprep.subr.bf16.mxu1 %v7875_v55  ;;  %v7931_v50 = vcombine.high %v344_v41, %v348_v43  ;;  %v7937_v55 = vcombine.high %v351_v47, %v355_v48  ;;  %v7936_v62 = vcombine.low %v351_v47, %v355_v48  ;;  %v404_v41 = vld [vmem:[#allocation5 + $0x8e8] sm:$0xff]  ;;  %v411_v47 = vld [vmem:[#allocation5 + $0x920] sm:$0xff] }
  0xd5   :  { %v7938_v63 = vcombine.low %v352_v49, %v356_v51  ;;  %v7978_v43 = vcombine.low %v392_v15, %v396_v33  ;;  %v408_v48 = vld [vmem:[#allocation5 + $0x908] sm:$0xff] }
  0xd7   :  { %2593 = vmatpush1.bf16.msra.mxu0 %v7872_v58  ;;  %2757 = vmatpush1.bf16.msra.mxu1 %v7874_v59  ;;  %v363_v58 = vld [vmem:[#allocation5 + $0x7a0] sm:$0xff]  ;;  %v360_v59 = vld [vmem:[#allocation5 + $0x788] sm:$0xff] }
  0xd8   :  { %2594 = vmatprep.subr.bf16.mxu0 %v7881_v60  ;;  %2758 = vmatprep.subr.bf16.mxu1 %v7883_v0  ;;  %v7939_v60 = vcombine.high %v352_v49, %v356_v51  ;;  %v7945_v0 = vcombine.high %v359_v56, %v363_v58  ;;  %v7944_v6 = vcombine.low %v359_v56, %v363_v58  ;;  %v412_v49 = vld [vmem:[#allocation5 + $0x928] sm:$0xff]  ;;  %v419_v56 = vld [vmem:[#allocation5 + $0x960] sm:$0xff] }
  0xd9   :  { %v7946_v7 = vcombine.low %v360_v59, %v364_v61  ;;  %v7986_v51 = vcombine.low %v400_v40, %v404_v41  ;;  %v416_v58 = vld [vmem:[#allocation5 + $0x948] sm:$0xff] }
  0xdb   :  { %2595 = vmatpush1.bf16.msra.mxu0 %v7880_v2  ;;  %2759 = vmatpush1.bf16.msra.mxu1 %v7882_v3  ;;  %v371_v2 = vld [vmem:[#allocation5 + $0x7e0] sm:$0xff]  ;;  %v368_v3 = vld [vmem:[#allocation5 + $0x7c8] sm:$0xff] }
  0xdc   :  { %2596 = vmatprep.subr.bf16.mxu0 %v7889_v4  ;;  %2760 = vmatprep.subr.bf16.mxu1 %v7891_v8  ;;  %v7947_v4 = vcombine.high %v360_v59, %v364_v61  ;;  %v7953_v8 = vcombine.high %v367_v1, %v371_v2  ;;  %v7952_v16 = vcombine.low %v367_v1, %v371_v2  ;;  %v420_v59 = vld [vmem:[#allocation5 + $0x968] sm:$0xff]  ;;  %v427_v1 = vld [vmem:[#allocation5 + $0x9a0] sm:$0xff] }
  0xdd   :  { %v7954_v17 = vcombine.low %v368_v3, %v372_v5  ;;  %v7994_v61 = vcombine.low %v408_v48, %v412_v49  ;;  %v424_v2 = vld [vmem:[#allocation5 + $0x988] sm:$0xff] }
  0xdf   :  { %2597 = vmatpush1.bf16.msra.mxu0 %v7888_v10  ;;  %2761 = vmatpush1.bf16.msra.mxu1 %v7890_v11  ;;  %v379_v10 = vld [vmem:[#allocation5 + $0x820] sm:$0xff]  ;;  %v376_v11 = vld [vmem:[#allocation5 + $0x808] sm:$0xff] }
  0xe0   :  { %2598 = vmatprep.subr.bf16.mxu0 %v7897_v13  ;;  %2762 = vmatprep.subr.bf16.mxu1 %v7899_v18  ;;  %v7955_v13 = vcombine.high %v368_v3, %v372_v5  ;;  %v7961_v18 = vcombine.high %v375_v9, %v379_v10  ;;  %v7962_v27 = vcombine.low %v376_v11, %v380_v14  ;;  %v428_v3 = vld [vmem:[#allocation5 + $0x9a8] sm:$0xff] }
  0xe1   :  { %v8002_v5 = vcombine.low %v416_v58, %v420_v59 }
  0xe3   :  { %2599 = vmatpush1.bf16.msra.mxu0 %v7896_v20  ;;  %2763 = vmatpush1.bf16.msra.mxu1 %v7898_v21  ;;  %v387_v20 = vld [vmem:[#allocation5 + $0x860] sm:$0xff]  ;;  %v7963_v21 = vcombine.high %v376_v11, %v380_v14  ;;  %v436_v11 = vld [vmem:[#allocation5 + $0x9e8] sm:$0xff]  ;;  %v8010_v14 = vcombine.low %v424_v2, %v428_v3 }
  0xe4   :  { %2600 = vmatprep.subr.bf16.mxu0 %v7905_v53  ;;  %2764 = vmatprep.subr.bf16.mxu1 %v7907_v26  ;;  %v384_v53 = vld [vmem:[#allocation5 + $0x848] sm:$0xff]  ;;  %v7960_v26 = vcombine.low %v375_v9, %v379_v10  ;;  %v435_v9 = vld [vmem:[#allocation5 + $0x9e0] sm:$0xff] }
  0xe5   :  { %v7970_v35 = vcombine.low %v384_v53, %v388_v24  ;;  %v432_v10 = vld [vmem:[#allocation5 + $0x9c8] sm:$0xff] }
  0xe7   :  { %2601 = vmatpush1.bf16.msra.mxu0 %v7904_v28  ;;  %2765 = vmatpush1.bf16.msra.mxu1 %v7906_v29  ;;  %v7969_v28 = vcombine.high %v383_v19, %v387_v20  ;;  %v7971_v29 = vcombine.high %v384_v53, %v388_v24  ;;  %v8018_v24 = vcombine.low %v432_v10, %v436_v11 }
  0xe8   :  { %2602 = vmatprep.subr.bf16.mxu0 %v7913_v30  ;;  %2766 = vmatprep.subr.bf16.mxu1 %v7915_v34  ;;  %v391_v30 = vld [vmem:[#allocation5 + $0x880] sm:$0xff]  ;;  %v7968_v34 = vcombine.low %v383_v19, %v387_v20  ;;  %v440_v20 = vld [vmem:[#allocation5 + $0xa08] sm:$0xff] }
  0xe9   :  { %v443_v19 = vld [vmem:[#allocation5 + $0xa20] sm:$0xff] }
  0xeb   :  { %2603 = vmatpush1.bf16.msra.mxu0 %v7912_v36  ;;  %2767 = vmatpush1.bf16.msra.mxu1 %v7914_v37  ;;  %v7977_v36 = vcombine.high %v391_v30, %v395_v31  ;;  %v7979_v37 = vcombine.high %v392_v15, %v396_v33 }
  0xec   :  { %2604 = vmatprep.subr.bf16.mxu0 %v7921_v38  ;;  %2768 = vmatprep.subr.bf16.mxu1 %v7923_v42  ;;  %v399_v38 = vld [vmem:[#allocation5 + $0x8c0] sm:$0xff]  ;;  %v7976_v42 = vcombine.low %v391_v30, %v395_v31  ;;  %v448_v30 = vld [vmem:[#allocation5 + $0xa48] sm:$0xff] }
  0xed   :  { %v452_v31 = vld [vmem:[#allocation5 + $0xa68] sm:$0xff] }
  0xef   :  { %2605 = vmatpush1.bf16.msra.mxu0 %v7920_v44  ;;  %2769 = vmatpush1.bf16.msra.mxu1 %v7922_v45  ;;  %v7985_v44 = vcombine.high %v399_v38, %v403_v39  ;;  %v7987_v45 = vcombine.high %v400_v40, %v404_v41  ;;  %v8034_v41 = vcombine.low %v448_v30, %v452_v31 }
  0xf0   :  { %2606 = vmatprep.subr.bf16.mxu0 %v7929_v46  ;;  %2770 = vmatprep.subr.bf16.mxu1 %v7931_v50  ;;  %v407_v46 = vld [vmem:[#allocation5 + $0x900] sm:$0xff]  ;;  %v7984_v50 = vcombine.low %v399_v38, %v403_v39  ;;  %v456_v38 = vld [vmem:[#allocation5 + $0xa88] sm:$0xff] }
  0xf1   :  { %v460_v39 = vld [vmem:[#allocation5 + $0xaa8] sm:$0xff] }
  0xf3   :  { %2607 = vmatpush1.bf16.msra.mxu0 %v7928_v52  ;;  %2771 = vmatpush1.bf16.msra.mxu1 %v7930_v54  ;;  %v7993_v52 = vcombine.high %v407_v46, %v411_v47  ;;  %v7995_v54 = vcombine.high %v408_v48, %v412_v49  ;;  %v8042_v49 = vcombine.low %v456_v38, %v460_v39 }
  0xf4   :  { %2608 = vmatprep.subr.bf16.mxu0 %v7937_v55  ;;  %2772 = vmatprep.subr.bf16.mxu1 %v7939_v60  ;;  %v415_v55 = vld [vmem:[#allocation5 + $0x940] sm:$0xff]  ;;  %v7992_v60 = vcombine.low %v407_v46, %v411_v47  ;;  %v464_v46 = vld [vmem:[#allocation5 + $0xac8] sm:$0xff] }
  0xf5   :  { %v468_v47 = vld [vmem:[#allocation5 + $0xae8] sm:$0xff] }
  0xf7   :  { %2609 = vmatpush1.bf16.msra.mxu0 %v7936_v62  ;;  %2773 = vmatpush1.bf16.msra.mxu1 %v7938_v63  ;;  %v8001_v62 = vcombine.high %v415_v55, %v419_v56  ;;  %v8003_v63 = vcombine.high %v416_v58, %v420_v59  ;;  %v8050_v59 = vcombine.low %v464_v46, %v468_v47 }
  0xf8   :  { %2610 = vmatprep.subr.bf16.mxu0 %v7945_v0  ;;  %2774 = vmatprep.subr.bf16.mxu1 %v7947_v4  ;;  %v423_v0 = vld [vmem:[#allocation5 + $0x980] sm:$0xff]  ;;  %v8000_v4 = vcombine.low %v415_v55, %v419_v56  ;;  %v472_v55 = vld [vmem:[#allocation5 + $0xb08] sm:$0xff] }
  0xf9   :  { %v476_v56 = vld [vmem:[#allocation5 + $0xb28] sm:$0xff] }
  0xfb   :  { %2611 = vmatpush1.bf16.msra.mxu0 %v7944_v6  ;;  %2775 = vmatpush1.bf16.msra.mxu1 %v7946_v7  ;;  %v8009_v6 = vcombine.high %v423_v0, %v427_v1  ;;  %v8011_v7 = vcombine.high %v424_v2, %v428_v3  ;;  %v8058_v3 = vcombine.low %v472_v55, %v476_v56 }
  0xfc   :  { %2612 = vmatprep.subr.bf16.mxu0 %v7953_v8  ;;  %2776 = vmatprep.subr.bf16.mxu1 %v7955_v13  ;;  %v431_v8 = vld [vmem:[#allocation5 + $0x9c0] sm:$0xff]  ;;  %v8008_v13 = vcombine.low %v423_v0, %v427_v1  ;;  %v480_v0 = vld [vmem:[#allocation5 + $0xb48] sm:$0xff] }
  0xfd   :  { %v8016_v53 = vcombine.low %v431_v8, %v435_v9  ;;  %v484_v1 = vld [vmem:[#allocation5 + $0xb68] sm:$0xff] }
  0xff   :  { %2613 = vmatpush1.bf16.msra.mxu0 %v7952_v16  ;;  %2777 = vmatpush1.bf16.msra.mxu1 %v7954_v17  ;;  %v8017_v16 = vcombine.high %v431_v8, %v435_v9  ;;  %v8019_v17 = vcombine.high %v432_v10, %v436_v11  ;;  %v488_v8 = vld [vmem:[#allocation5 + $0xb88] sm:$0xff]  ;;  %v8066_v11 = vcombine.low %v480_v0, %v484_v1 }
 0x100   :  { %2623 = vmatprep.subr.bf16.mxu0 %v7961_v18  ;;  %2787 = vmatprep.subr.bf16.mxu1 %v7963_v21  ;;  %v439_v18 = vld [vmem:[#allocation5 + $0xa00] sm:$0xff]  ;;  %v444_v21 = vld [vmem:[#allocation5 + $0xa28] sm:$0xff] }
 0x101   :  { %v8024_v15 = vcombine.low %v439_v18, %v443_v19  ;;  %v8026_v33 = vcombine.low %v440_v20, %v444_v21  ;;  %v492_v9 = vld [vmem:[#allocation5 + $0xba8] sm:$0xff] }
 0x102   :  { %2615 = vmatmul.mubr.bf16.vlgmr.msra.gmra.mrb[0].mxu0 %v9310_v23  ;;  %2779 = vmatmul.mubr.bf16.vlgmr.msra.gmra.mrb[0].mxu1 %v9310_v23 }
 0x103   :  { %2624 = vmatpush1.bf16.msra.mxu0 %v7960_v26  ;;  %2788 = vmatpush1.bf16.msra.mxu1 %v7962_v27  ;;  %v8025_v26 = vcombine.high %v439_v18, %v443_v19  ;;  %v8027_v27 = vcombine.high %v440_v20, %v444_v21  ;;  %v496_v18 = vld [vmem:[#allocation5 + $0xbc8] sm:$0xff]  ;;  %v8074_v21 = vcombine.low %v488_v8, %v492_v9 }
 0x104   :  { %2625 = vmatprep.subr.bf16.mxu0 %v7969_v28  ;;  %2789 = vmatprep.subr.bf16.mxu1 %v7971_v29  ;;  %v447_v28 = vld [vmem:[#allocation5 + $0xa40] sm:$0xff]  ;;  %v500_v19 = vld [vmem:[#allocation5 + $0xbe8] sm:$0xff] }
 0x105   :  { %2655 = vmatprep.mubr.bf16.mxu0 %v9316_v32  ;;  %2819 = vmatprep.mubr.bf16.mxu1 %v9316_v32  ;;  %v451_v29 = vld [vmem:[#allocation5 + $0xa60] sm:$0xff] }
 0x106   :  { %v8032_v40 = vcombine.low %v447_v28, %v451_v29 }
 0x107   :  { %2626 = vmatpush1.bf16.msra.mxu0 %v7968_v34  ;;  %2790 = vmatpush1.bf16.msra.mxu1 %v7970_v35  ;;  %v8033_v34 = vcombine.high %v447_v28, %v451_v29  ;;  %v8035_v35 = vcombine.high %v448_v30, %v452_v31  ;;  %v504_v28 = vld [vmem:[#allocation5 + $0xc08] sm:$0xff]  ;;  %v8082_v31 = vcombine.low %v496_v18, %v500_v19 }
 0x108   :  { %2627 = vmatprep.subr.bf16.mxu0 %v7977_v36  ;;  %2791 = vmatprep.subr.bf16.mxu1 %v7979_v37  ;;  %v455_v36 = vld [vmem:[#allocation5 + $0xa80] sm:$0xff]  ;;  %v508_v29 = vld [vmem:[#allocation5 + $0xc28] sm:$0xff] }
 0x109   :  { %v459_v37 = vld [vmem:[#allocation5 + $0xaa0] sm:$0xff] }
 0x10a   :  { %v8040_v48 = vcombine.low %v455_v36, %v459_v37 }
 0x10b   :  { %2628 = vmatpush1.bf16.msra.mxu0 %v7976_v42  ;;  %2792 = vmatpush1.bf16.msra.mxu1 %v7978_v43  ;;  %v8041_v42 = vcombine.high %v455_v36, %v459_v37  ;;  %v8043_v43 = vcombine.high %v456_v38, %v460_v39  ;;  %v125_v36 = vld [vmem:[#allocation5 + $0x30] sm:$0xff]  ;;  %v122_v38 = vld [vmem:[#allocation5 + $0x18] sm:$0xff] }
 0x10c   :  { %2629 = vmatprep.subr.bf16.mxu0 %v7985_v44  ;;  %2793 = vmatprep.subr.bf16.mxu1 %v7987_v45  ;;  %v463_v44 = vld [vmem:[#allocation5 + $0xac0] sm:$0xff]  ;;  %v126_v39 = vld [vmem:[#allocation5 + $0x38] sm:$0xff] }
 0x10d   :  { %v467_v45 = vld [vmem:[#allocation5 + $0xae0] sm:$0xff] }
 0x10e   :  { %v8048_v58 = vcombine.low %v463_v44, %v467_v45 }
 0x10f   :  { %2630 = vmatpush1.bf16.msra.mxu0 %v7984_v50  ;;  %2794 = vmatpush1.bf16.msra.mxu1 %v7986_v51  ;;  %v8049_v50 = vcombine.high %v463_v44, %v467_v45  ;;  %v8051_v51 = vcombine.high %v464_v46, %v468_v47  ;;  %v133_v44 = vld [vmem:[#allocation5 + $0x70] sm:$0xff]  ;;  %v8896_v45 = vld [vmem:[#allocation2 + $0x18] ss:$0 sps:$4 sm:$0xff]  }
 0x110   :  { %2631 = vmatprep.subr.bf16.mxu0 %v7993_v52  ;;  %2795 = vmatprep.subr.bf16.mxu1 %v7995_v54  ;;  %v471_v52 = vld [vmem:[#allocation5 + $0xb00] sm:$0xff]  ;;  %v130_v46 = vld [vmem:[#allocation5 + $0x58] sm:$0xff] }
 0x111   :  { %v475_v54 = vld [vmem:[#allocation5 + $0xb20] sm:$0xff]  ;;  %v134_v47 = vld [vmem:[#allocation5 + $0x78] sm:$0xff] }
 0x112   :  { %v8056_v2 = vcombine.low %v471_v52, %v475_v54 }
 0x113   :  { %2632 = vmatpush1.bf16.msra.mxu0 %v7992_v60  ;;  %2796 = vmatpush1.bf16.msra.mxu1 %v7994_v61  ;;  %v8057_v60 = vcombine.high %v471_v52, %v475_v54  ;;  %v8059_v61 = vcombine.high %v472_v55, %v476_v56  ;;  %v137_v52 = vld [vmem:[#allocation5 + $0x90] sm:$0xff]  ;;  %v138_v55 = vld [vmem:[#allocation5 + $0x98] sm:$0xff] }
 0x114   :  { %2633 = vmatprep.subr.bf16.mxu0 %v8001_v62  ;;  %2797 = vmatprep.subr.bf16.mxu1 %v8003_v63  ;;  %v479_v62 = vld [vmem:[#allocation5 + $0xb40] sm:$0xff]  ;;  %v141_v54 = vld [vmem:[#allocation5 + $0xb0] sm:$0xff]  ;;  %v142_v56 = vld [vmem:[#allocation5 + $0xb8] sm:$0xff] }
 0x115   :  { %v483_v63 = vld [vmem:[#allocation5 + $0xb60] sm:$0xff] }
 0x116   :  { %v8064_v10 = vcombine.low %v479_v62, %v483_v63 }
 0x117   :  { %2634 = vmatpush1.bf16.msra.mxu0 %v8000_v4  ;;  %2798 = vmatpush1.bf16.msra.mxu1 %v8002_v5  ;;  %v8065_v4 = vcombine.high %v479_v62, %v483_v63  ;;  %v8067_v5 = vcombine.high %v480_v0, %v484_v1  ;;  %v145_v62 = vld [vmem:[#allocation5 + $0xd0] sm:$0xff]  ;;  %v146_v0 = vld [vmem:[#allocation5 + $0xd8] sm:$0xff] }
 0x118   :  { %2635 = vmatprep.subr.bf16.mxu0 %v8009_v6  ;;  %2799 = vmatprep.subr.bf16.mxu1 %v8011_v7  ;;  %v487_v6 = vld [vmem:[#allocation5 + $0xb80] sm:$0xff]  ;;  %v149_v63 = vld [vmem:[#allocation5 + $0xf0] sm:$0xff]  ;;  %v150_v1 = vld [vmem:[#allocation5 + $0xf8] sm:$0xff] }
 0x119   :  { %v491_v7 = vld [vmem:[#allocation5 + $0xba0] sm:$0xff] }
 0x11a   :  { %v8072_v20 = vcombine.low %v487_v6, %v491_v7 }
 0x11b   :  { %2636 = vmatpush1.bf16.msra.mxu0 %v8008_v13  ;;  %2800 = vmatpush1.bf16.msra.mxu1 %v8010_v14  ;;  %v8073_v13 = vcombine.high %v487_v6, %v491_v7  ;;  %v8075_v14 = vcombine.high %v488_v8, %v492_v9  ;;  %v153_v6 = vld [vmem:[#allocation5 + $0x110] sm:$0xff]  ;;  %v154_v8 = vld [vmem:[#allocation5 + $0x118] sm:$0xff] }
 0x11c   :  { %2637 = vmatprep.subr.bf16.mxu0 %v8017_v16  ;;  %2801 = vmatprep.subr.bf16.mxu1 %v8019_v17  ;;  %v495_v16 = vld [vmem:[#allocation5 + $0xbc0] sm:$0xff]  ;;  %v157_v7 = vld [vmem:[#allocation5 + $0x130] sm:$0xff]  ;;  %v158_v9 = vld [vmem:[#allocation5 + $0x138] sm:$0xff] }
 0x11d   :  { %v499_v17 = vld [vmem:[#allocation5 + $0xbe0] sm:$0xff] }
 0x11e   :  { %v8080_v30 = vcombine.low %v495_v16, %v499_v17 }
 0x11f   :  { %2638 = vmatpush1.bf16.msra.mxu0 %v8016_v53  ;;  %2802 = vmatpush1.bf16.msra.mxu1 %v8018_v24  ;;  %v8081_v53 = vcombine.high %v495_v16, %v499_v17  ;;  %v8083_v24 = vcombine.high %v496_v18, %v500_v19  ;;  %v165_v16 = vld [vmem:[#allocation5 + $0x170] sm:$0xff]  ;;  %v162_v17 = vld [vmem:[#allocation5 + $0x158] sm:$0xff]  ;;  %v7740_v19 = vcombine.low %v153_v6, %v157_v7 }
 0x120   :  { %2639 = vmatprep.subr.bf16.mxu0 %v8025_v26  ;;  %2803 = vmatprep.subr.bf16.mxu1 %v8027_v27  ;;  %v503_v26 = vld [vmem:[#allocation5 + $0xc00] sm:$0xff]  ;;  %v166_v18 = vld [vmem:[#allocation5 + $0x178] sm:$0xff] }
 0x121   :  { %v507_v27 = vld [vmem:[#allocation5 + $0xc20] sm:$0xff] }
 0x122   :  { %v8088_v37 = vcombine.low %v503_v26, %v507_v27 }
 0x123   :  { %2640 = vmatpush1.bf16.msra.mxu0 %v8024_v15  ;;  %2804 = vmatpush1.bf16.msra.mxu1 %v8026_v33  ;;  %v8089_v15 = vcombine.high %v503_v26, %v507_v27  ;;  %v8091_v33 = vcombine.high %v504_v28, %v508_v29  ;;  %v173_v26 = vld [vmem:[#allocation5 + $0x1b0] sm:$0xff]  ;;  %v170_v27 = vld [vmem:[#allocation5 + $0x198] sm:$0xff] }
 0x124   :  { %2641 = vmatprep.subr.bf16.mxu0 %v8033_v34  ;;  %2805 = vmatprep.subr.bf16.mxu1 %v8035_v35  ;;  %v9324_v34 = vcombine.low %v9312_v25, %v9312_v25  ;;  %v121_v35 = vld [vmem:[#allocation5 + $0x10] sm:$0xff]  ;;  %v9160_v25 = vmov 0  }
 0x127   :  { %2642 = vmatpush1.bf16.msra.mxu0 %v8032_v40  ;;  %2806 = vmatpush1.bf16.msra.mxu1 %v8034_v41  ;;  %v8090_v40 = vcombine.low %v504_v28, %v508_v29  ;;  %v7709_v41 = vcombine.high %v121_v35, %v125_v36  ;;  %v174_v28 = vld [vmem:[#allocation5 + $0x1b8] sm:$0xff] }
 0x128   :  { %2643 = vmatprep.subr.bf16.mxu0 %v8041_v42  ;;  %2807 = vmatprep.subr.bf16.mxu1 %v8043_v43  ;;  %v7711_v42 = vcombine.high %v122_v38, %v126_v39  ;;  %v129_v43 = vld [vmem:[#allocation5 + $0x50] sm:$0xff] }
 0x12b   :  { %2644 = vmatpush1.bf16.msra.mxu0 %v8040_v48  ;;  %2808 = vmatpush1.bf16.msra.mxu1 %v8042_v49  ;;  %v7708_v48 = vcombine.low %v121_v35, %v125_v36  ;;  %v7710_v49 = vcombine.low %v122_v38, %v126_v39  ;;  %v181_v35 = vld [vmem:[#allocation5 + $0x1f0] sm:$0xff]  ;;  %v178_v36 = vld [vmem:[#allocation5 + $0x1d8] sm:$0xff]  ;;  %v7758_v39 = vcombine.low %v170_v27, %v174_v28 }
 0x12c   :  { %2645 = vmatprep.subr.bf16.mxu0 %v8049_v50  ;;  %2809 = vmatprep.subr.bf16.mxu1 %v8051_v51  ;;  %v7717_v50 = vcombine.high %v129_v43, %v133_v44  ;;  %v7719_v51 = vcombine.high %v130_v46, %v134_v47 }
 0x12f   :  { %2646 = vmatpush1.bf16.msra.mxu0 %v8048_v58  ;;  %2810 = vmatpush1.bf16.msra.mxu1 %v8050_v59  ;;  %v7716_v58 = vcombine.low %v129_v43, %v133_v44  ;;  %v7718_v59 = vcombine.low %v130_v46, %v134_v47  ;;  %v189_v43 = vld [vmem:[#allocation5 + $0x230] sm:$0xff]  ;;  %v186_v44 = vld [vmem:[#allocation5 + $0x218] sm:$0xff] }
 0x130   :  { %2647 = vmatprep.subr.bf16.mxu0 %v8057_v60  ;;  %2811 = vmatprep.subr.bf16.mxu1 %v8059_v61  ;;  %v7725_v60 = vcombine.high %v137_v52, %v141_v54  ;;  %v7727_v61 = vcombine.high %v138_v55, %v142_v56 }
 0x133   :  { %2648 = vmatpush1.bf16.msra.mxu0 %v8056_v2  ;;  %2812 = vmatpush1.bf16.msra.mxu1 %v8058_v3  ;;  %v7724_v2 = vcombine.low %v137_v52, %v141_v54  ;;  %v7726_v3 = vcombine.low %v138_v55, %v142_v56  ;;  %v194_v52 = vld [vmem:[#allocation5 + $0x258] sm:$0xff] }
 0x134   :  { %2649 = vmatprep.subr.bf16.mxu0 %v8065_v4  ;;  %2813 = vmatprep.subr.bf16.mxu1 %v8067_v5  ;;  %v7733_v4 = vcombine.high %v145_v62, %v149_v63  ;;  %v7735_v5 = vcombine.high %v146_v0, %v150_v1  ;;  %v198_v54 = vld [vmem:[#allocation5 + $0x278] sm:$0xff] }
 0x137   :  { %2650 = vmatpush1.bf16.msra.mxu0 %v8064_v10  ;;  %2814 = vmatpush1.bf16.msra.mxu1 %v8066_v11  ;;  %v7732_v10 = vcombine.low %v145_v62, %v149_v63  ;;  %v7734_v11 = vcombine.low %v146_v0, %v150_v1  ;;  %v202_v62 = vld [vmem:[#allocation5 + $0x298] sm:$0xff]  ;;  %v7782_v1 = vcombine.low %v194_v52, %v198_v54 }
 0x138   :  { %2651 = vmatprep.subr.bf16.mxu0 %v8073_v13  ;;  %2815 = vmatprep.subr.bf16.mxu1 %v8075_v14  ;;  %v7741_v13 = vcombine.high %v153_v6, %v157_v7  ;;  %v161_v14 = vld [vmem:[#allocation5 + $0x150] sm:$0xff]  ;;  %v206_v63 = vld [vmem:[#allocation5 + $0x2b8] sm:$0xff] }
 0x139   :  { %v7748_v29 = vcombine.low %v161_v14, %v165_v16  ;;  %v210_v6 = vld [vmem:[#allocation5 + $0x2d8] sm:$0xff] }
 0x13a   :  { %v214_v7 = vld [vmem:[#allocation5 + $0x2f8] sm:$0xff] }
 0x13b   :  { %2652 = vmatpush1.bf16.msra.mxu0 %v8072_v20  ;;  %2816 = vmatpush1.bf16.msra.mxu1 %v8074_v21  ;;  %v7742_v20 = vcombine.low %v154_v8, %v158_v9  ;;  %v7749_v21 = vcombine.high %v161_v14, %v165_v16  ;;  %v218_v14 = vld [vmem:[#allocation5 + $0x318] sm:$0xff] }
 0x13c   :  { %2653 = vmatprep.subr.bf16.mxu0 %v8081_v53  ;;  %2817 = vmatprep.subr.bf16.mxu1 %v8083_v24  ;;  %v7751_v53 = vcombine.high %v162_v17, %v166_v18  ;;  %v169_v24 = vld [vmem:[#allocation5 + $0x190] sm:$0xff]  ;;  %v222_v16 = vld [vmem:[#allocation5 + $0x338] sm:$0xff] }
 0x13d   :  { %v7756_v38 = vcombine.low %v169_v24, %v173_v26 }
 0x13f   :  { %2654 = vmatpush1.bf16.msra.mxu0 %v8080_v30  ;;  %2818 = vmatpush1.bf16.msra.mxu1 %v8082_v31  ;;  %v7750_v30 = vcombine.low %v162_v17, %v166_v18  ;;  %v7757_v31 = vcombine.high %v169_v24, %v173_v26  ;;  %v7798_v18 = vcombine.low %v210_v6, %v214_v7  ;;  %v226_v24 = vld [vmem:[#allocation5 + $0x358] sm:$0xff] }
 0x140   :  { %2664 = vmatprep.subr.bf16.mxu0 %v8089_v15  ;;  %2828 = vmatprep.subr.bf16.mxu1 %v8091_v33  ;;  %v7759_v15 = vcombine.high %v170_v27, %v174_v28  ;;  %v177_v33 = vld [vmem:[#allocation5 + $0x1d0] sm:$0xff]  ;;  %v230_v26 = vld [vmem:[#allocation5 + $0x378] sm:$0xff]  ;;  %v7806_v28 = vcombine.low %v218_v14, %v222_v16 }
 0x141   :  { %v7764_v46 = vcombine.low %v177_v33, %v181_v35 }
 0x142   :  { %2656 = vmatmul.mubr.bf16.vlgmr.msra.gmra.mrb[0].mxu0 %v9324_v34  ;;  %2820 = vmatmul.mubr.bf16.vlgmr.msra.gmra.mrb[0].mxu1 %v9324_v34 }
 0x143   :  { %2665 = vmatpush1.bf16.msra.mxu0 %v8088_v37  ;;  %2829 = vmatpush1.bf16.msra.mxu1 %v8090_v40  ;;  %v182_v37 = vld [vmem:[#allocation5 + $0x1f8] sm:$0xff]  ;;  %v7765_v40 = vcombine.high %v177_v33, %v181_v35 }
 0x144   :  { %2696 = vmatprep.mubr.bf16.mxu0 %v9160_v25  ;;  %2860 = vmatprep.mubr.bf16.mxu1 %v9160_v25  ;;  %v7766_v47 = vcombine.low %v178_v36, %v182_v37  ;;  %v234_v33 = vld [vmem:[#allocation5 + $0x398] sm:$0xff] }
 0x145   :  { %2869 = vmatprep.subr.bf16.mxu0 %v7709_v41  ;;  %3033 = vmatprep.subr.bf16.mxu1 %v7711_v42  ;;  %v7767_v41 = vcombine.high %v178_v36, %v182_v37  ;;  %v185_v42 = vld [vmem:[#allocation5 + $0x210] sm:$0xff]  ;;  %v238_v35 = vld [vmem:[#allocation5 + $0x3b8] sm:$0xff]  ;;  %v7814_v37 = vcombine.low %v226_v24, %v230_v26 }
 0x146   :  { %v7772_v55 = vcombine.low %v185_v42, %v189_v43 }
 0x14e   :  { %8096 = vmatmul.mubr.msk.bf16.vlgmr.msra.gmra.mrb[0].mxu0 %vm2537_vm0, %v8896_v45  ;;  %8097 = vmatmul.mubr.msk.bf16.vlgmr.msra.gmra.mrb[0].mxu1 %vm2537_vm0, %v8896_v45  ;;  %v190_v45 = vld [vmem:[#allocation5 + $0x238] sm:$0xff] }
 0x14f   :  { %2870 = vmatpush1.bf16.msra.mxu0 %v7708_v48  ;;  %3034 = vmatpush1.bf16.msra.mxu1 %v7710_v49  ;;  %v7773_v48 = vcombine.high %v185_v42, %v189_v43  ;;  %v7775_v49 = vcombine.high %v186_v44, %v190_v45  ;;  %v7774_v56 = vcombine.low %v186_v44, %v190_v45  ;;  %v242_v42 = vld [vmem:[#allocation5 + $0x3d8] sm:$0xff] }
 0x150   :  { %2871 = vmatprep.subr.bf16.mxu0 %v7717_v50  ;;  %3035 = vmatprep.subr.bf16.mxu1 %v7719_v51  ;;  %v193_v50 = vld [vmem:[#allocation5 + $0x250] sm:$0xff]  ;;  %v246_v43 = vld [vmem:[#allocation5 + $0x3f8] sm:$0xff]  ;;  %v7822_v45 = vcombine.low %v234_v33, %v238_v35 }
 0x151   :  { %2901 = vmatprep.mubr.bf16.mxu0 %v9290_v57  ;;  %3065 = vmatprep.mubr.bf16.mxu1 %v9290_v57  ;;  %v7743_v57 = vcombine.high %v154_v8, %v158_v9  ;;  %v197_v51 = vld [vmem:[#allocation5 + $0x270] sm:$0xff]  ;;  %v7790_v9 = vcombine.low %v202_v62, %v206_v63 }
 0x152   :  { %v7780_v0 = vcombine.low %v193_v50, %v197_v51 }
 0x153   :  { %2872 = vmatpush1.bf16.msra.mxu0 %v7716_v58  ;;  %3036 = vmatpush1.bf16.msra.mxu1 %v7718_v59  ;;  %v7781_v58 = vcombine.high %v193_v50, %v197_v51  ;;  %v7783_v59 = vcombine.high %v194_v52, %v198_v54  ;;  %v250_v50 = vld [vmem:[#allocation5 + $0x418] sm:$0xff]  ;;  %v7830_v54 = vcombine.low %v242_v42, %v246_v43 }
 0x154   :  { %2873 = vmatprep.subr.bf16.mxu0 %v7725_v60  ;;  %3037 = vmatprep.subr.bf16.mxu1 %v7727_v61  ;;  %v201_v60 = vld [vmem:[#allocation5 + $0x290] sm:$0xff]  ;;  %v254_v51 = vld [vmem:[#allocation5 + $0x438] sm:$0xff] }
 0x155   :  { %v205_v61 = vld [vmem:[#allocation5 + $0x2b0] sm:$0xff] }
 0x156   :  { %v7788_v8 = vcombine.low %v201_v60, %v205_v61 }
 0x157   :  { %2874 = vmatpush1.bf16.msra.mxu0 %v7724_v2  ;;  %3038 = vmatpush1.bf16.msra.mxu1 %v7726_v3  ;;  %v7789_v2 = vcombine.high %v201_v60, %v205_v61  ;;  %v7791_v3 = vcombine.high %v202_v62, %v206_v63  ;;  %v258_v60 = vld [vmem:[#allocation5 + $0x458] sm:$0xff]  ;;  %v7838_v63 = vcombine.low %v250_v50, %v254_v51 }
 0x158   :  { %2875 = vmatprep.subr.bf16.mxu0 %v7733_v4  ;;  %3039 = vmatprep.subr.bf16.mxu1 %v7735_v5  ;;  %v209_v4 = vld [vmem:[#allocation5 + $0x2d0] sm:$0xff]  ;;  %v262_v61 = vld [vmem:[#allocation5 + $0x478] sm:$0xff] }
 0x159   :  { %v213_v5 = vld [vmem:[#allocation5 + $0x2f0] sm:$0xff] }
 0x15a   :  { %v7796_v17 = vcombine.low %v209_v4, %v213_v5 }
 0x15b   :  { %2876 = vmatpush1.bf16.msra.mxu0 %v7732_v10  ;;  %3040 = vmatpush1.bf16.msra.mxu1 %v7734_v11  ;;  %v7797_v10 = vcombine.high %v209_v4, %v213_v5  ;;  %v7799_v11 = vcombine.high %v210_v6, %v214_v7  ;;  %v266_v4 = vld [vmem:[#allocation5 + $0x498] sm:$0xff]  ;;  %v7846_v7 = vcombine.low %v258_v60, %v262_v61 }
 0x15c   :  { %2877 = vmatprep.subr.bf16.mxu0 %v7741_v13  ;;  %3041 = vmatprep.subr.bf16.mxu1 %v7743_v57  ;;  %v217_v13 = vld [vmem:[#allocation5 + $0x310] sm:$0xff]  ;;  %v270_v5 = vld [vmem:[#allocation5 + $0x4b8] sm:$0xff] }
 0x15d   :  { %v221_v57 = vld [vmem:[#allocation5 + $0x330] sm:$0xff] }
 0x15e   :  { %v7804_v27 = vcombine.low %v217_v13, %v221_v57 }
 0x15f   :  { %2878 = vmatpush1.bf16.msra.mxu0 %v7740_v19  ;;  %3042 = vmatpush1.bf16.msra.mxu1 %v7742_v20  ;;  %v7805_v19 = vcombine.high %v217_v13, %v221_v57  ;;  %v7807_v20 = vcombine.high %v218_v14, %v222_v16  ;;  %v274_v13 = vld [vmem:[#allocation5 + $0x4d8] sm:$0xff] }
 0x160   :  { %2879 = vmatprep.subr.bf16.mxu0 %v7749_v21  ;;  %3043 = vmatprep.subr.bf16.mxu1 %v7751_v53  ;;  %v225_v21 = vld [vmem:[#allocation5 + $0x350] sm:$0xff]  ;;  %v278_v57 = vld [vmem:[#allocation5 + $0x4f8] sm:$0xff] }
 0x161   :  { %v229_v53 = vld [vmem:[#allocation5 + $0x370] sm:$0xff] }
 0x162   :  { %v7812_v36 = vcombine.low %v225_v21, %v229_v53 }
 0x163   :  { %2880 = vmatpush1.bf16.msra.mxu0 %v7748_v29  ;;  %3044 = vmatpush1.bf16.msra.mxu1 %v7750_v30  ;;  %v7813_v29 = vcombine.high %v225_v21, %v229_v53  ;;  %v7815_v30 = vcombine.high %v226_v24, %v230_v26  ;;  %v286_v21 = vld [vmem:[#allocation5 + $0x538] sm:$0xff]  ;;  %v7862_v24 = vcombine.low %v274_v13, %v278_v57 }
 0x164   :  { %2881 = vmatprep.subr.bf16.mxu0 %v7757_v31  ;;  %3045 = vmatprep.subr.bf16.mxu1 %v7759_v15  ;;  %v233_v31 = vld [vmem:[#allocation5 + $0x390] sm:$0xff] }
 0x165   :  { %v237_v15 = vld [vmem:[#allocation5 + $0x3b0] sm:$0xff] }
 0x166   :  { %v7820_v44 = vcombine.low %v233_v31, %v237_v15 }
 0x167   :  { %2882 = vmatpush1.bf16.msra.mxu0 %v7756_v38  ;;  %3046 = vmatpush1.bf16.msra.mxu1 %v7758_v39  ;;  %v7821_v38 = vcombine.high %v233_v31, %v237_v15  ;;  %v7823_v39 = vcombine.high %v234_v33, %v238_v35 }
 0x168   :  { %2883 = vmatprep.subr.bf16.mxu0 %v7765_v40  ;;  %3047 = vmatprep.subr.bf16.mxu1 %v7767_v41  ;;  %v241_v40 = vld [vmem:[#allocation5 + $0x3d0] sm:$0xff] }
 0x169   :  { %v245_v41 = vld [vmem:[#allocation5 + $0x3f0] sm:$0xff] }
 0x16a   :  { %v7828_v52 = vcombine.low %v241_v40, %v245_v41 }
 0x16b   :  { %2884 = vmatpush1.bf16.msra.mxu0 %v7764_v46  ;;  %3048 = vmatpush1.bf16.msra.mxu1 %v7766_v47  ;;  %v7829_v46 = vcombine.high %v241_v40, %v245_v41  ;;  %v7831_v47 = vcombine.high %v242_v42, %v246_v43 }
 0x16c   :  { %2885 = vmatprep.subr.bf16.mxu0 %v7773_v48  ;;  %3049 = vmatprep.subr.bf16.mxu1 %v7775_v49  ;;  %v249_v48 = vld [vmem:[#allocation5 + $0x410] sm:$0xff] }
 0x16d   :  { %v253_v49 = vld [vmem:[#allocation5 + $0x430] sm:$0xff] }
 0x16e   :  { %v7836_v62 = vcombine.low %v249_v48, %v253_v49 }
 0x16f   :  { %2886 = vmatpush1.bf16.msra.mxu0 %v7772_v55  ;;  %3050 = vmatpush1.bf16.msra.mxu1 %v7774_v56  ;;  %v7837_v55 = vcombine.high %v249_v48, %v253_v49  ;;  %v7839_v56 = vcombine.high %v250_v50, %v254_v51 }
 0x170   :  { %2887 = vmatprep.subr.bf16.mxu0 %v7781_v58  ;;  %3051 = vmatprep.subr.bf16.mxu1 %v7783_v59  ;;  %v257_v58 = vld [vmem:[#allocation5 + $0x450] sm:$0xff] }
 0x171   :  { %v261_v59 = vld [vmem:[#allocation5 + $0x470] sm:$0xff] }
 0x172   :  { %v7844_v6 = vcombine.low %v257_v58, %v261_v59 }
 0x173   :  { %2888 = vmatpush1.bf16.msra.mxu0 %v7780_v0  ;;  %3052 = vmatpush1.bf16.msra.mxu1 %v7782_v1  ;;  %v7845_v0 = vcombine.high %v257_v58, %v261_v59  ;;  %v7847_v1 = vcombine.high %v258_v60, %v262_v61 }
 0x174   :  { %2889 = vmatprep.subr.bf16.mxu0 %v7789_v2  ;;  %3053 = vmatprep.subr.bf16.mxu1 %v7791_v3  ;;  %v265_v2 = vld [vmem:[#allocation5 + $0x490] sm:$0xff] }
 0x175   :  { %v269_v3 = vld [vmem:[#allocation5 + $0x4b0] sm:$0xff] }
 0x176   :  { %v7852_v14 = vcombine.low %v265_v2, %v269_v3 }
 0x177   :  { %2890 = vmatpush1.bf16.msra.mxu0 %v7788_v8  ;;  %3054 = vmatpush1.bf16.msra.mxu1 %v7790_v9  ;;  %v7853_v8 = vcombine.high %v265_v2, %v269_v3  ;;  %v7855_v9 = vcombine.high %v266_v4, %v270_v5 }
 0x178   :  { %2891 = vmatprep.subr.bf16.mxu0 %v7797_v10  ;;  %3055 = vmatprep.subr.bf16.mxu1 %v7799_v11  ;;  %v273_v10 = vld [vmem:[#allocation5 + $0x4d0] sm:$0xff] }
 0x179   :  { %v277_v11 = vld [vmem:[#allocation5 + $0x4f0] sm:$0xff] }
 0x17a   :  { %v7861_v16 = vcombine.high %v273_v10, %v277_v11  ;;  %v7860_v53 = vcombine.low %v273_v10, %v277_v11 }
 0x17b   :  { %2892 = vmatpush1.bf16.msra.mxu0 %v7796_v17  ;;  %3056 = vmatpush1.bf16.msra.mxu1 %v7798_v18  ;;  %v7863_v17 = vcombine.high %v274_v13, %v278_v57  ;;  %v281_v18 = vld [vmem:[#allocation5 + $0x510] sm:$0xff] }
 0x17c   :  { %2893 = vmatprep.subr.bf16.mxu0 %v7805_v19  ;;  %3057 = vmatprep.subr.bf16.mxu1 %v7807_v20  ;;  %v285_v19 = vld [vmem:[#allocation5 + $0x530] sm:$0xff]  ;;  %v282_v20 = vld [vmem:[#allocation5 + $0x518] sm:$0xff] }
 0x17d   :  { %v7869_v26 = vcombine.high %v281_v18, %v285_v19  ;;  %v7868_v31 = vcombine.low %v281_v18, %v285_v19  ;;  %v7870_v15 = vcombine.low %v282_v20, %v286_v21 }
 0x17f   :  { %2894 = vmatpush1.bf16.msra.mxu0 %v7804_v27  ;;  %3058 = vmatpush1.bf16.msra.mxu1 %v7806_v28  ;;  %v289_v27 = vld [vmem:[#allocation5 + $0x550] sm:$0xff] }
 0x180   :  { %2895 = vmatprep.subr.bf16.mxu0 %v7813_v29  ;;  %3059 = vmatprep.subr.bf16.mxu1 %v7815_v30  ;;  %v293_v28 = vld [vmem:[#allocation5 + $0x570] sm:$0xff]  ;;  %v290_v29 = vld [vmem:[#allocation5 + $0x558] sm:$0xff] }
 0x181   :  { %v294_v30 = vld [vmem:[#allocation5 + $0x578] sm:$0xff]  ;;  %v7877_v33 = vcombine.high %v289_v27, %v293_v28  ;;  %v7876_v40 = vcombine.low %v289_v27, %v293_v28 }
 0x182   :  { %v7879_v35 = vcombine.high %v290_v29, %v294_v30  ;;  %v7878_v41 = vcombine.low %v290_v29, %v294_v30 }
 0x183   :  { %2896 = vmatpush1.bf16.msra.mxu0 %v7812_v36  ;;  %3060 = vmatpush1.bf16.msra.mxu1 %v7814_v37  ;;  %v297_v36 = vld [vmem:[#allocation5 + $0x590] sm:$0xff] }
 0x184   :  { %2897 = vmatprep.subr.bf16.mxu0 %v7821_v38  ;;  %3061 = vmatprep.subr.bf16.mxu1 %v7823_v39  ;;  %v301_v37 = vld [vmem:[#allocation5 + $0x5b0] sm:$0xff]  ;;  %v298_v38 = vld [vmem:[#allocation5 + $0x598] sm:$0xff] }
 0x185   :  { %v302_v39 = vld [vmem:[#allocation5 + $0x5b8] sm:$0xff]  ;;  %v7885_v42 = vcombine.high %v297_v36, %v301_v37  ;;  %v7884_v48 = vcombine.low %v297_v36, %v301_v37 }
 0x186   :  { %v7887_v43 = vcombine.high %v298_v38, %v302_v39  ;;  %v7886_v49 = vcombine.low %v298_v38, %v302_v39 }
 0x187   :  { %2898 = vmatpush1.bf16.msra.mxu0 %v7820_v44  ;;  %3062 = vmatpush1.bf16.msra.mxu1 %v7822_v45  ;;  %v305_v44 = vld [vmem:[#allocation5 + $0x5d0] sm:$0xff] }
 0x188   :  { %2899 = vmatprep.subr.bf16.mxu0 %v7829_v46  ;;  %3063 = vmatprep.subr.bf16.mxu1 %v7831_v47  ;;  %v309_v45 = vld [vmem:[#allocation5 + $0x5f0] sm:$0xff]  ;;  %v306_v46 = vld [vmem:[#allocation5 + $0x5d8] sm:$0xff] }
 0x189   :  { %v310_v47 = vld [vmem:[#allocation5 + $0x5f8] sm:$0xff]  ;;  %v7893_v50 = vcombine.high %v305_v44, %v309_v45  ;;  %v7892_v58 = vcombine.low %v305_v44, %v309_v45 }
 0x18a   :  { %v7895_v51 = vcombine.high %v306_v46, %v310_v47  ;;  %v7894_v59 = vcombine.low %v306_v46, %v310_v47 }
 0x18b   :  { %2900 = vmatpush1.bf16.msra.mxu0 %v7828_v52  ;;  %3064 = vmatpush1.bf16.msra.mxu1 %v7830_v54  ;;  %v313_v52 = vld [vmem:[#allocation5 + $0x610] sm:$0xff] }
 0x18c   :  { %2910 = vmatprep.subr.bf16.mxu0 %v7837_v55  ;;  %3074 = vmatprep.subr.bf16.mxu1 %v7839_v56  ;;  %v317_v54 = vld [vmem:[#allocation5 + $0x630] sm:$0xff]  ;;  %v314_v55 = vld [vmem:[#allocation5 + $0x618] sm:$0xff] }
 0x18d   :  { %v318_v56 = vld [vmem:[#allocation5 + $0x638] sm:$0xff]  ;;  %v7901_v60 = vcombine.high %v313_v52, %v317_v54  ;;  %v7900_v2 = vcombine.low %v313_v52, %v317_v54 }
 0x18e   :  { %2902 = vmatmul.mubr.bf16.vlgmr.msra.gmra.mrb[4].mxu0 %v9296_v12  ;;  %3066 = vmatmul.mubr.bf16.vlgmr.msra.gmra.mrb[4].mxu1 %v9296_v12  ;;  %v7854_v12 = vcombine.low %v266_v4, %v270_v5  ;;  %v7903_v61 = vcombine.high %v314_v55, %v318_v56  ;;  %v7902_v3 = vcombine.low %v314_v55, %v318_v56 }
 0x18f   :  { %2911 = vmatpush1.bf16.msra.mxu0 %v7836_v62  ;;  %3075 = vmatpush1.bf16.msra.mxu1 %v7838_v63  ;;  %v321_v62 = vld [vmem:[#allocation5 + $0x650] sm:$0xff] }
 0x190   :  { %2912 = vmatprep.subr.bf16.mxu0 %v7845_v0  ;;  %3076 = vmatprep.subr.bf16.mxu1 %v7847_v1  ;;  %v325_v63 = vld [vmem:[#allocation5 + $0x670] sm:$0xff]  ;;  %v322_v0 = vld [vmem:[#allocation5 + $0x658] sm:$0xff] }
 0x191   :  { %2942 = vmatprep.mubr.bf16.mxu0 %v9302_v22  ;;  %3106 = vmatprep.mubr.bf16.mxu1 %v9302_v22  ;;  %v7871_v22 = vcombine.high %v282_v20, %v286_v21  ;;  %v326_v1 = vld [vmem:[#allocation5 + $0x678] sm:$0xff]  ;;  %v7909_v4 = vcombine.high %v321_v62, %v325_v63  ;;  %v7908_v10 = vcombine.low %v321_v62, %v325_v63 }
 0x192   :  { %v7911_v5 = vcombine.high %v322_v0, %v326_v1  ;;  %v7910_v11 = vcombine.low %v322_v0, %v326_v1 }
 0x193   :  { %2913 = vmatpush1.bf16.msra.mxu0 %v7844_v6  ;;  %3077 = vmatpush1.bf16.msra.mxu1 %v7846_v7  ;;  %v329_v6 = vld [vmem:[#allocation5 + $0x690] sm:$0xff] }
 0x194   :  { %2914 = vmatprep.subr.bf16.mxu0 %v7853_v8  ;;  %3078 = vmatprep.subr.bf16.mxu1 %v7855_v9  ;;  %v333_v7 = vld [vmem:[#allocation5 + $0x6b0] sm:$0xff]  ;;  %v330_v8 = vld [vmem:[#allocation5 + $0x698] sm:$0xff] }
 0x195   :  { %v334_v9 = vld [vmem:[#allocation5 + $0x6b8] sm:$0xff]  ;;  %v7917_v13 = vcombine.high %v329_v6, %v333_v7  ;;  %v7916_v18 = vcombine.low %v329_v6, %v333_v7 }
 0x196   :  { %v7919_v57 = vcombine.high %v330_v8, %v334_v9  ;;  %v7918_v19 = vcombine.low %v330_v8, %v334_v9 }
 0x197   :  { %2915 = vmatpush1.bf16.msra.mxu0 %v7852_v14  ;;  %3079 = vmatpush1.bf16.msra.mxu1 %v7854_v12  ;;  %v337_v14 = vld [vmem:[#allocation5 + $0x6d0] sm:$0xff] }
 0x198   :  { %2916 = vmatprep.subr.bf16.mxu0 %v7861_v16  ;;  %3080 = vmatprep.subr.bf16.mxu1 %v7863_v17  ;;  %v341_v12 = vld [vmem:[#allocation5 + $0x6f0] sm:$0xff]  ;;  %v338_v16 = vld [vmem:[#allocation5 + $0x6d8] sm:$0xff] }
 0x199   :  { %v342_v17 = vld [vmem:[#allocation5 + $0x6f8] sm:$0xff]  ;;  %v7925_v20 = vcombine.high %v337_v14, %v341_v12  ;;  %v7924_v27 = vcombine.low %v337_v14, %v341_v12 }
 0x19a   :  { %v7927_v21 = vcombine.high %v338_v16, %v342_v17  ;;  %v7926_v28 = vcombine.low %v338_v16, %v342_v17 }
 0x19b   :  { %2917 = vmatpush1.bf16.msra.mxu0 %v7860_v53  ;;  %3081 = vmatpush1.bf16.msra.mxu1 %v7862_v24  ;;  %v345_v53 = vld [vmem:[#allocation5 + $0x710] sm:$0xff] }
 0x19c   :  { %2918 = vmatprep.subr.bf16.mxu0 %v7869_v26  ;;  %3082 = vmatprep.subr.bf16.mxu1 %v7871_v22  ;;  %v349_v24 = vld [vmem:[#allocation5 + $0x730] sm:$0xff]  ;;  %v346_v26 = vld [vmem:[#allocation5 + $0x718] sm:$0xff] }
 0x19d   :  { %v350_v22 = vld [vmem:[#allocation5 + $0x738] sm:$0xff]  ;;  %v7933_v29 = vcombine.high %v345_v53, %v349_v24  ;;  %v7932_v36 = vcombine.low %v345_v53, %v349_v24 }
 0x19e   :  { %v7935_v30 = vcombine.high %v346_v26, %v350_v22  ;;  %v7934_v37 = vcombine.low %v346_v26, %v350_v22  ;;  %v409_v22 = vld [vmem:[#allocation5 + $0x910] sm:$0xff] }
 0x19f   :  { %2919 = vmatpush1.bf16.msra.mxu0 %v7868_v31  ;;  %3083 = vmatpush1.bf16.msra.mxu1 %v7870_v15  ;;  %v353_v31 = vld [vmem:[#allocation5 + $0x750] sm:$0xff] }
 0x1a0   :  { %2920 = vmatprep.subr.bf16.mxu0 %v7877_v33  ;;  %3084 = vmatprep.subr.bf16.mxu1 %v7879_v35  ;;  %v357_v15 = vld [vmem:[#allocation5 + $0x770] sm:$0xff]  ;;  %v354_v33 = vld [vmem:[#allocation5 + $0x758] sm:$0xff] }
 0x1a1   :  { %v358_v35 = vld [vmem:[#allocation5 + $0x778] sm:$0xff]  ;;  %v7941_v38 = vcombine.high %v353_v31, %v357_v15  ;;  %v7940_v44 = vcombine.low %v353_v31, %v357_v15 }
 0x1a2   :  { %v7943_v39 = vcombine.high %v354_v33, %v358_v35  ;;  %v7942_v45 = vcombine.low %v354_v33, %v358_v35  ;;  %v417_v33 = vld [vmem:[#allocation5 + $0x950] sm:$0xff] }
 0x1a3   :  { %2921 = vmatpush1.bf16.msra.mxu0 %v7876_v40  ;;  %3085 = vmatpush1.bf16.msra.mxu1 %v7878_v41  ;;  %v361_v40 = vld [vmem:[#allocation5 + $0x790] sm:$0xff] }
 0x1a4   :  { %2922 = vmatprep.subr.bf16.mxu0 %v7885_v42  ;;  %3086 = vmatprep.subr.bf16.mxu1 %v7887_v43  ;;  %v365_v41 = vld [vmem:[#allocation5 + $0x7b0] sm:$0xff]  ;;  %v362_v42 = vld [vmem:[#allocation5 + $0x798] sm:$0xff] }
 0x1a5   :  { %v366_v43 = vld [vmem:[#allocation5 + $0x7b8] sm:$0xff]  ;;  %v7949_v46 = vcombine.high %v361_v40, %v365_v41  ;;  %v7948_v52 = vcombine.low %v361_v40, %v365_v41  ;;  %v421_v35 = vld [vmem:[#allocation5 + $0x970] sm:$0xff] }
 0x1a6   :  { %v7951_v47 = vcombine.high %v362_v42, %v366_v43  ;;  %v7950_v54 = vcombine.low %v362_v42, %v366_v43  ;;  %v8005_v40 = vcombine.high %v417_v33, %v421_v35  ;;  %v425_v42 = vld [vmem:[#allocation5 + $0x990] sm:$0xff] }
 0x1a7   :  { %2923 = vmatpush1.bf16.msra.mxu0 %v7884_v48  ;;  %3087 = vmatpush1.bf16.msra.mxu1 %v7886_v49  ;;  %v369_v48 = vld [vmem:[#allocation5 + $0x7d0] sm:$0xff] }
 0x1a8   :  { %2924 = vmatprep.subr.bf16.mxu0 %v7893_v50  ;;  %3088 = vmatprep.subr.bf16.mxu1 %v7895_v51  ;;  %v373_v49 = vld [vmem:[#allocation5 + $0x7f0] sm:$0xff]  ;;  %v370_v50 = vld [vmem:[#allocation5 + $0x7d8] sm:$0xff] }
 0x1a9   :  { %v374_v51 = vld [vmem:[#allocation5 + $0x7f8] sm:$0xff]  ;;  %v7957_v55 = vcombine.high %v369_v48, %v373_v49  ;;  %v7956_v62 = vcombine.low %v369_v48, %v373_v49  ;;  %v429_v43 = vld [vmem:[#allocation5 + $0x9b0] sm:$0xff] }
 0x1aa   :  { %v7959_v56 = vcombine.high %v370_v50, %v374_v51  ;;  %v7958_v63 = vcombine.low %v370_v50, %v374_v51  ;;  %v8013_v48 = vcombine.high %v425_v42, %v429_v43  ;;  %v433_v50 = vld [vmem:[#allocation5 + $0x9d0] sm:$0xff] }
 0x1ab   :  { %2925 = vmatpush1.bf16.msra.mxu0 %v7892_v58  ;;  %3089 = vmatpush1.bf16.msra.mxu1 %v7894_v59  ;;  %v377_v58 = vld [vmem:[#allocation5 + $0x810] sm:$0xff] }
 0x1ac   :  { %2926 = vmatprep.subr.bf16.mxu0 %v7901_v60  ;;  %3090 = vmatprep.subr.bf16.mxu1 %v7903_v61  ;;  %v381_v59 = vld [vmem:[#allocation5 + $0x830] sm:$0xff]  ;;  %v378_v60 = vld [vmem:[#allocation5 + $0x818] sm:$0xff] }
 0x1ad   :  { %v382_v61 = vld [vmem:[#allocation5 + $0x838] sm:$0xff]  ;;  %v7965_v0 = vcombine.high %v377_v58, %v381_v59  ;;  %v7964_v6 = vcombine.low %v377_v58, %v381_v59  ;;  %v437_v51 = vld [vmem:[#allocation5 + $0x9f0] sm:$0xff] }
 0x1ae   :  { %v7967_v1 = vcombine.high %v378_v60, %v382_v61  ;;  %v7966_v7 = vcombine.low %v378_v60, %v382_v61  ;;  %v8021_v58 = vcombine.high %v433_v50, %v437_v51  ;;  %v441_v60 = vld [vmem:[#allocation5 + $0xa10] sm:$0xff] }
 0x1af   :  { %2927 = vmatpush1.bf16.msra.mxu0 %v7900_v2  ;;  %3091 = vmatpush1.bf16.msra.mxu1 %v7902_v3  ;;  %v385_v2 = vld [vmem:[#allocation5 + $0x850] sm:$0xff] }
 0x1b0   :  { %2928 = vmatprep.subr.bf16.mxu0 %v7909_v4  ;;  %3092 = vmatprep.subr.bf16.mxu1 %v7911_v5  ;;  %v389_v3 = vld [vmem:[#allocation5 + $0x870] sm:$0xff]  ;;  %v386_v4 = vld [vmem:[#allocation5 + $0x858] sm:$0xff] }
 0x1b1   :  { %v390_v5 = vld [vmem:[#allocation5 + $0x878] sm:$0xff]  ;;  %v7973_v8 = vcombine.high %v385_v2, %v389_v3  ;;  %v7972_v14 = vcombine.low %v385_v2, %v389_v3  ;;  %v445_v61 = vld [vmem:[#allocation5 + $0xa30] sm:$0xff] }
 0x1b2   :  { %v7975_v9 = vcombine.high %v386_v4, %v390_v5  ;;  %v7974_v12 = vcombine.low %v386_v4, %v390_v5  ;;  %v8029_v2 = vcombine.high %v441_v60, %v445_v61  ;;  %v449_v4 = vld [vmem:[#allocation5 + $0xa50] sm:$0xff] }
 0x1b3   :  { %2929 = vmatpush1.bf16.msra.mxu0 %v7908_v10  ;;  %3093 = vmatpush1.bf16.msra.mxu1 %v7910_v11  ;;  %v393_v10 = vld [vmem:[#allocation5 + $0x890] sm:$0xff] }
 0x1b4   :  { %2930 = vmatprep.subr.bf16.mxu0 %v7917_v13  ;;  %3094 = vmatprep.subr.bf16.mxu1 %v7919_v57  ;;  %v397_v11 = vld [vmem:[#allocation5 + $0x8b0] sm:$0xff]  ;;  %v394_v13 = vld [vmem:[#allocation5 + $0x898] sm:$0xff] }
 0x1b5   :  { %v398_v57 = vld [vmem:[#allocation5 + $0x8b8] sm:$0xff]  ;;  %v7981_v16 = vcombine.high %v393_v10, %v397_v11  ;;  %v7980_v53 = vcombine.low %v393_v10, %v397_v11  ;;  %v453_v5 = vld [vmem:[#allocation5 + $0xa70] sm:$0xff] }
 0x1b6   :  { %v7983_v17 = vcombine.high %v394_v13, %v398_v57  ;;  %v8037_v10 = vcombine.high %v449_v4, %v453_v5 }
 0x1b7   :  { %2931 = vmatpush1.bf16.msra.mxu0 %v7916_v18  ;;  %3095 = vmatpush1.bf16.msra.mxu1 %v7918_v19  ;;  %v401_v18 = vld [vmem:[#allocation5 + $0x8d0] sm:$0xff] }
 0x1b8   :  { %2932 = vmatprep.subr.bf16.mxu0 %v7925_v20  ;;  %3096 = vmatprep.subr.bf16.mxu1 %v7927_v21  ;;  %v405_v19 = vld [vmem:[#allocation5 + $0x8f0] sm:$0xff]  ;;  %v402_v20 = vld [vmem:[#allocation5 + $0x8d8] sm:$0xff] }
 0x1b9   :  { %v406_v21 = vld [vmem:[#allocation5 + $0x8f8] sm:$0xff]  ;;  %v7989_v24 = vcombine.high %v401_v18, %v405_v19 }
 0x1ba   :  { %v7991_v26 = vcombine.high %v402_v20, %v406_v21  ;;  %v7990_v31 = vcombine.low %v402_v20, %v406_v21  ;;  %v465_v20 = vld [vmem:[#allocation5 + $0xad0] sm:$0xff] }
 0x1bb   :  { %2933 = vmatpush1.bf16.msra.mxu0 %v7924_v27  ;;  %3097 = vmatpush1.bf16.msra.mxu1 %v7926_v28  ;;  %v413_v27 = vld [vmem:[#allocation5 + $0x930] sm:$0xff]  ;;  %v410_v28 = vld [vmem:[#allocation5 + $0x918] sm:$0xff] }
 0x1bc   :  { %2934 = vmatprep.subr.bf16.mxu0 %v7933_v29  ;;  %3098 = vmatprep.subr.bf16.mxu1 %v7935_v30  ;;  %v414_v29 = vld [vmem:[#allocation5 + $0x938] sm:$0xff]  ;;  %v7988_v30 = vcombine.low %v401_v18, %v405_v19  ;;  %v7997_v15 = vcombine.high %v409_v22, %v413_v27  ;;  %v469_v21 = vld [vmem:[#allocation5 + $0xaf0] sm:$0xff] }
 0x1bf   :  { %2935 = vmatpush1.bf16.msra.mxu0 %v7932_v36  ;;  %3099 = vmatpush1.bf16.msra.mxu1 %v7934_v37  ;;  %v418_v36 = vld [vmem:[#allocation5 + $0x958] sm:$0xff] }
 0x1c0   :  { %2936 = vmatprep.subr.bf16.mxu0 %v7941_v38  ;;  %3100 = vmatprep.subr.bf16.mxu1 %v7943_v39  ;;  %v422_v37 = vld [vmem:[#allocation5 + $0x978] sm:$0xff]  ;;  %v7996_v38 = vcombine.low %v409_v22, %v413_v27  ;;  %v7998_v39 = vcombine.low %v410_v28, %v414_v29  ;;  %v8053_v22 = vcombine.high %v465_v20, %v469_v21 }
 0x1c1   :  { %v8007_v41 = vcombine.high %v418_v36, %v422_v37 }
 0x1c3   :  { %2937 = vmatpush1.bf16.msra.mxu0 %v7940_v44  ;;  %3101 = vmatpush1.bf16.msra.mxu1 %v7942_v45  ;;  %v426_v44 = vld [vmem:[#allocation5 + $0x998] sm:$0xff] }
 0x1c4   :  { %2938 = vmatprep.subr.bf16.mxu0 %v7949_v46  ;;  %3102 = vmatprep.subr.bf16.mxu1 %v7951_v47  ;;  %v430_v45 = vld [vmem:[#allocation5 + $0x9b8] sm:$0xff]  ;;  %v8004_v46 = vcombine.low %v417_v33, %v421_v35  ;;  %v8006_v47 = vcombine.low %v418_v36, %v422_v37  ;;  %v481_v36 = vld [vmem:[#allocation5 + $0xb50] sm:$0xff] }
 0x1c5   :  { %v8015_v49 = vcombine.high %v426_v44, %v430_v45  ;;  %v485_v37 = vld [vmem:[#allocation5 + $0xb70] sm:$0xff] }
 0x1c7   :  { %2939 = vmatpush1.bf16.msra.mxu0 %v7948_v52  ;;  %3103 = vmatpush1.bf16.msra.mxu1 %v7950_v54  ;;  %v434_v52 = vld [vmem:[#allocation5 + $0x9d8] sm:$0xff] }
 0x1c8   :  { %2940 = vmatprep.subr.bf16.mxu0 %v7957_v55  ;;  %3104 = vmatprep.subr.bf16.mxu1 %v7959_v56  ;;  %v438_v54 = vld [vmem:[#allocation5 + $0x9f8] sm:$0xff]  ;;  %v8012_v55 = vcombine.low %v425_v42, %v429_v43  ;;  %v8014_v56 = vcombine.low %v426_v44, %v430_v45  ;;  %v8069_v42 = vcombine.high %v481_v36, %v485_v37  ;;  %v489_v44 = vld [vmem:[#allocation5 + $0xb90] sm:$0xff] }
 0x1c9   :  { %v8023_v59 = vcombine.high %v434_v52, %v438_v54  ;;  %v493_v45 = vld [vmem:[#allocation5 + $0xbb0] sm:$0xff] }
 0x1cb   :  { %2941 = vmatpush1.bf16.msra.mxu0 %v7956_v62  ;;  %3105 = vmatpush1.bf16.msra.mxu1 %v7958_v63  ;;  %v442_v62 = vld [vmem:[#allocation5 + $0xa18] sm:$0xff] }
 0x1cc   :  { %2951 = vmatprep.subr.bf16.mxu0 %v7965_v0  ;;  %3115 = vmatprep.subr.bf16.mxu1 %v7967_v1  ;;  %v446_v63 = vld [vmem:[#allocation5 + $0xa38] sm:$0xff]  ;;  %v8020_v0 = vcombine.low %v433_v50, %v437_v51  ;;  %v8022_v1 = vcombine.low %v434_v52, %v438_v54  ;;  %v8077_v50 = vcombine.high %v489_v44, %v493_v45  ;;  %v497_v52 = vld [vmem:[#allocation5 + $0xbd0] sm:$0xff] }
 0x1cd   :  { %v8031_v3 = vcombine.high %v442_v62, %v446_v63  ;;  %v501_v54 = vld [vmem:[#allocation5 + $0xbf0] sm:$0xff] }
 0x1ce   :  { %2943 = vmatmul.mubr.bf16.vlgmr.msra.gmra.mrb[4].mxu0 %v9310_v23  ;;  %3107 = vmatmul.mubr.bf16.vlgmr.msra.gmra.mrb[4].mxu1 %v9310_v23  ;;  %v7982_v23 = vcombine.low %v394_v13, %v398_v57  ;;  %v457_v13 = vld [vmem:[#allocation5 + $0xa90] sm:$0xff] }
 0x1cf   :  { %2952 = vmatpush1.bf16.msra.mxu0 %v7964_v6  ;;  %3116 = vmatpush1.bf16.msra.mxu1 %v7966_v7  ;;  %v450_v6 = vld [vmem:[#allocation5 + $0xa58] sm:$0xff]  ;;  %v461_v57 = vld [vmem:[#allocation5 + $0xab0] sm:$0xff] }
 0x1d0   :  { %2953 = vmatprep.subr.bf16.mxu0 %v7973_v8  ;;  %3117 = vmatprep.subr.bf16.mxu1 %v7975_v9  ;;  %v454_v7 = vld [vmem:[#allocation5 + $0xa78] sm:$0xff]  ;;  %v8028_v8 = vcombine.low %v441_v60, %v445_v61  ;;  %v8030_v9 = vcombine.low %v442_v62, %v446_v63  ;;  %v8045_v18 = vcombine.high %v457_v13, %v461_v57  ;;  %v505_v62 = vld [vmem:[#allocation5 + $0xc10] sm:$0xff] }
 0x1d1   :  { %2983 = vmatprep.mubr.bf16.mxu0 %v9316_v32  ;;  %3147 = vmatprep.mubr.bf16.mxu1 %v9316_v32  ;;  %v7999_v32 = vcombine.high %v410_v28, %v414_v29  ;;  %v8039_v11 = vcombine.high %v450_v6, %v454_v7  ;;  %v473_v28 = vld [vmem:[#allocation5 + $0xb10] sm:$0xff]  ;;  %v8085_v60 = vcombine.high %v497_v52, %v501_v54 }
 0x1d2   :  { %v477_v29 = vld [vmem:[#allocation5 + $0xb30] sm:$0xff] }
 0x1d3   :  { %2954 = vmatpush1.bf16.msra.mxu0 %v7972_v14  ;;  %3118 = vmatpush1.bf16.msra.mxu1 %v7974_v12  ;;  %v458_v14 = vld [vmem:[#allocation5 + $0xa98] sm:$0xff]  ;;  %v8061_v33 = vcombine.high %v473_v28, %v477_v29  ;;  %v509_v63 = vld [vmem:[#allocation5 + $0xc30] sm:$0xff] }
 0x1d4   :  { %2955 = vmatprep.subr.bf16.mxu0 %v7981_v16  ;;  %3119 = vmatprep.subr.bf16.mxu1 %v7983_v17  ;;  %v462_v12 = vld [vmem:[#allocation5 + $0xab8] sm:$0xff]  ;;  %v8036_v16 = vcombine.low %v449_v4, %v453_v5  ;;  %v8038_v17 = vcombine.low %v450_v6, %v454_v7  ;;  %v8093_v4 = vcombine.high %v505_v62, %v509_v63  ;;  %v3213_v6 = vld [vmem:[#allocation8] sm:$0xff] }
 0x1d5   :  { %v8047_v19 = vcombine.high %v458_v14, %v462_v12  ;;  %v3217_v7 = vld [vmem:[#allocation8 + $0x20] sm:$0xff] }
 0x1d7   :  { %2956 = vmatpush1.bf16.msra.mxu0 %v7980_v53  ;;  %3120 = vmatpush1.bf16.msra.mxu1 %v7982_v23  ;;  %v466_v53 = vld [vmem:[#allocation5 + $0xad8] sm:$0xff] }
 0x1d8   :  { %2957 = vmatprep.subr.bf16.mxu0 %v7989_v24  ;;  %3121 = vmatprep.subr.bf16.mxu1 %v7991_v26  ;;  %v470_v23 = vld [vmem:[#allocation5 + $0xaf8] sm:$0xff]  ;;  %v8044_v24 = vcombine.low %v457_v13, %v461_v57  ;;  %v8046_v26 = vcombine.low %v458_v14, %v462_v12  ;;  %v8101_v13 = vcombine.high %v3213_v6, %v3217_v7  ;;  %v513_v14 = vlaneseq  ;;  %v3221_v12 = vld [vmem:[#allocation8 + $0x40] sm:$0xff] }
 0x1d9   :  { %v8055_v27 = vcombine.high %v466_v53, %v470_v23 }
 0x1db   :  { %2958 = vmatpush1.bf16.msra.mxu0 %v7988_v30  ;;  %3122 = vmatpush1.bf16.msra.mxu1 %v7990_v31  ;;  %v474_v30 = vld [vmem:[#allocation5 + $0xb18] sm:$0xff] }
 0x1dc   :  { %2959 = vmatprep.subr.bf16.mxu0 %v7997_v15  ;;  %3123 = vmatprep.subr.bf16.mxu1 %v7999_v32  ;;  %v478_v31 = vld [vmem:[#allocation5 + $0xb38] sm:$0xff]  ;;  %v8052_v15 = vcombine.low %v465_v20, %v469_v21  ;;  %v8054_v32 = vcombine.low %v466_v53, %v470_v23  ;;  %v9346_v20 = vshrl.u32 %v513_v14, 7 }
 0x1dd   :  { %v8063_v35 = vcombine.high %v474_v30, %v478_v31 }
 0x1df   :  { %2960 = vmatpush1.bf16.msra.mxu0 %v7996_v38  ;;  %3124 = vmatpush1.bf16.msra.mxu1 %v7998_v39  ;;  %v482_v38 = vld [vmem:[#allocation5 + $0xb58] sm:$0xff] }
 0x1e0   :  { %2961 = vmatprep.subr.bf16.mxu0 %v8005_v40  ;;  %3125 = vmatprep.subr.bf16.mxu1 %v8007_v41  ;;  %v486_v39 = vld [vmem:[#allocation5 + $0xb78] sm:$0xff]  ;;  %v8060_v40 = vcombine.low %v473_v28, %v477_v29  ;;  %v8062_v41 = vcombine.low %v474_v30, %v478_v31  ;;  %v519_v28 = vsub.s32 1, %v9346_v20  ;;  %v9351_v31 = vld [vmem:[#allocation7] sm:$0xff] }
 0x1e1   :  { %v8071_v43 = vcombine.high %v482_v38, %v486_v39 }
 0x1e3   :  { %2962 = vmatpush1.bf16.msra.mxu0 %v8004_v46  ;;  %3126 = vmatpush1.bf16.msra.mxu1 %v8006_v47  ;;  %v490_v46 = vld [vmem:[#allocation5 + $0xb98] sm:$0xff] }
 0x1e4   :  { %2963 = vmatprep.subr.bf16.mxu0 %v8013_v48  ;;  %3127 = vmatprep.subr.bf16.mxu1 %v8015_v49  ;;  %v494_v47 = vld [vmem:[#allocation5 + $0xbb8] sm:$0xff]  ;;  %v8068_v48 = vcombine.low %v481_v36, %v485_v37  ;;  %v8070_v49 = vcombine.low %v482_v38, %v486_v39  ;;  %v3242_v36 = vld [vmem:[#allocation8 + $0xe8] sm:$0xff]  ;;  %v520_v38 = vrot.slane %v9351_v31, %v519_v28 }
 0x1e5   :  { %v8079_v51 = vcombine.high %v490_v46, %v494_v47 }
 0x1e7   :  { %2964 = vmatpush1.bf16.msra.mxu0 %v8012_v55  ;;  %3128 = vmatpush1.bf16.msra.mxu1 %v8014_v56  ;;  %v498_v55 = vld [vmem:[#allocation5 + $0xbd8] sm:$0xff] }
 0x1e8   :  { %2965 = vmatprep.subr.bf16.mxu0 %v8021_v58  ;;  %3129 = vmatprep.subr.bf16.mxu1 %v8023_v59  ;;  %v502_v56 = vld [vmem:[#allocation5 + $0xbf8] sm:$0xff]  ;;  %v8076_v58 = vcombine.low %v489_v44, %v493_v45  ;;  %v8078_v59 = vcombine.low %v490_v46, %v494_v47  ;;  %v3249_v44 = vld [vmem:[#allocation8 + $0x120] sm:$0xff]  ;;  %v3246_v47 = vld [vmem:[#allocation8 + $0x108] sm:$0xff] }
 0x1e9   :  { %v8087_v61 = vcombine.high %v498_v55, %v502_v56 }
 0x1eb   :  { %2966 = vmatpush1.bf16.msra.mxu0 %v8020_v0  ;;  %3130 = vmatpush1.bf16.msra.mxu1 %v8022_v1  ;;  %v506_v0 = vld [vmem:[#allocation5 + $0xc18] sm:$0xff] }
 0x1ec   :  { %2967 = vmatprep.subr.bf16.mxu0 %v8029_v2  ;;  %3131 = vmatprep.subr.bf16.mxu1 %v8031_v3  ;;  %v510_v1 = vld [vmem:[#allocation5 + $0xc38] sm:$0xff]  ;;  %v8084_v2 = vcombine.low %v497_v52, %v501_v54  ;;  %v8086_v3 = vcombine.low %v498_v55, %v502_v56 }
 0x1ed   :  { %v8095_v5 = vcombine.high %v506_v0, %v510_v1 }
 0x1ef   :  { %2968 = vmatpush1.bf16.msra.mxu0 %v8028_v8  ;;  %3132 = vmatpush1.bf16.msra.mxu1 %v8030_v9  ;;  %v8092_v8 = vcombine.low %v505_v62, %v509_v63  ;;  %v3214_v9 = vld [vmem:[#allocation8 + $0x8] sm:$0xff]  ;;  %v3253_v62 = vld [vmem:[#allocation8 + $0x140] sm:$0xff] }
 0x1f0   :  { %2969 = vmatprep.subr.bf16.mxu0 %v8037_v10  ;;  %3133 = vmatprep.subr.bf16.mxu1 %v8039_v11  ;;  %v3218_v10 = vld [vmem:[#allocation8 + $0x28] sm:$0xff]  ;;  %v8094_v11 = vcombine.low %v506_v0, %v510_v1  ;;  %v3257_v63 = vld [vmem:[#allocation8 + $0x160] sm:$0xff] }
 0x1f1   :  { %v8103_v57 = vcombine.high %v3214_v9, %v3218_v10  ;;  %v8102_v21 = vcombine.low %v3214_v9, %v3218_v10  ;;  %v3254_v0 = vld [vmem:[#allocation8 + $0x148] sm:$0xff] }
 0x1f2   :  { %v3258_v1 = vld [vmem:[#allocation8 + $0x168] sm:$0xff] }
 0x1f3   :  { %2970 = vmatpush1.bf16.msra.mxu0 %v8036_v16  ;;  %3134 = vmatpush1.bf16.msra.mxu1 %v8038_v17  ;;  %v3225_v16 = vld [vmem:[#allocation8 + $0x60] sm:$0xff]  ;;  %v3222_v17 = vld [vmem:[#allocation8 + $0x48] sm:$0xff] }
 0x1f4   :  { %2971 = vmatprep.subr.bf16.mxu0 %v8045_v18  ;;  %3135 = vmatprep.subr.bf16.mxu1 %v8047_v19  ;;  %v3226_v18 = vld [vmem:[#allocation8 + $0x68] sm:$0xff]  ;;  %v8100_v19 = vcombine.low %v3213_v6, %v3217_v7  ;;  %v8109_v53 = vcombine.high %v3221_v12, %v3225_v16  ;;  %v8143_v6 = vcombine.high %v3254_v0, %v3258_v1  ;;  %v3261_v7 = vld [vmem:[#allocation8 + $0x180] sm:$0xff] }
 0x1f5   :  { %v8111_v23 = vcombine.high %v3222_v17, %v3226_v18  ;;  %v8110_v29 = vcombine.low %v3222_v17, %v3226_v18  ;;  %v3262_v9 = vld [vmem:[#allocation8 + $0x188] sm:$0xff] }
 0x1f6   :  { %v3266_v10 = vld [vmem:[#allocation8 + $0x1a8] sm:$0xff] }
 0x1f7   :  { %2972 = vmatpush1.bf16.msra.mxu0 %v8044_v24  ;;  %3136 = vmatpush1.bf16.msra.mxu1 %v8046_v26  ;;  %v3233_v24 = vld [vmem:[#allocation8 + $0xa0] sm:$0xff]  ;;  %v8961_v26 = vld [vmem:[#allocation2 + $0x18] ss:$0 sps:$4 sm:$0xff]   ;;  %v8151_v14 = vcombine.high %v3262_v9, %v3266_v10  ;;  %v3270_v17 = vld [vmem:[#allocation8 + $0x1c8] sm:$0xff] }
 0x1f8   :  { %2973 = vmatprep.subr.bf16.mxu0 %v8053_v22  ;;  %3137 = vmatprep.subr.bf16.mxu1 %v8055_v27  ;;  %v3230_v22 = vld [vmem:[#allocation8 + $0x88] sm:$0xff]  ;;  %v8108_v27 = vcombine.low %v3221_v12, %v3225_v16  ;;  %v3269_v12 = vld [vmem:[#allocation8 + $0x1c0] sm:$0xff] }
 0x1f9   :  { %v3273_v16 = vld [vmem:[#allocation8 + $0x1e0] sm:$0xff]  ;;  %v3274_v18 = vld [vmem:[#allocation8 + $0x1e8] sm:$0xff] }
 0x1fb   :  { %2974 = vmatpush1.bf16.msra.mxu0 %v8052_v15  ;;  %3138 = vmatpush1.bf16.msra.mxu1 %v8054_v32  ;;  %v3237_v32 = vld [vmem:[#allocation8 + $0xc0] sm:$0xff] }
 0x1fc   :  { %2975 = vmatprep.subr.bf16.mxu0 %v8061_v33  ;;  %3139 = vmatprep.subr.bf16.mxu1 %v8063_v35  ;;  %v3241_v33 = vld [vmem:[#allocation8 + $0xe0] sm:$0xff]  ;;  %v3238_v35 = vld [vmem:[#allocation8 + $0xc8] sm:$0xff] }
 0x1fd   :  { %v8124_v52 = vcombine.low %v3237_v32, %v3241_v33  ;;  %v8126_v56 = vcombine.low %v3238_v35, %v3242_v36 }
 0x1ff   :  { %2976 = vmatpush1.bf16.msra.mxu0 %v8060_v40  ;;  %3140 = vmatpush1.bf16.msra.mxu1 %v8062_v41  ;;  %v8125_v40 = vcombine.high %v3237_v32, %v3241_v33  ;;  %v3289_v32 = vld [vmem:[#allocation8 + $0x260] sm:$0xff]  ;;  %v3286_v33 = vld [vmem:[#allocation8 + $0x248] sm:$0xff] }
 0x200   :  { %2977 = vmatprep.subr.bf16.mxu0 %v8069_v42  ;;  %3141 = vmatprep.subr.bf16.mxu1 %v8071_v43  ;;  %v8127_v42 = vcombine.high %v3238_v35, %v3242_v36  ;;  %v3245_v43 = vld [vmem:[#allocation8 + $0x100] sm:$0xff]  ;;  %v3290_v35 = vld [vmem:[#allocation8 + $0x268] sm:$0xff] }
 0x203   :  { %2978 = vmatpush1.bf16.msra.mxu0 %v8068_v48  ;;  %3142 = vmatpush1.bf16.msra.mxu1 %v8070_v49  ;;  %v3250_v48 = vld [vmem:[#allocation8 + $0x128] sm:$0xff] }
 0x204   :  { %2979 = vmatprep.subr.bf16.mxu0 %v8077_v50  ;;  %3143 = vmatprep.subr.bf16.mxu1 %v8079_v51 }
 0x207   :  { %2980 = vmatpush1.bf16.msra.mxu0 %v8076_v58  ;;  %3144 = vmatpush1.bf16.msra.mxu1 %v8078_v59  ;;  %v8133_v58 = vcombine.high %v3245_v43, %v3249_v44 }
 0x208   :  { %2981 = vmatprep.subr.bf16.mxu0 %v8085_v60  ;;  %3145 = vmatprep.subr.bf16.mxu1 %v8087_v61  ;;  %v8135_v61 = vcombine.high %v3246_v47, %v3250_v48 }
 0x20b   :  { %2982 = vmatpush1.bf16.msra.mxu0 %v8084_v2  ;;  %3146 = vmatpush1.bf16.msra.mxu1 %v8086_v3  ;;  %v8132_v3 = vcombine.low %v3245_v43, %v3249_v44  ;;  %v3294_v43 = vld [vmem:[#allocation8 + $0x288] sm:$0xff] }
 0x20c   :  { %2992 = vmatprep.subr.bf16.mxu0 %v8093_v4  ;;  %3156 = vmatprep.subr.bf16.mxu1 %v8095_v5  ;;  %v8134_v4 = vcombine.low %v3246_v47, %v3250_v48  ;;  %v8141_v5 = vcombine.high %v3253_v62, %v3257_v63  ;;  %v3298_v44 = vld [vmem:[#allocation8 + $0x2a8] sm:$0xff]  ;;  %v8174_v47 = vcombine.low %v3286_v33, %v3290_v35 }
 0x20e   :  { %2984 = vmatmul.mubr.bf16.vlgmr.msra.gmra.mrb[4].mxu0 %v9324_v34  ;;  %3148 = vmatmul.mubr.bf16.vlgmr.msra.gmra.mrb[4].mxu1 %v9324_v34  ;;  %v3229_v34 = vld [vmem:[#allocation8 + $0x80] sm:$0xff] }
 0x20f   :  { %2993 = vmatpush1.bf16.msra.mxu0 %v8092_v8  ;;  %3157 = vmatpush1.bf16.msra.mxu1 %v8094_v11  ;;  %v8117_v30 = vcombine.high %v3229_v34, %v3233_v24  ;;  %v8116_v37 = vcombine.low %v3229_v34, %v3233_v24  ;;  %v3265_v8 = vld [vmem:[#allocation8 + $0x1a0] sm:$0xff]  ;;  %v8140_v11 = vcombine.low %v3253_v62, %v3257_v63  ;;  %v3310_v63 = vld [vmem:[#allocation8 + $0x308] sm:$0xff] }
 0x210   :  { %3024 = vmatprep.mubr.bf16.mxu0 %v9160_v25  ;;  %3188 = vmatprep.mubr.bf16.mxu1 %v9160_v25  ;;  %v3234_v25 = vld [vmem:[#allocation8 + $0xa8] sm:$0xff]  ;;  %v3277_v34 = vld [vmem:[#allocation8 + $0x200] sm:$0xff] }
 0x211   :  { %6327 = vmatprep.subr.bf16.mxu0 %v8101_v13  ;;  %6491 = vmatprep.subr.bf16.mxu1 %v8103_v57  ;;  %v8119_v15 = vcombine.high %v3230_v22, %v3234_v25  ;;  %v8118_v39 = vcombine.low %v3230_v22, %v3234_v25  ;;  %v8142_v13 = vcombine.low %v3254_v0, %v3258_v1  ;;  %v3281_v24 = vld [vmem:[#allocation8 + $0x220] sm:$0xff]  ;;  %v3282_v22 = vld [vmem:[#allocation8 + $0x228] sm:$0xff] }
 0x212   :  { %v8149_v57 = vcombine.high %v3261_v7, %v3265_v8  ;;  %v8156_v25 = vcombine.low %v3269_v12, %v3273_v16  ;;  %v8164_v36 = vcombine.low %v3277_v34, %v3281_v24  ;;  %v3313_v62 = vld [vmem:[#allocation8 + $0x320] sm:$0xff]  ;;  %v3314_v0 = vld [vmem:[#allocation8 + $0x328] sm:$0xff] }
 0x21a   :  { %8098 = vmatmul.mubr.msk.bf16.vlgmr.msra.gmra.mrb[4].mxu0 %vm2537_vm0, %v8961_v26  ;;  %8099 = vmatmul.mubr.msk.bf16.vlgmr.msra.gmra.mrb[4].mxu1 %vm2537_vm0, %v8961_v26  ;;  %v3278_v26 = vld [vmem:[#allocation8 + $0x208] sm:$0xff] }
 0x21b   :  { %6328 = vmatpush1.bf16.msra.mxu0 %v8100_v19  ;;  %6492 = vmatpush1.bf16.msra.mxu1 %v8102_v21  ;;  %v8148_v19 = vcombine.low %v3261_v7, %v3265_v8  ;;  %v8150_v21 = vcombine.low %v3262_v9, %v3266_v10  ;;  %v3321_v7 = vld [vmem:[#allocation8 + $0x360] sm:$0xff]  ;;  %v3318_v8 = vld [vmem:[#allocation8 + $0x348] sm:$0xff] }
 0x21c   :  { %6329 = vmatprep.subr.bf16.mxu0 %v8109_v53  ;;  %6493 = vmatprep.subr.bf16.mxu1 %v8111_v23  ;;  %v8157_v53 = vcombine.high %v3269_v12, %v3273_v16  ;;  %v8159_v23 = vcombine.high %v3270_v17, %v3274_v18  ;;  %v3322_v9 = vld [vmem:[#allocation8 + $0x368] sm:$0xff]  ;;  %v3325_v12 = vld [vmem:[#allocation8 + $0x380] sm:$0xff] }
 0x21d   :  { %v3329_v16 = vld [vmem:[#allocation8 + $0x3a0] sm:$0xff] }
 0x21f   :  { %6330 = vmatpush1.bf16.msra.mxu0 %v8108_v27  ;;  %6494 = vmatpush1.bf16.msra.mxu1 %v8110_v29  ;;  %v8158_v27 = vcombine.low %v3270_v17, %v3274_v18  ;;  %v8165_v29 = vcombine.high %v3277_v34, %v3281_v24  ;;  %v527_v17 = vsub.s32 3, %v9346_v20  ;;  %v3326_v18 = vld [vmem:[#allocation8 + $0x388] sm:$0xff]  ;;  %v8213_v34 = vcombine.high %v3325_v12, %v3329_v16 }
 0x220   :  { %6331 = vmatprep.subr.bf16.mxu0 %v8117_v30  ;;  %6495 = vmatprep.subr.bf16.mxu1 %v8119_v15  ;;  %v8167_v30 = vcombine.high %v3278_v26, %v3282_v22  ;;  %v3285_v15 = vld [vmem:[#allocation8 + $0x240] sm:$0xff] }
 0x221   :  { %v9356_v41 = vpop.f32.mrb[0].mxu0  ;;  %v9358_v45 = vpop.f32.mrb[0].mxu1 }
 0x222   :  { %v2700_v46 = vpop.f32.mrb[1].mxu0  ;;  %v9360_v50 = vpop.f32.mrb[1].mxu1 }
 0x223   :  { %6332 = vmatpush1.bf16.msra.mxu0 %v8116_v37  ;;  %v8766_v49 = vadd.f32 %v2700_v46, %v520_v38  ;;  %v2702_v51 = vpop.f32.mrb[2].mxu0  ;;  %6496 = vmatpush1.bf16.msra.mxu1 %v8118_v39  ;;  %v2866_v54 = vpop.f32.mrb[2].mxu1  ;;  %v8166_v37 = vcombine.low %v3278_v26, %v3282_v22  ;;  %v8173_v38 = vcombine.high %v3285_v15, %v3289_v32  ;;  %v3333_v26 = vld [vmem:[#allocation8 + $0x3c0] sm:$0xff] }
 0x224   :  { %v2703_v55 = vpop.f32.mrb[3].mxu0  ;;  %6333 = vmatprep.subr.bf16.mxu0 %v8125_v40  ;;  %v2867_v60 = vpop.f32.mrb[3].mxu1  ;;  %6497 = vmatprep.subr.bf16.mxu1 %v8127_v42  ;;  %v8175_v39 = vcombine.high %v3286_v33, %v3290_v35  ;;  %v3293_v40 = vld [vmem:[#allocation8 + $0x280] sm:$0xff]  ;;  %v8172_v46 = vcombine.low %v3285_v15, %v3289_v32  ;;  %v3302_v54 = vld [vmem:[#allocation8 + $0x2c8] sm:$0xff] }
 0x225   :  { %v3198_v59 = vmax.f32 %v8766_v49, 0.0  ;;  %v3297_v42 = vld [vmem:[#allocation8 + $0x2a0] sm:$0xff]  ;;  %v8183_v49 = vcombine.high %v3294_v43, %v3298_v44  ;;  %v3306_v55 = vld [vmem:[#allocation8 + $0x2e8] sm:$0xff] }
 0x226   :  { %v8181_v48 = vcombine.high %v3293_v40, %v3297_v42  ;;  %v3301_v51 = vld [vmem:[#allocation8 + $0x2c0] sm:$0xff]  ;;  %v8191_v60 = vcombine.high %v3302_v54, %v3306_v55 }
 0x227   :  { %v9362_v2 = vpack.c.bf16 %v3198_v59, %v3198_v59  ;;  %6334 = vmatpush1.bf16.msra.mxu0 %v8124_v52  ;;  %6498 = vmatpush1.bf16.msra.mxu1 %v8126_v56  ;;  %v3305_v52 = vld [vmem:[#allocation8 + $0x2e0] sm:$0xff]  ;;  %v8180_v56 = vcombine.low %v3293_v40, %v3297_v42  ;;  %v3346_v40 = vld [vmem:[#allocation8 + $0x428] sm:$0xff] }
 0x228   :  { %6335 = vmatprep.subr.bf16.mxu0 %v8133_v58  ;;  %6499 = vmatprep.subr.bf16.mxu1 %v8135_v61  ;;  %v8182_v58 = vcombine.low %v3294_v43, %v3298_v44  ;;  %v8189_v59 = vcombine.high %v3301_v51, %v3305_v52  ;;  %v3309_v61 = vld [vmem:[#allocation8 + $0x300] sm:$0xff]  ;;  %v8188_v1 = vcombine.low %v3301_v51, %v3305_v52  ;;  %v3350_v52 = vld [vmem:[#allocation8 + $0x448] sm:$0xff] }
 0x229   :  { %6359 = vmatprep.mubr.bf16.mxu0 %v9362_v2  ;;  %6523 = vmatprep.mubr.bf16.mxu1 %v9362_v2  ;;  %v8196_v10 = vcombine.low %v3309_v61, %v3313_v62  ;;  %v3337_v22 = vld [vmem:[#allocation8 + $0x3e0] sm:$0xff] }
 0x22a   :  { %v8221_v33 = vcombine.high %v3333_v26, %v3337_v22  ;;  %v8220_v42 = vcombine.low %v3333_v26, %v3337_v22  ;;  %v3382_v26 = vld [vmem:[#allocation8 + $0x548] sm:$0xff] }
 0x22b   :  { %6336 = vmatpush1.bf16.msra.mxu0 %v8132_v3  ;;  %6500 = vmatpush1.bf16.msra.mxu1 %v8134_v4  ;;  %v8190_v3 = vcombine.low %v3302_v54, %v3306_v55  ;;  %v8197_v4 = vcombine.high %v3309_v61, %v3313_v62  ;;  %v3354_v54 = vld [vmem:[#allocation8 + $0x468] sm:$0xff] }
 0x22c   :  { %6337 = vmatprep.subr.bf16.mxu0 %v8141_v5  ;;  %6501 = vmatprep.subr.bf16.mxu1 %v8143_v6  ;;  %v8199_v5 = vcombine.high %v3310_v63, %v3314_v0  ;;  %v3317_v6 = vld [vmem:[#allocation8 + $0x340] sm:$0xff]  ;;  %v8239_v61 = vcombine.high %v3350_v52, %v3354_v54  ;;  %v3358_v62 = vld [vmem:[#allocation8 + $0x488] sm:$0xff] }
 0x22d   :  { %v3386_v22 = vld [vmem:[#allocation8 + $0x568] sm:$0xff] }
 0x22f   :  { %6338 = vmatpush1.bf16.msra.mxu0 %v8140_v11  ;;  %6502 = vmatpush1.bf16.msra.mxu1 %v8142_v13  ;;  %v515_v11 = vsub.s32 0, %v9346_v20  ;;  %v8198_v13 = vcombine.low %v3310_v63, %v3314_v0  ;;  %v3362_v63 = vld [vmem:[#allocation8 + $0x4a8] sm:$0xff] }
 0x230   :  { %6339 = vmatprep.subr.bf16.mxu0 %v8149_v57  ;;  %6503 = vmatprep.subr.bf16.mxu1 %v8151_v14  ;;  %v8205_v57 = vcombine.high %v3317_v6, %v3321_v7  ;;  %v8207_v14 = vcombine.high %v3318_v8, %v3322_v9 }
 0x233   :  { %6340 = vmatpush1.bf16.msra.mxu0 %v8148_v19  ;;  %6504 = vmatpush1.bf16.msra.mxu1 %v8150_v21  ;;  %v3330_v19 = vld [vmem:[#allocation8 + $0x3a8] sm:$0xff]  ;;  %v8204_v21 = vcombine.low %v3317_v6, %v3321_v7  ;;  %v3369_v6 = vld [vmem:[#allocation8 + $0x4e0] sm:$0xff] }
 0x234   :  { %6341 = vmatprep.subr.bf16.mxu0 %v8157_v53  ;;  %6505 = vmatprep.subr.bf16.mxu1 %v8159_v23  ;;  %v516_v53 = vrot.slane %v9351_v31, %v515_v11  ;;  %v8206_v23 = vcombine.low %v3318_v8, %v3322_v9  ;;  %v8215_v24 = vcombine.high %v3326_v18, %v3330_v19  ;;  %v3366_v7 = vld [vmem:[#allocation8 + $0x4c8] sm:$0xff] }
 0x235   :  { %v8214_v32 = vcombine.low %v3326_v18, %v3330_v19  ;;  %v3370_v8 = vld [vmem:[#allocation8 + $0x4e8] sm:$0xff] }
 0x236   :  { %v8765_v15 = vadd.f32 %v9356_v41, %v516_v53  ;;  %v3378_v18 = vld [vmem:[#allocation8 + $0x528] sm:$0xff] }
 0x237   :  { %6342 = vmatpush1.bf16.msra.mxu0 %v8156_v25  ;;  %6506 = vmatpush1.bf16.msra.mxu1 %v8158_v27  ;;  %v528_v25 = vrot.slane %v9351_v31, %v527_v17  ;;  %v3334_v27 = vld [vmem:[#allocation8 + $0x3c8] sm:$0xff] }
 0x238   :  { %6343 = vmatprep.subr.bf16.mxu0 %v8165_v29  ;;  %6507 = vmatprep.subr.bf16.mxu1 %v8167_v30  ;;  %v3338_v29 = vld [vmem:[#allocation8 + $0x3e8] sm:$0xff]  ;;  %v8212_v30 = vcombine.low %v3325_v12, %v3329_v16  ;;  %v3197_v43 = vmax.f32 %v8765_v15, 0.0  ;;  %v3377_v12 = vld [vmem:[#allocation8 + $0x520] sm:$0xff] }
 0x239   :  { %v8223_v35 = vcombine.high %v3334_v27, %v3338_v29  ;;  %v8222_v44 = vcombine.low %v3334_v27, %v3338_v29  ;;  %v3374_v16 = vld [vmem:[#allocation8 + $0x508] sm:$0xff]  ;;  %v3389_v15 = vld [vmem:[#allocation8 + $0x580] sm:$0xff] }
 0x23a   :  { %v9376_v55 = vpack.c.bf16 %v3197_v43, %v3197_v43  ;;  %v8262_v27 = vcombine.low %v3374_v16, %v3378_v18  ;;  %v3398_v43 = vld [vmem:[#allocation8 + $0x5c8] sm:$0xff] }
 0x23b   :  { %6344 = vmatpush1.bf16.msra.mxu0 %v8164_v36  ;;  %6508 = vmatpush1.bf16.msra.mxu1 %v8166_v37  ;;  %v3341_v36 = vld [vmem:[#allocation8 + $0x400] sm:$0xff] }
 0x23c   :  { %6345 = vmatprep.subr.bf16.mxu0 %v8173_v38  ;;  %6509 = vmatprep.subr.bf16.mxu1 %v8175_v39  ;;  %v3345_v37 = vld [vmem:[#allocation8 + $0x420] sm:$0xff]  ;;  %v8768_v38 = vadd.f32 %v9360_v50, %v528_v25  ;;  %v3342_v39 = vld [vmem:[#allocation8 + $0x408] sm:$0xff] }
 0x23d   :  { %v8231_v41 = vcombine.high %v3342_v39, %v3346_v40  ;;  %v8228_v51 = vcombine.low %v3341_v36, %v3345_v37  ;;  %v8230_v50 = vcombine.low %v3342_v39, %v3346_v40  ;;  %v3397_v40 = vld [vmem:[#allocation8 + $0x5c0] sm:$0xff] }
 0x23f   :  { %6346 = vmatpush1.bf16.msra.mxu0 %v8172_v46  ;;  %6510 = vmatpush1.bf16.msra.mxu1 %v8174_v47  ;;  %v8229_v46 = vcombine.high %v3341_v36, %v3345_v37  ;;  %v3200_v47 = vmax.f32 %v8768_v38, 0.0  ;;  %v8270_v37 = vcombine.low %v3382_v26, %v3386_v22 }
 0x240   :  { %6347 = vmatprep.subr.bf16.mxu0 %v8181_v48  ;;  %6511 = vmatprep.subr.bf16.mxu1 %v8183_v49  ;;  %v3349_v48 = vld [vmem:[#allocation8 + $0x440] sm:$0xff] }
 0x241   :  { %v3353_v49 = vld [vmem:[#allocation8 + $0x460] sm:$0xff] }
 0x242   :  { %v8236_v0 = vcombine.low %v3349_v48, %v3353_v49 }
 0x243   :  { %6348 = vmatpush1.bf16.msra.mxu0 %v8180_v56  ;;  %6512 = vmatpush1.bf16.msra.mxu1 %v8182_v58  ;;  %v8237_v56 = vcombine.high %v3349_v48, %v3353_v49  ;;  %v3357_v58 = vld [vmem:[#allocation8 + $0x480] sm:$0xff] }
 0x244   :  { %6349 = vmatprep.subr.bf16.mxu0 %v8189_v59  ;;  %6513 = vmatprep.subr.bf16.mxu1 %v8191_v60  ;;  %v3361_v59 = vld [vmem:[#allocation8 + $0x4a0] sm:$0xff]  ;;  %v9378_v60 = vpack.c.bf16 %v3200_v47, %v3200_v47 }
 0x245   :  { %v8244_v9 = vcombine.low %v3357_v58, %v3361_v59  ;;  %v3405_v49 = vld [vmem:[#allocation8 + $0x600] sm:$0xff] }
 0x247   :  { %6350 = vmatpush1.bf16.msra.mxu0 %v8188_v1  ;;  %6514 = vmatpush1.bf16.msra.mxu1 %v8190_v3  ;;  %v8238_v1 = vcombine.low %v3350_v52, %v3354_v54  ;;  %v8245_v3 = vcombine.high %v3357_v58, %v3361_v59  ;;  %v3406_v52 = vld [vmem:[#allocation8 + $0x608] sm:$0xff] }
 0x248   :  { %6351 = vmatprep.subr.bf16.mxu0 %v8197_v4  ;;  %6515 = vmatprep.subr.bf16.mxu1 %v8199_v5  ;;  %v8247_v4 = vcombine.high %v3358_v62, %v3362_v63  ;;  %v3365_v5 = vld [vmem:[#allocation8 + $0x4c0] sm:$0xff]  ;;  %v3410_v54 = vld [vmem:[#allocation8 + $0x628] sm:$0xff] }
 0x249   :  { %v8252_v19 = vcombine.low %v3365_v5, %v3369_v6  ;;  %v8295_v59 = vcombine.high %v3406_v52, %v3410_v54 }
 0x24b   :  { %6352 = vmatpush1.bf16.msra.mxu0 %v8196_v10  ;;  %6516 = vmatpush1.bf16.msra.mxu1 %v8198_v13  ;;  %v8246_v10 = vcombine.low %v3358_v62, %v3362_v63  ;;  %v8253_v13 = vcombine.high %v3365_v5, %v3369_v6  ;;  %v3417_v62 = vld [vmem:[#allocation8 + $0x660] sm:$0xff]  ;;  %v3414_v63 = vld [vmem:[#allocation8 + $0x648] sm:$0xff] }
 0x24c   :  { %6353 = vmatprep.subr.bf16.mxu0 %v8205_v57  ;;  %6517 = vmatprep.subr.bf16.mxu1 %v8207_v14  ;;  %v8255_v57 = vcombine.high %v3366_v7, %v3370_v8  ;;  %v3373_v14 = vld [vmem:[#allocation8 + $0x500] sm:$0xff] }
 0x24d   :  { %v8261_v53 = vcombine.high %v3373_v14, %v3377_v12  ;;  %v8260_v25 = vcombine.low %v3373_v14, %v3377_v12  ;;  %v3421_v6 = vld [vmem:[#allocation8 + $0x680] sm:$0xff] }
 0x24e   :  { %v3429_v12 = vld [vmem:[#allocation8 + $0x6c0] sm:$0xff] }
 0x24f   :  { %6354 = vmatpush1.bf16.msra.mxu0 %v8204_v21  ;;  %6518 = vmatpush1.bf16.msra.mxu1 %v8206_v23  ;;  %v8254_v21 = vcombine.low %v3366_v7, %v3370_v8  ;;  %v8263_v23 = vcombine.high %v3374_v16, %v3378_v18  ;;  %v3425_v7 = vld [vmem:[#allocation8 + $0x6a0] sm:$0xff]  ;;  %v3422_v8 = vld [vmem:[#allocation8 + $0x688] sm:$0xff] }
 0x250   :  { %6355 = vmatprep.subr.bf16.mxu0 %v8213_v34  ;;  %6519 = vmatprep.subr.bf16.mxu1 %v8215_v24  ;;  %v3381_v34 = vld [vmem:[#allocation8 + $0x540] sm:$0xff]  ;;  %v3430_v18 = vld [vmem:[#allocation8 + $0x6c8] sm:$0xff] }
 0x251   :  { %v3385_v24 = vld [vmem:[#allocation8 + $0x560] sm:$0xff] }
 0x252   :  { %v8269_v29 = vcombine.high %v3381_v34, %v3385_v24  ;;  %v8268_v36 = vcombine.low %v3381_v34, %v3385_v24  ;;  %v3433_v16 = vld [vmem:[#allocation8 + $0x6e0] sm:$0xff] }
 0x253   :  { %6356 = vmatpush1.bf16.msra.mxu0 %v8212_v30  ;;  %6520 = vmatpush1.bf16.msra.mxu1 %v8214_v32  ;;  %v8271_v30 = vcombine.high %v3382_v26, %v3386_v22  ;;  %v3393_v32 = vld [vmem:[#allocation8 + $0x5a0] sm:$0xff]  ;;  %v3438_v22 = vld [vmem:[#allocation8 + $0x708] sm:$0xff] }
 0x254   :  { %6357 = vmatprep.subr.bf16.mxu0 %v8221_v33  ;;  %6521 = vmatprep.subr.bf16.mxu1 %v8223_v35  ;;  %v3390_v33 = vld [vmem:[#allocation8 + $0x588] sm:$0xff]  ;;  %v8277_v38 = vcombine.high %v3389_v15, %v3393_v32  ;;  %v3437_v24 = vld [vmem:[#allocation8 + $0x700] sm:$0xff] }
 0x255   :  { %v3394_v35 = vld [vmem:[#allocation8 + $0x5a8] sm:$0xff]  ;;  %v3441_v26 = vld [vmem:[#allocation8 + $0x720] sm:$0xff] }
 0x256   :  { %v8279_v39 = vcombine.high %v3390_v33, %v3394_v35 }
 0x257   :  { %6358 = vmatpush1.bf16.msra.mxu0 %v8220_v42  ;;  %6522 = vmatpush1.bf16.msra.mxu1 %v8222_v44  ;;  %v3401_v42 = vld [vmem:[#allocation8 + $0x5e0] sm:$0xff]  ;;  %v3402_v44 = vld [vmem:[#allocation8 + $0x5e8] sm:$0xff] }
 0x258   :  { %6368 = vmatprep.subr.bf16.mxu0 %v8229_v46  ;;  %6532 = vmatprep.subr.bf16.mxu1 %v8231_v41  ;;  %v8276_v46 = vcombine.low %v3389_v15, %v3393_v32  ;;  %v8278_v41 = vcombine.low %v3390_v33, %v3394_v35  ;;  %v8285_v47 = vcombine.high %v3397_v40, %v3401_v42  ;;  %v3445_v32 = vld [vmem:[#allocation8 + $0x740] sm:$0xff]  ;;  %v3446_v35 = vld [vmem:[#allocation8 + $0x748] sm:$0xff] }
 0x259   :  { %v8287_v48 = vcombine.high %v3398_v43, %v3402_v44  ;;  %v3449_v33 = vld [vmem:[#allocation8 + $0x760] sm:$0xff] }
 0x25a   :  { %6360 = vmatmul.mubr.bf16.vlgmr.msra.gmra.mrb[8].mxu0 %v9376_v55  ;;  %6524 = vmatmul.mubr.bf16.vlgmr.msra.gmra.mrb[8].mxu1 %v9376_v55 }
 0x25b   :  { %6369 = vmatpush1.bf16.msra.mxu0 %v8228_v51  ;;  %6400 = vmatprep.mubr.bf16.mxu0 %v9378_v60  ;;  %v3409_v51 = vld [vmem:[#allocation8 + $0x620] sm:$0xff] }
 0x25c   :  { %6533 = vmatpush1.bf16.msra.mxu1 %v8230_v50  ;;  %6564 = vmatprep.mubr.bf16.mxu1 %v9378_v60  ;;  %v8284_v50 = vcombine.low %v3397_v40, %v3401_v42  ;;  %v8293_v58 = vcombine.high %v3405_v49, %v3409_v51  ;;  %v8333_v40 = vcombine.high %v3445_v32, %v3449_v33 }
 0x25d   :  { %6370 = vmatprep.subr.bf16.mxu0 %v8237_v56  ;;  %6534 = vmatprep.subr.bf16.mxu1 %v8239_v61  ;;  %v8286_v56 = vcombine.low %v3398_v43, %v3402_v44  ;;  %v3413_v61 = vld [vmem:[#allocation8 + $0x640] sm:$0xff] }
 0x25e   :  { %v3453_v43 = vld [vmem:[#allocation8 + $0x780] sm:$0xff] }
 0x25f   :  { %6371 = vmatpush1.bf16.msra.mxu0 %v8236_v0  ;;  %v3418_v0 = vld [vmem:[#allocation8 + $0x668] sm:$0xff]  ;;  %v3457_v44 = vld [vmem:[#allocation8 + $0x7a0] sm:$0xff] }
 0x260   :  { %6535 = vmatpush1.bf16.msra.mxu1 %v8238_v1  ;;  %6372 = vmatprep.subr.bf16.mxu0 %v8245_v3  ;;  %v8292_v1 = vcombine.low %v3405_v49, %v3409_v51  ;;  %v8294_v3 = vcombine.low %v3406_v52, %v3410_v54  ;;  %v8303_v5 = vcombine.high %v3414_v63, %v3418_v0  ;;  %v3461_v54 = vld [vmem:[#allocation8 + $0x7c0] sm:$0xff] }
 0x261   :  { %6536 = vmatprep.subr.bf16.mxu1 %v8247_v4  ;;  %v8301_v4 = vcombine.high %v3413_v61, %v3417_v62  ;;  %v8341_v51 = vcombine.high %v3453_v43, %v3457_v44 }
 0x263   :  { %6373 = vmatpush1.bf16.msra.mxu0 %v8244_v9  ;;  %v3426_v9 = vld [vmem:[#allocation8 + $0x6a8] sm:$0xff] }
 0x264   :  { %6537 = vmatpush1.bf16.msra.mxu1 %v8246_v10  ;;  %6374 = vmatprep.subr.bf16.mxu0 %v8253_v13  ;;  %v8300_v10 = vcombine.low %v3413_v61, %v3417_v62  ;;  %v8302_v13 = vcombine.low %v3414_v63, %v3418_v0  ;;  %v8311_v14 = vcombine.high %v3422_v8, %v3426_v9  ;;  %v3469_v0 = vld [vmem:[#allocation8 + $0x800] sm:$0xff] }
 0x265   :  { %6538 = vmatprep.subr.bf16.mxu1 %v8255_v57  ;;  %v8309_v57 = vcombine.high %v3421_v6, %v3425_v7 }
 0x267   :  { %6375 = vmatpush1.bf16.msra.mxu0 %v8252_v19  ;;  %v3434_v19 = vld [vmem:[#allocation8 + $0x6e8] sm:$0xff] }
 0x268   :  { %6539 = vmatpush1.bf16.msra.mxu1 %v8254_v21  ;;  %6376 = vmatprep.subr.bf16.mxu0 %v8261_v53  ;;  %v8308_v21 = vcombine.low %v3421_v6, %v3425_v7  ;;  %v8310_v53 = vcombine.low %v3422_v8, %v3426_v9  ;;  %v8319_v34 = vcombine.high %v3430_v18, %v3434_v19 }
 0x269   :  { %6540 = vmatprep.subr.bf16.mxu1 %v8263_v23  ;;  %v8317_v23 = vcombine.high %v3429_v12, %v3433_v16 }
 0x26b   :  { %6377 = vmatpush1.bf16.msra.mxu0 %v8260_v25  ;;  %v3442_v25 = vld [vmem:[#allocation8 + $0x728] sm:$0xff] }
 0x26c   :  { %6541 = vmatpush1.bf16.msra.mxu1 %v8262_v27  ;;  %6378 = vmatprep.subr.bf16.mxu0 %v8269_v29  ;;  %v8316_v27 = vcombine.low %v3429_v12, %v3433_v16  ;;  %v8318_v29 = vcombine.low %v3430_v18, %v3434_v19  ;;  %v8327_v15 = vcombine.high %v3438_v22, %v3442_v25 }
 0x26d   :  { %6542 = vmatprep.subr.bf16.mxu1 %v8271_v30  ;;  %v8325_v30 = vcombine.high %v3437_v24, %v3441_v26 }
 0x26f   :  { %6379 = vmatpush1.bf16.msra.mxu0 %v8268_v36  ;;  %v3450_v36 = vld [vmem:[#allocation8 + $0x768] sm:$0xff] }
 0x270   :  { %6543 = vmatpush1.bf16.msra.mxu1 %v8270_v37  ;;  %6380 = vmatprep.subr.bf16.mxu0 %v8277_v38  ;;  %v8324_v37 = vcombine.low %v3437_v24, %v3441_v26  ;;  %v523_v38 = vsub.s32 2, %v9346_v20  ;;  %v8335_v42 = vcombine.high %v3446_v35, %v3450_v36  ;;  %v8334_v49 = vcombine.low %v3446_v35, %v3450_v36 }
 0x271   :  { %6544 = vmatprep.subr.bf16.mxu1 %v8279_v39  ;;  %v8326_v39 = vcombine.low %v3438_v22, %v3442_v25 }
 0x273   :  { %6381 = vmatpush1.bf16.msra.mxu0 %v8276_v46  ;;  %v3454_v46 = vld [vmem:[#allocation8 + $0x788] sm:$0xff] }
 0x274   :  { %6545 = vmatpush1.bf16.msra.mxu1 %v8278_v41  ;;  %6382 = vmatprep.subr.bf16.mxu0 %v8285_v47  ;;  %v3458_v41 = vld [vmem:[#allocation8 + $0x7a8] sm:$0xff]  ;;  %v8332_v47 = vcombine.low %v3445_v32, %v3449_v33 }
 0x275   :  { %6546 = vmatprep.subr.bf16.mxu1 %v8287_v48  ;;  %v524_v48 = vrot.slane %v9351_v31, %v523_v38  ;;  %v8343_v52 = vcombine.high %v3454_v46, %v3458_v41  ;;  %v8342_v62 = vcombine.low %v3454_v46, %v3458_v41 }
 0x277   :  { %6383 = vmatpush1.bf16.msra.mxu0 %v8284_v50  ;;  %v3465_v50 = vld [vmem:[#allocation8 + $0x7e0] sm:$0xff]  ;;  %v8767_v61 = vadd.f32 %v9358_v45, %v524_v48 }
 0x278   :  { %6547 = vmatpush1.bf16.msra.mxu1 %v8286_v56  ;;  %6384 = vmatprep.subr.bf16.mxu0 %v8293_v58  ;;  %v3462_v56 = vld [vmem:[#allocation8 + $0x7c8] sm:$0xff]  ;;  %v8349_v63 = vcombine.high %v3461_v54, %v3465_v50  ;;  %v3477_v45 = vld [vmem:[#allocation8 + $0x840] sm:$0xff] }
 0x279   :  { %6548 = vmatprep.subr.bf16.mxu1 %v8295_v59  ;;  %v3466_v58 = vld [vmem:[#allocation8 + $0x7e8] sm:$0xff]  ;;  %v8340_v59 = vcombine.low %v3453_v43, %v3457_v44  ;;  %v3199_v6 = vmax.f32 %v8767_v61, 0.0  ;;  %v3513_v48 = vld [vmem:[#allocation8 + $0x960] sm:$0xff] }
 0x27a   :  { %v8351_v31 = vcombine.high %v3462_v56, %v3466_v58  ;;  %v8350_v7 = vcombine.low %v3462_v56, %v3466_v58  ;;  %v3517_v58 = vld [vmem:[#allocation8 + $0x980] sm:$0xff]  ;;  %v3518_v61 = vld [vmem:[#allocation8 + $0x988] sm:$0xff] }
 0x27b   :  { %6385 = vmatpush1.bf16.msra.mxu0 %v8292_v1  ;;  %v3473_v1 = vld [vmem:[#allocation8 + $0x820] sm:$0xff]  ;;  %v9389_v12 = vpack.c.bf16 %v3199_v6, %v3199_v6  ;;  %v3530_v6 = vld [vmem:[#allocation8 + $0x9e8] sm:$0xff] }
 0x27c   :  { %6549 = vmatpush1.bf16.msra.mxu1 %v8294_v3  ;;  %6386 = vmatprep.subr.bf16.mxu0 %v8301_v4  ;;  %v3470_v3 = vld [vmem:[#allocation8 + $0x808] sm:$0xff]  ;;  %v8357_v8 = vcombine.high %v3469_v0, %v3473_v1 }
 0x27d   :  { %6550 = vmatprep.subr.bf16.mxu1 %v8303_v5  ;;  %v3474_v4 = vld [vmem:[#allocation8 + $0x828] sm:$0xff]  ;;  %v8348_v5 = vcombine.low %v3461_v54, %v3465_v50 }
 0x27e   :  { %v8359_v9 = vcombine.high %v3470_v3, %v3474_v4  ;;  %v8358_v16 = vcombine.low %v3470_v3, %v3474_v4  ;;  %v3525_v3 = vld [vmem:[#allocation8 + $0x9c0] sm:$0xff] }
 0x27f   :  { %6387 = vmatpush1.bf16.msra.mxu0 %v8300_v10  ;;  %v3481_v10 = vld [vmem:[#allocation8 + $0x860] sm:$0xff] }
 0x280   :  { %6551 = vmatpush1.bf16.msra.mxu1 %v8302_v13  ;;  %6388 = vmatprep.subr.bf16.mxu0 %v8309_v57  ;;  %v3478_v13 = vld [vmem:[#allocation8 + $0x848] sm:$0xff]  ;;  %v8365_v18 = vcombine.high %v3477_v45, %v3481_v10  ;;  %v8364_v24 = vcombine.low %v3477_v45, %v3481_v10  ;;  %v3529_v4 = vld [vmem:[#allocation8 + $0x9e0] sm:$0xff] }
 0x281   :  { %6552 = vmatprep.subr.bf16.mxu1 %v8311_v14  ;;  %v3482_v57 = vld [vmem:[#allocation8 + $0x868] sm:$0xff]  ;;  %v8356_v14 = vcombine.low %v3469_v0, %v3473_v1  ;;  %v3533_v10 = vld [vmem:[#allocation8 + $0xa00] sm:$0xff] }
 0x282   :  { %v8367_v19 = vcombine.high %v3478_v13, %v3482_v57  ;;  %v8366_v26 = vcombine.low %v3478_v13, %v3482_v57  ;;  %v3537_v13 = vld [vmem:[#allocation8 + $0xa20] sm:$0xff]  ;;  %v3534_v57 = vld [vmem:[#allocation8 + $0xa08] sm:$0xff] }
 0x283   :  { %6389 = vmatpush1.bf16.msra.mxu0 %v8308_v21  ;;  %v3485_v21 = vld [vmem:[#allocation8 + $0x880] sm:$0xff] }
 0x284   :  { %6553 = vmatpush1.bf16.msra.mxu1 %v8310_v53  ;;  %6390 = vmatprep.subr.bf16.mxu0 %v8317_v23  ;;  %v3489_v53 = vld [vmem:[#allocation8 + $0x8a0] sm:$0xff]  ;;  %v3486_v23 = vld [vmem:[#allocation8 + $0x888] sm:$0xff] }
 0x285   :  { %6554 = vmatprep.subr.bf16.mxu1 %v8319_v34  ;;  %v3490_v34 = vld [vmem:[#allocation8 + $0x8a8] sm:$0xff]  ;;  %v8373_v22 = vcombine.high %v3485_v21, %v3489_v53  ;;  %v8372_v32 = vcombine.low %v3485_v21, %v3489_v53  ;;  %v3541_v53 = vld [vmem:[#allocation8 + $0xa40] sm:$0xff] }
 0x286   :  { %v8375_v25 = vcombine.high %v3486_v23, %v3490_v34  ;;  %v8374_v33 = vcombine.low %v3486_v23, %v3490_v34  ;;  %v3545_v23 = vld [vmem:[#allocation8 + $0xa60] sm:$0xff]  ;;  %v3542_v34 = vld [vmem:[#allocation8 + $0xa48] sm:$0xff] }
 0x287   :  { %6391 = vmatpush1.bf16.msra.mxu0 %v8316_v27  ;;  %v3493_v27 = vld [vmem:[#allocation8 + $0x8c0] sm:$0xff] }
 0x288   :  { %6555 = vmatpush1.bf16.msra.mxu1 %v8318_v29  ;;  %6392 = vmatprep.subr.bf16.mxu0 %v8325_v30  ;;  %v3497_v29 = vld [vmem:[#allocation8 + $0x8e0] sm:$0xff]  ;;  %v3494_v30 = vld [vmem:[#allocation8 + $0x8c8] sm:$0xff] }
 0x289   :  { %6556 = vmatprep.subr.bf16.mxu1 %v8327_v15  ;;  %v3498_v15 = vld [vmem:[#allocation8 + $0x8e8] sm:$0xff]  ;;  %v8381_v35 = vcombine.high %v3493_v27, %v3497_v29  ;;  %v8380_v43 = vcombine.low %v3493_v27, %v3497_v29  ;;  %v3549_v29 = vld [vmem:[#allocation8 + $0xa80] sm:$0xff] }
 0x28a   :  { %v8383_v36 = vcombine.high %v3494_v30, %v3498_v15  ;;  %v8382_v44 = vcombine.low %v3494_v30, %v3498_v15  ;;  %v3553_v30 = vld [vmem:[#allocation8 + $0xaa0] sm:$0xff]  ;;  %v3550_v15 = vld [vmem:[#allocation8 + $0xa88] sm:$0xff] }
 0x28b   :  { %6393 = vmatpush1.bf16.msra.mxu0 %v8324_v37  ;;  %v3501_v37 = vld [vmem:[#allocation8 + $0x900] sm:$0xff] }
 0x28c   :  { %6557 = vmatpush1.bf16.msra.mxu1 %v8326_v39  ;;  %6394 = vmatprep.subr.bf16.mxu0 %v8333_v40  ;;  %v3505_v39 = vld [vmem:[#allocation8 + $0x920] sm:$0xff]  ;;  %v3502_v40 = vld [vmem:[#allocation8 + $0x908] sm:$0xff] }
 0x28d   :  { %6558 = vmatprep.subr.bf16.mxu1 %v8335_v42  ;;  %v3506_v42 = vld [vmem:[#allocation8 + $0x928] sm:$0xff]  ;;  %v8389_v46 = vcombine.high %v3501_v37, %v3505_v39 }
 0x28e   :  { %v8391_v41 = vcombine.high %v3502_v40, %v3506_v42  ;;  %v8390_v54 = vcombine.low %v3502_v40, %v3506_v42  ;;  %v3561_v40 = vld [vmem:[#allocation8 + $0xae0] sm:$0xff]  ;;  %v3558_v42 = vld [vmem:[#allocation8 + $0xac8] sm:$0xff] }
 0x28f   :  { %6395 = vmatpush1.bf16.msra.mxu0 %v8332_v47  ;;  %v3509_v47 = vld [vmem:[#allocation8 + $0x940] sm:$0xff] }
 0x290   :  { %6559 = vmatpush1.bf16.msra.mxu1 %v8334_v49  ;;  %6396 = vmatprep.subr.bf16.mxu0 %v8341_v51  ;;  %v3510_v49 = vld [vmem:[#allocation8 + $0x948] sm:$0xff]  ;;  %v8397_v50 = vcombine.high %v3509_v47, %v3513_v48 }
 0x291   :  { %6560 = vmatprep.subr.bf16.mxu1 %v8343_v52  ;;  %v3514_v51 = vld [vmem:[#allocation8 + $0x968] sm:$0xff]  ;;  %v8388_v52 = vcombine.low %v3501_v37, %v3505_v39  ;;  %v3557_v39 = vld [vmem:[#allocation8 + $0xac0] sm:$0xff] }
 0x292   :  { %v8399_v56 = vcombine.high %v3510_v49, %v3514_v51 }
 0x293   :  { %6397 = vmatpush1.bf16.msra.mxu0 %v8340_v59  ;;  %v3521_v59 = vld [vmem:[#allocation8 + $0x9a0] sm:$0xff] }
 0x294   :  { %6561 = vmatpush1.bf16.msra.mxu1 %v8342_v62  ;;  %6398 = vmatprep.subr.bf16.mxu0 %v8349_v63  ;;  %v3522_v62 = vld [vmem:[#allocation8 + $0x9a8] sm:$0xff]  ;;  %v8396_v63 = vcombine.low %v3509_v47, %v3513_v48  ;;  %v8405_v0 = vcombine.high %v3517_v58, %v3521_v59  ;;  %v3565_v48 = vld [vmem:[#allocation8 + $0xb00] sm:$0xff] }
 0x295   :  { %6562 = vmatprep.subr.bf16.mxu1 %v8351_v31  ;;  %v8398_v31 = vcombine.low %v3510_v49, %v3514_v51  ;;  %v8407_v1 = vcombine.high %v3518_v61, %v3522_v62  ;;  %v3569_v49 = vld [vmem:[#allocation8 + $0xb20] sm:$0xff]  ;;  %v3566_v51 = vld [vmem:[#allocation8 + $0xb08] sm:$0xff] }
 0x297   :  { %6399 = vmatpush1.bf16.msra.mxu0 %v8348_v5  ;;  %v3526_v5 = vld [vmem:[#allocation8 + $0x9c8] sm:$0xff] }
 0x298   :  { %6563 = vmatpush1.bf16.msra.mxu1 %v8350_v7  ;;  %6409 = vmatprep.subr.bf16.mxu0 %v8357_v8  ;;  %v8404_v7 = vcombine.low %v3517_v58, %v3521_v59  ;;  %v8406_v8 = vcombine.low %v3518_v61, %v3522_v62  ;;  %v8415_v45 = vcombine.high %v3526_v5, %v3530_v6  ;;  %v3573_v59 = vld [vmem:[#allocation8 + $0xb40] sm:$0xff]  ;;  %v3574_v62 = vld [vmem:[#allocation8 + $0xb48] sm:$0xff] }
 0x299   :  { %6573 = vmatprep.subr.bf16.mxu1 %v8359_v9  ;;  %v8413_v9 = vcombine.high %v3525_v3, %v3529_v4  ;;  %v3577_v61 = vld [vmem:[#allocation8 + $0xb60] sm:$0xff] }
 0x29a   :  { %6401 = vmatmul.mubr.bf16.vlgmr.msra.gmra.mrb[8].mxu0 %v9389_v12 }
 0x29b   :  { %6565 = vmatmul.mubr.bf16.vlgmr.msra.gmra.mrb[8].mxu1 %v9389_v12  ;;  %6410 = vmatpush1.bf16.msra.mxu0 %v8356_v14  ;;  %v3538_v14 = vld [vmem:[#allocation8 + $0xa28] sm:$0xff] }
 0x29c   :  { %6574 = vmatpush1.bf16.msra.mxu1 %v8358_v16  ;;  %6411 = vmatprep.subr.bf16.mxu0 %v8365_v18  ;;  %v8412_v16 = vcombine.low %v3525_v3, %v3529_v4  ;;  %v8414_v18 = vcombine.low %v3526_v5, %v3530_v6  ;;  %v8423_v21 = vcombine.high %v3534_v57, %v3538_v14  ;;  %v3581_v4 = vld [vmem:[#allocation8 + $0xb80] sm:$0xff]  ;;  %v3582_v6 = vld [vmem:[#allocation8 + $0xb88] sm:$0xff] }
 0x29d   :  { %6575 = vmatprep.subr.bf16.mxu1 %v8367_v19  ;;  %v8421_v19 = vcombine.high %v3533_v10, %v3537_v13  ;;  %v3585_v5 = vld [vmem:[#allocation8 + $0xba0] sm:$0xff] }
 0x29f   :  { %6412 = vmatpush1.bf16.msra.mxu0 %v8364_v24  ;;  %v3546_v24 = vld [vmem:[#allocation8 + $0xa68] sm:$0xff] }
 0x2a0   :  { %6576 = vmatpush1.bf16.msra.mxu1 %v8366_v26  ;;  %6413 = vmatprep.subr.bf16.mxu0 %v8373_v22  ;;  %v8420_v26 = vcombine.low %v3533_v10, %v3537_v13  ;;  %v8422_v22 = vcombine.low %v3534_v57, %v3538_v14  ;;  %v8431_v27 = vcombine.high %v3542_v34, %v3546_v24  ;;  %v3589_v13 = vld [vmem:[#allocation8 + $0xbc0] sm:$0xff]  ;;  %v3590_v14 = vld [vmem:[#allocation8 + $0xbc8] sm:$0xff] }
 0x2a1   :  { %6577 = vmatprep.subr.bf16.mxu1 %v8375_v25  ;;  %v8429_v25 = vcombine.high %v3541_v53, %v3545_v23  ;;  %v3593_v57 = vld [vmem:[#allocation8 + $0xbe0] sm:$0xff] }
 0x2a3   :  { %6414 = vmatpush1.bf16.msra.mxu0 %v8372_v32  ;;  %v3554_v32 = vld [vmem:[#allocation8 + $0xaa8] sm:$0xff] }
 0x2a4   :  { %6578 = vmatpush1.bf16.msra.mxu1 %v8374_v33  ;;  %6415 = vmatprep.subr.bf16.mxu0 %v8381_v35  ;;  %v8428_v33 = vcombine.low %v3541_v53, %v3545_v23  ;;  %v8430_v35 = vcombine.low %v3542_v34, %v3546_v24  ;;  %v8439_v37 = vcombine.high %v3550_v15, %v3554_v32  ;;  %v3597_v23 = vld [vmem:[#allocation8 + $0xc00] sm:$0xff]  ;;  %v3598_v24 = vld [vmem:[#allocation8 + $0xc08] sm:$0xff] }
 0x2a5   :  { %6579 = vmatprep.subr.bf16.mxu1 %v8383_v36  ;;  %v8437_v36 = vcombine.high %v3549_v29, %v3553_v30  ;;  %v3601_v34 = vld [vmem:[#allocation8 + $0xc20] sm:$0xff] }
 0x2a7   :  { %6416 = vmatpush1.bf16.msra.mxu0 %v8380_v43  ;;  %v3562_v43 = vld [vmem:[#allocation8 + $0xae8] sm:$0xff] }
 0x2a8   :  { %6580 = vmatpush1.bf16.msra.mxu1 %v8382_v44  ;;  %6417 = vmatprep.subr.bf16.mxu0 %v8389_v46  ;;  %v8436_v44 = vcombine.low %v3549_v29, %v3553_v30  ;;  %v8438_v46 = vcombine.low %v3550_v15, %v3554_v32  ;;  %v8447_v47 = vcombine.high %v3558_v42, %v3562_v43  ;;  %v531_v30 = vsub.s32 4, %v9346_v20 }
 0x2a9   :  { %6581 = vmatprep.subr.bf16.mxu1 %v8391_v41  ;;  %v8445_v41 = vcombine.high %v3557_v39, %v3561_v40  ;;  %v535_v15 = vsub.s32 5, %v9346_v20  ;;  %v543_v32 = vsub.s32 7, %v9346_v20 }
 0x2ab   :  { %6418 = vmatpush1.bf16.msra.mxu0 %v8388_v52  ;;  %v3570_v52 = vld [vmem:[#allocation8 + $0xb28] sm:$0xff] }
 0x2ac   :  { %6582 = vmatpush1.bf16.msra.mxu1 %v8390_v54  ;;  %6419 = vmatprep.subr.bf16.mxu0 %v8397_v50  ;;  %v8444_v54 = vcombine.low %v3557_v39, %v3561_v40  ;;  %v8446_v50 = vcombine.low %v3558_v42, %v3562_v43  ;;  %v8455_v58 = vcombine.high %v3566_v51, %v3570_v52 }
 0x2ad   :  { %6583 = vmatprep.subr.bf16.mxu1 %v8399_v56  ;;  %v8453_v56 = vcombine.high %v3565_v48, %v3569_v49 }
 0x2af   :  { %6420 = vmatpush1.bf16.msra.mxu0 %v8396_v63  ;;  %v3578_v63 = vld [vmem:[#allocation8 + $0xb68] sm:$0xff] }
 0x2b0   :  { %6584 = vmatpush1.bf16.msra.mxu1 %v8398_v31  ;;  %6421 = vmatprep.subr.bf16.mxu0 %v8405_v0  ;;  %v8452_v31 = vcombine.low %v3565_v48, %v3569_v49  ;;  %v8454_v0 = vcombine.low %v3566_v51, %v3570_v52  ;;  %v8463_v3 = vcombine.high %v3574_v62, %v3578_v63 }
 0x2b1   :  { %6585 = vmatprep.subr.bf16.mxu1 %v8407_v1  ;;  %v8461_v1 = vcombine.high %v3573_v59, %v3577_v61 }
 0x2b3   :  { %6422 = vmatpush1.bf16.msra.mxu0 %v8404_v7  ;;  %v3586_v7 = vld [vmem:[#allocation8 + $0xba8] sm:$0xff] }
 0x2b4   :  { %6586 = vmatpush1.bf16.msra.mxu1 %v8406_v8  ;;  %6423 = vmatprep.subr.bf16.mxu0 %v8413_v9  ;;  %v8460_v8 = vcombine.low %v3573_v59, %v3577_v61  ;;  %v8462_v9 = vcombine.low %v3574_v62, %v3578_v63  ;;  %v8471_v10 = vcombine.high %v3582_v6, %v3586_v7  ;;  %v3606_v59 = vld [vmem:[#allocation8 + $0xc48] sm:$0xff] }
 0x2b5   :  { %6587 = vmatprep.subr.bf16.mxu1 %v8415_v45  ;;  %v8469_v45 = vcombine.high %v3581_v4, %v3585_v5  ;;  %v3610_v61 = vld [vmem:[#allocation8 + $0xc68] sm:$0xff]  ;;  %v8484_v63 = vcombine.low %v3597_v23, %v3601_v34 }
 0x2b7   :  { %6424 = vmatpush1.bf16.msra.mxu0 %v8412_v16  ;;  %v3594_v16 = vld [vmem:[#allocation8 + $0xbe8] sm:$0xff] }
 0x2b8   :  { %6588 = vmatpush1.bf16.msra.mxu1 %v8414_v18  ;;  %6425 = vmatprep.subr.bf16.mxu0 %v8421_v19  ;;  %v8468_v18 = vcombine.low %v3581_v4, %v3585_v5  ;;  %v8470_v19 = vcombine.low %v3582_v6, %v3586_v7  ;;  %v8479_v53 = vcombine.high %v3590_v14, %v3594_v16  ;;  %v3617_v5 = vld [vmem:[#allocation8 + $0xca0] sm:$0xff]  ;;  %v3614_v6 = vld [vmem:[#allocation8 + $0xc88] sm:$0xff] }
 0x2b9   :  { %6589 = vmatprep.subr.bf16.mxu1 %v8423_v21  ;;  %v8477_v21 = vcombine.high %v3589_v13, %v3593_v57  ;;  %v8495_v4 = vcombine.high %v3606_v59, %v3610_v61  ;;  %v3618_v7 = vld [vmem:[#allocation8 + $0xca8] sm:$0xff] }
 0x2bb   :  { %6426 = vmatpush1.bf16.msra.mxu0 %v8420_v26  ;;  %v3602_v26 = vld [vmem:[#allocation8 + $0xc28] sm:$0xff] }
 0x2bc   :  { %6590 = vmatpush1.bf16.msra.mxu1 %v8422_v22  ;;  %6427 = vmatprep.subr.bf16.mxu0 %v8429_v25  ;;  %v8476_v22 = vcombine.low %v3589_v13, %v3593_v57  ;;  %v8478_v25 = vcombine.low %v3590_v14, %v3594_v16  ;;  %v8487_v29 = vcombine.high %v3598_v24, %v3602_v26  ;;  %v3621_v57 = vld [vmem:[#allocation8 + $0xcc0] sm:$0xff]  ;;  %v3622_v16 = vld [vmem:[#allocation8 + $0xcc8] sm:$0xff] }
 0x2bd   :  { %6591 = vmatprep.subr.bf16.mxu1 %v8431_v27  ;;  %v8485_v27 = vcombine.high %v3597_v23, %v3601_v34  ;;  %v8503_v13 = vcombine.high %v3614_v6, %v3618_v7  ;;  %v3625_v14 = vld [vmem:[#allocation8 + $0xce0] sm:$0xff] }
 0x2be   :  { %v3629_v34 = vld [vmem:[#allocation8 + $0xd00] sm:$0xff] }
 0x2bf   :  { %6428 = vmatpush1.bf16.msra.mxu0 %v8428_v33  ;;  %v9396_v33 = vld [vmem:[#allocation7] sm:$0xff] }
 0x2c0   :  { %6592 = vmatpush1.bf16.msra.mxu1 %v8430_v35  ;;  %6429 = vmatprep.subr.bf16.mxu0 %v8437_v36  ;;  %v532_v35 = vrot.slane %v9396_v33, %v531_v30  ;;  %v536_v36 = vrot.slane %v9396_v33, %v535_v15 }
 0x2c1   :  { %6593 = vmatprep.subr.bf16.mxu1 %v8439_v37  ;;  %v544_v37 = vrot.slane %v9396_v33, %v543_v32 }
 0x2c3   :  { %6430 = vmatpush1.bf16.msra.mxu0 %v8436_v44 }
 0x2c4   :  { %6594 = vmatpush1.bf16.msra.mxu1 %v8438_v46  ;;  %6431 = vmatprep.subr.bf16.mxu0 %v8445_v41 }
 0x2c5   :  { %6595 = vmatprep.subr.bf16.mxu1 %v8447_v47 }
 0x2c7   :  { %6432 = vmatpush1.bf16.msra.mxu0 %v8444_v54 }
 0x2c8   :  { %6596 = vmatpush1.bf16.msra.mxu1 %v8446_v50  ;;  %6433 = vmatprep.subr.bf16.mxu0 %v8453_v56  ;;  %v3605_v50 = vld [vmem:[#allocation8 + $0xc40] sm:$0xff] }
 0x2c9   :  { %6597 = vmatprep.subr.bf16.mxu1 %v8455_v58  ;;  %v3609_v58 = vld [vmem:[#allocation8 + $0xc60] sm:$0xff] }
 0x2cb   :  { %6434 = vmatpush1.bf16.msra.mxu0 %v8452_v31  ;;  %v8486_v31 = vcombine.low %v3598_v24, %v3602_v26  ;;  %v3633_v24 = vld [vmem:[#allocation8 + $0xd20] sm:$0xff]  ;;  %v3630_v26 = vld [vmem:[#allocation8 + $0xd08] sm:$0xff] }
 0x2cc   :  { %6598 = vmatpush1.bf16.msra.mxu1 %v8454_v0  ;;  %6435 = vmatprep.subr.bf16.mxu0 %v8461_v1  ;;  %v3613_v1 = vld [vmem:[#allocation8 + $0xc80] sm:$0xff] }
 0x2cd   :  { %6599 = vmatprep.subr.bf16.mxu1 %v8463_v3  ;;  %v8493_v3 = vcombine.high %v3605_v50, %v3609_v58 }
 0x2cf   :  { %6436 = vmatpush1.bf16.msra.mxu0 %v8460_v8 }
 0x2d0   :  { %6600 = vmatpush1.bf16.msra.mxu1 %v8462_v9  ;;  %6437 = vmatprep.subr.bf16.mxu0 %v8469_v45  ;;  %v8492_v9 = vcombine.low %v3605_v50, %v3609_v58  ;;  %v8494_v45 = vcombine.low %v3606_v59, %v3610_v61  ;;  %v3653_v58 = vld [vmem:[#allocation8 + $0xdc0] sm:$0xff]  ;;  %v3654_v61 = vld [vmem:[#allocation8 + $0xdc8] sm:$0xff] }
 0x2d1   :  { %6601 = vmatprep.subr.bf16.mxu1 %v8471_v10  ;;  %v8501_v10 = vcombine.high %v3613_v1, %v3617_v5  ;;  %v3657_v59 = vld [vmem:[#allocation8 + $0xde0] sm:$0xff] }
 0x2d3   :  { %6438 = vmatpush1.bf16.msra.mxu0 %v8468_v18  ;;  %v3626_v18 = vld [vmem:[#allocation8 + $0xce8] sm:$0xff] }
 0x2d4   :  { %6602 = vmatpush1.bf16.msra.mxu1 %v8470_v19  ;;  %6439 = vmatprep.subr.bf16.mxu0 %v8477_v21  ;;  %v8500_v19 = vcombine.low %v3613_v1, %v3617_v5  ;;  %v8502_v21 = vcombine.low %v3614_v6, %v3618_v7  ;;  %v8511_v23 = vcombine.high %v3622_v16, %v3626_v18  ;;  %v3661_v5 = vld [vmem:[#allocation8 + $0xe00] sm:$0xff]  ;;  %v3662_v7 = vld [vmem:[#allocation8 + $0xe08] sm:$0xff] }
 0x2d5   :  { %6603 = vmatprep.subr.bf16.mxu1 %v8479_v53  ;;  %v8509_v53 = vcombine.high %v3621_v57, %v3625_v14  ;;  %v3665_v6 = vld [vmem:[#allocation8 + $0xe20] sm:$0xff] }
 0x2d7   :  { %6440 = vmatpush1.bf16.msra.mxu0 %v8476_v22  ;;  %v3634_v22 = vld [vmem:[#allocation8 + $0xd28] sm:$0xff] }
 0x2d8   :  { %6604 = vmatpush1.bf16.msra.mxu1 %v8478_v25  ;;  %6450 = vmatprep.subr.bf16.mxu0 %v8485_v27  ;;  %v8508_v25 = vcombine.low %v3621_v57, %v3625_v14  ;;  %v8510_v27 = vcombine.low %v3622_v16, %v3626_v18  ;;  %v3669_v14 = vld [vmem:[#allocation8 + $0xe40] sm:$0xff]  ;;  %v3670_v18 = vld [vmem:[#allocation8 + $0xe48] sm:$0xff] }
 0x2d9   :  { %6614 = vmatprep.subr.bf16.mxu1 %v8487_v29  ;;  %v8517_v29 = vcombine.high %v3629_v34, %v3633_v24  ;;  %v3673_v16 = vld [vmem:[#allocation8 + $0xe60] sm:$0xff] }
 0x2ed   :  { %v3026_v39 = vpop.f32.mrb[4].mxu0  ;;  %v9407_v42 = vpop.f32.mrb[4].mxu1 }
 0x2ee   :  { %v8769_v40 = vadd.f32 %v3026_v39, %v532_v35  ;;  %v3028_v43 = vpop.f32.mrb[5].mxu0  ;;  %v3192_v46 = vpop.f32.mrb[5].mxu1  ;;  %v8519_v35 = vcombine.high %v3630_v26, %v3634_v22  ;;  %v3638_v39 = vld [vmem:[#allocation8 + $0xd48] sm:$0xff] }
 0x2ef   :  { %v8770_v44 = vadd.f32 %v3028_v43, %v536_v36  ;;  %v3030_v41 = vpop.f32.mrb[6].mxu0  ;;  %v8772_v48 = vadd.f32 %v3192_v46, %v544_v37  ;;  %v3194_v49 = vpop.f32.mrb[6].mxu1  ;;  %v3637_v36 = vld [vmem:[#allocation8 + $0xd40] sm:$0xff]  ;;  %v8516_v43 = vcombine.low %v3629_v34, %v3633_v24 }
 0x2f0   :  { %v3201_v47 = vmax.f32 %v8769_v40, 0.0  ;;  %v3031_v51 = vpop.f32.mrb[7].mxu0  ;;  %v3195_v54 = vpop.f32.mrb[7].mxu1  ;;  %v3641_v37 = vld [vmem:[#allocation8 + $0xd60] sm:$0xff]  ;;  %v3642_v40 = vld [vmem:[#allocation8 + $0xd68] sm:$0xff] }
 0x2f1   :  { %v3202_v52 = vmax.f32 %v8770_v44, 0.0  ;;  %v3204_v56 = vmax.f32 %v8772_v48, 0.0  ;;  %v8518_v44 = vcombine.low %v3630_v26, %v3634_v22  ;;  %v8525_v46 = vcombine.high %v3637_v36, %v3641_v37  ;;  %v3649_v48 = vld [vmem:[#allocation8 + $0xda0] sm:$0xff]  ;;  %v3646_v49 = vld [vmem:[#allocation8 + $0xd88] sm:$0xff] }
 0x2f2   :  { %v9411_v0 = vpack.c.bf16 %v3201_v47, %v3201_v47  ;;  %v8527_v41 = vcombine.high %v3638_v39, %v3642_v40  ;;  %v3645_v47 = vld [vmem:[#allocation8 + $0xd80] sm:$0xff]  ;;  %v3650_v51 = vld [vmem:[#allocation8 + $0xda8] sm:$0xff]  ;;  %v8526_v54 = vcombine.low %v3638_v39, %v3642_v40 }
 0x2f3   :  { %v9409_v62 = vpack.c.bf16 %v3202_v52, %v3202_v52  ;;  %v9415_v8 = vpack.c.bf16 %v3204_v56, %v3204_v56  ;;  %v8524_v52 = vcombine.low %v3637_v36, %v3641_v37  ;;  %v8533_v50 = vcombine.high %v3645_v47, %v3649_v48  ;;  %v3677_v24 = vld [vmem:[#allocation8 + $0xe80] sm:$0xff]  ;;  %v3678_v22 = vld [vmem:[#allocation8 + $0xe88] sm:$0xff] }
 0x2f4   :  { %v8535_v56 = vcombine.high %v3646_v49, %v3650_v51  ;;  %v8534_v1 = vcombine.low %v3646_v49, %v3650_v51  ;;  %v3681_v26 = vld [vmem:[#allocation8 + $0xea0] sm:$0xff]  ;;  %v3686_v40 = vld [vmem:[#allocation8 + $0xec8] sm:$0xff] }
 0x2f5   :  { %6441 = vmatprep.mubr.bf16.mxu0 %v9409_v62  ;;  %6605 = vmatprep.mubr.bf16.mxu1 %v9409_v62  ;;  %v3685_v37 = vld [vmem:[#allocation8 + $0xec0] sm:$0xff]  ;;  %v3694_v51 = vld [vmem:[#allocation8 + $0xf08] sm:$0xff] }
 0x2f6   :  { %6442 = vmatmul.mubr.bf16.vlgmr.msra.gmra.mrb[8].mxu0 %v9411_v0  ;;  %6606 = vmatmul.mubr.bf16.vlgmr.msra.gmra.mrb[8].mxu1 %v9411_v0  ;;  %v3689_v39 = vld [vmem:[#allocation8 + $0xee0] sm:$0xff] }
 0x2f7   :  { %6451 = vmatpush1.bf16.msra.mxu0 %v8484_v63  ;;  %6615 = vmatpush1.bf16.msra.mxu1 %v8486_v31  ;;  %v3658_v63 = vld [vmem:[#allocation8 + $0xde8] sm:$0xff]  ;;  %v8532_v31 = vcombine.low %v3645_v47, %v3649_v48  ;;  %v3693_v48 = vld [vmem:[#allocation8 + $0xf00] sm:$0xff] }
 0x2f8   :  { %6482 = vmatprep.mubr.bf16.mxu0 %v9415_v8  ;;  %6646 = vmatprep.mubr.bf16.mxu1 %v9415_v8  ;;  %v3697_v49 = vld [vmem:[#allocation8 + $0xf20] sm:$0xff] }
 0x2f9   :  { %6452 = vmatprep.subr.bf16.mxu0 %v8493_v3  ;;  %6616 = vmatprep.subr.bf16.mxu1 %v8495_v4  ;;  %v8541_v3 = vcombine.high %v3653_v58, %v3657_v59  ;;  %v8543_v4 = vcombine.high %v3654_v61, %v3658_v63 }
 0x2fb   :  { %6453 = vmatpush1.bf16.msra.mxu0 %v8492_v9  ;;  %6617 = vmatpush1.bf16.msra.mxu1 %v8494_v45  ;;  %v3666_v9 = vld [vmem:[#allocation8 + $0xe28] sm:$0xff]  ;;  %v8540_v45 = vcombine.low %v3653_v58, %v3657_v59  ;;  %v3701_v59 = vld [vmem:[#allocation8 + $0xf40] sm:$0xff] }
 0x2fc   :  { %6454 = vmatprep.subr.bf16.mxu0 %v8501_v10  ;;  %6618 = vmatprep.subr.bf16.mxu1 %v8503_v13  ;;  %v8542_v10 = vcombine.low %v3654_v61, %v3658_v63  ;;  %v8549_v13 = vcombine.high %v3661_v5, %v3665_v6  ;;  %v8551_v57 = vcombine.high %v3662_v7, %v3666_v9  ;;  %v3705_v61 = vld [vmem:[#allocation8 + $0xf60] sm:$0xff]  ;;  %v3702_v63 = vld [vmem:[#allocation8 + $0xf48] sm:$0xff] }
 0x2ff   :  { %6455 = vmatpush1.bf16.msra.mxu0 %v8500_v19  ;;  %6619 = vmatpush1.bf16.msra.mxu1 %v8502_v21  ;;  %v3674_v19 = vld [vmem:[#allocation8 + $0xe68] sm:$0xff]  ;;  %v8548_v21 = vcombine.low %v3661_v5, %v3665_v6  ;;  %v8589_v5 = vcombine.high %v3701_v59, %v3705_v61 }
 0x300   :  { %6456 = vmatprep.subr.bf16.mxu0 %v8509_v53  ;;  %6620 = vmatprep.subr.bf16.mxu1 %v8511_v23  ;;  %v8550_v53 = vcombine.low %v3662_v7, %v3666_v9  ;;  %v8557_v23 = vcombine.high %v3669_v14, %v3673_v16  ;;  %v8559_v34 = vcombine.high %v3670_v18, %v3674_v19  ;;  %v3709_v7 = vld [vmem:[#allocation8 + $0xf80] sm:$0xff] }
 0x301   :  { %v3713_v9 = vld [vmem:[#allocation8 + $0xfa0] sm:$0xff] }
 0x303   :  { %6457 = vmatpush1.bf16.msra.mxu0 %v8508_v25  ;;  %6621 = vmatpush1.bf16.msra.mxu1 %v8510_v27  ;;  %v3682_v25 = vld [vmem:[#allocation8 + $0xea8] sm:$0xff]  ;;  %v8556_v27 = vcombine.low %v3669_v14, %v3673_v16  ;;  %v8597_v16 = vcombine.high %v3709_v7, %v3713_v9 }
 0x304   :  { %6458 = vmatprep.subr.bf16.mxu0 %v8517_v29  ;;  %6622 = vmatprep.subr.bf16.mxu1 %v8519_v35  ;;  %v8558_v29 = vcombine.low %v3670_v18, %v3674_v19  ;;  %v8565_v35 = vcombine.high %v3677_v24, %v3681_v26  ;;  %v8567_v36 = vcombine.high %v3678_v22, %v3682_v25  ;;  %v3717_v19 = vld [vmem:[#allocation8 + $0xfc0] sm:$0xff] }
 0x307   :  { %6459 = vmatpush1.bf16.msra.mxu0 %v8516_v43  ;;  %6623 = vmatpush1.bf16.msra.mxu1 %v8518_v44  ;;  %v3690_v43 = vld [vmem:[#allocation8 + $0xee8] sm:$0xff]  ;;  %v8564_v44 = vcombine.low %v3677_v24, %v3681_v26 }
 0x308   :  { %6460 = vmatprep.subr.bf16.mxu0 %v8525_v46  ;;  %6624 = vmatprep.subr.bf16.mxu1 %v8527_v41  ;;  %v8566_v46 = vcombine.low %v3678_v22, %v3682_v25  ;;  %v8573_v41 = vcombine.high %v3685_v37, %v3689_v39  ;;  %v8575_v47 = vcombine.high %v3686_v40, %v3690_v43 }
 0x30b   :  { %6461 = vmatpush1.bf16.msra.mxu0 %v8524_v52  ;;  %6625 = vmatpush1.bf16.msra.mxu1 %v8526_v54  ;;  %v3698_v52 = vld [vmem:[#allocation8 + $0xf28] sm:$0xff]  ;;  %v8572_v54 = vcombine.low %v3685_v37, %v3689_v39 }
 0x30c   :  { %6462 = vmatprep.subr.bf16.mxu0 %v8533_v50  ;;  %6626 = vmatprep.subr.bf16.mxu1 %v8535_v56  ;;  %v8574_v50 = vcombine.low %v3686_v40, %v3690_v43  ;;  %v8581_v56 = vcombine.high %v3693_v48, %v3697_v49  ;;  %v8583_v58 = vcombine.high %v3694_v51, %v3698_v52 }
 0x30f   :  { %6463 = vmatpush1.bf16.msra.mxu0 %v8532_v31  ;;  %6627 = vmatpush1.bf16.msra.mxu1 %v8534_v1  ;;  %v3706_v31 = vld [vmem:[#allocation8 + $0xf68] sm:$0xff]  ;;  %v8580_v1 = vcombine.low %v3693_v48, %v3697_v49 }
 0x310   :  { %6464 = vmatprep.subr.bf16.mxu0 %v8541_v3  ;;  %6628 = vmatprep.subr.bf16.mxu1 %v8543_v4  ;;  %v8582_v3 = vcombine.low %v3694_v51, %v3698_v52  ;;  %v539_v4 = vsub.s32 6, %v9346_v20  ;;  %v8591_v6 = vcombine.high %v3702_v63, %v3706_v31 }
 0x312   :  { %v540_v14 = vrot.slane %v9396_v33, %v539_v4  ;;  %v3219_v33 = vld [vmem:[#allocation8 + $0x30] sm:$0xff] }
 0x313   :  { %6465 = vmatpush1.bf16.msra.mxu0 %v8540_v45  ;;  %6629 = vmatpush1.bf16.msra.mxu1 %v8542_v10  ;;  %v3710_v45 = vld [vmem:[#allocation8 + $0xf88] sm:$0xff] }
 0x314   :  { %6466 = vmatprep.subr.bf16.mxu0 %v8549_v13  ;;  %6630 = vmatprep.subr.bf16.mxu1 %v8551_v57  ;;  %v3714_v10 = vld [vmem:[#allocation8 + $0xfa8] sm:$0xff]  ;;  %v8588_v13 = vcombine.low %v3701_v59, %v3705_v61  ;;  %v8590_v57 = vcombine.low %v3702_v63, %v3706_v31  ;;  %v8771_v26 = vadd.f32 %v9407_v42, %v540_v14  ;;  %v3224_v42 = vld [vmem:[#allocation8 + $0x58] sm:$0xff] }
 0x315   :  { %v8599_v18 = vcombine.high %v3710_v45, %v3714_v10  ;;  %v8598_v24 = vcombine.low %v3710_v45, %v3714_v10  ;;  %v3252_v14 = vld [vmem:[#allocation8 + $0x138] sm:$0xff] }
 0x316   :  { %v3203_v39 = vmax.f32 %v8771_v26, 0.0 }
 0x317   :  { %6467 = vmatpush1.bf16.msra.mxu0 %v8548_v21  ;;  %6631 = vmatpush1.bf16.msra.mxu1 %v8550_v53  ;;  %v3721_v21 = vld [vmem:[#allocation8 + $0xfe0] sm:$0xff]  ;;  %v3718_v53 = vld [vmem:[#allocation8 + $0xfc8] sm:$0xff] }
 0x318   :  { %6468 = vmatprep.subr.bf16.mxu0 %v8557_v23  ;;  %6632 = vmatprep.subr.bf16.mxu1 %v8559_v34  ;;  %v3722_v23 = vld [vmem:[#allocation8 + $0xfe8] sm:$0xff]  ;;  %v8596_v34 = vcombine.low %v3709_v7, %v3713_v9  ;;  %v8605_v22 = vcombine.high %v3717_v19, %v3721_v21  ;;  %v9426_v48 = vpack.c.bf16 %v3203_v39, %v3203_v39 }
 0x319   :  { %v8607_v25 = vcombine.high %v3718_v53, %v3722_v23  ;;  %v8606_v37 = vcombine.low %v3718_v53, %v3722_v23  ;;  %v3255_v53 = vld [vmem:[#allocation8 + $0x150] sm:$0xff] }
 0x31a   :  { %v3259_v23 = vld [vmem:[#allocation8 + $0x170] sm:$0xff] }
 0x31b   :  { %6469 = vmatpush1.bf16.msra.mxu0 %v8556_v27  ;;  %6633 = vmatpush1.bf16.msra.mxu1 %v8558_v29  ;;  %v3215_v27 = vld [vmem:[#allocation8 + $0x10] sm:$0xff]  ;;  %v3216_v29 = vld [vmem:[#allocation8 + $0x18] sm:$0xff] }
 0x31c   :  { %6470 = vmatprep.subr.bf16.mxu0 %v8565_v35  ;;  %6634 = vmatprep.subr.bf16.mxu1 %v8567_v36  ;;  %v3220_v35 = vld [vmem:[#allocation8 + $0x38] sm:$0xff]  ;;  %v8604_v36 = vcombine.low %v3717_v19, %v3721_v21  ;;  %v8105_v40 = vcombine.high %v3215_v27, %v3219_v33 }
 0x31d   :  { %v8107_v43 = vcombine.high %v3216_v29, %v3220_v35  ;;  %v8106_v49 = vcombine.low %v3216_v29, %v3220_v35  ;;  %v3267_v29 = vld [vmem:[#allocation8 + $0x1b0] sm:$0xff]  ;;  %v3264_v35 = vld [vmem:[#allocation8 + $0x198] sm:$0xff] }
 0x31f   :  { %6471 = vmatpush1.bf16.msra.mxu0 %v8564_v44  ;;  %6635 = vmatpush1.bf16.msra.mxu1 %v8566_v46  ;;  %v3223_v44 = vld [vmem:[#allocation8 + $0x50] sm:$0xff] }
 0x320   :  { %6472 = vmatprep.subr.bf16.mxu0 %v8573_v41  ;;  %6636 = vmatprep.subr.bf16.mxu1 %v8575_v47  ;;  %v3227_v46 = vld [vmem:[#allocation8 + $0x70] sm:$0xff]  ;;  %v3228_v41 = vld [vmem:[#allocation8 + $0x78] sm:$0xff]  ;;  %v8104_v47 = vcombine.low %v3215_v27, %v3219_v33 }
 0x321   :  { %v8113_v51 = vcombine.high %v3223_v44, %v3227_v46  ;;  %v8115_v52 = vcombine.high %v3224_v42, %v3228_v41  ;;  %v8112_v59 = vcombine.low %v3223_v44, %v3227_v46  ;;  %v8114_v61 = vcombine.low %v3224_v42, %v3228_v41  ;;  %v3263_v33 = vld [vmem:[#allocation8 + $0x190] sm:$0xff]  ;;  %v3272_v42 = vld [vmem:[#allocation8 + $0x1d8] sm:$0xff] }
 0x322   :  { %v3271_v44 = vld [vmem:[#allocation8 + $0x1d0] sm:$0xff]  ;;  %v3276_v41 = vld [vmem:[#allocation8 + $0x1f8] sm:$0xff] }
 0x323   :  { %6473 = vmatpush1.bf16.msra.mxu0 %v8572_v54  ;;  %6637 = vmatpush1.bf16.msra.mxu1 %v8574_v50  ;;  %v3231_v54 = vld [vmem:[#allocation8 + $0x90] sm:$0xff] }
 0x324   :  { %6474 = vmatprep.subr.bf16.mxu0 %v8581_v56  ;;  %6638 = vmatprep.subr.bf16.mxu1 %v8583_v58  ;;  %v3235_v50 = vld [vmem:[#allocation8 + $0xb0] sm:$0xff]  ;;  %v3232_v56 = vld [vmem:[#allocation8 + $0x98] sm:$0xff] }
 0x325   :  { %v3236_v58 = vld [vmem:[#allocation8 + $0xb8] sm:$0xff]  ;;  %v8121_v63 = vcombine.high %v3231_v54, %v3235_v50  ;;  %v8120_v7 = vcombine.low %v3231_v54, %v3235_v50  ;;  %v3275_v46 = vld [vmem:[#allocation8 + $0x1f0] sm:$0xff] }
 0x326   :  { %v8123_v31 = vcombine.high %v3232_v56, %v3236_v58  ;;  %v8122_v9 = vcombine.low %v3232_v56, %v3236_v58  ;;  %v3279_v54 = vld [vmem:[#allocation8 + $0x210] sm:$0xff]  ;;  %v3280_v56 = vld [vmem:[#allocation8 + $0x218] sm:$0xff] }
 0x327   :  { %6475 = vmatpush1.bf16.msra.mxu0 %v8580_v1  ;;  %6639 = vmatpush1.bf16.msra.mxu1 %v8582_v3  ;;  %v3239_v1 = vld [vmem:[#allocation8 + $0xd0] sm:$0xff]  ;;  %v3284_v58 = vld [vmem:[#allocation8 + $0x238] sm:$0xff] }
 0x328   :  { %6476 = vmatprep.subr.bf16.mxu0 %v8589_v5  ;;  %6640 = vmatprep.subr.bf16.mxu1 %v8591_v6  ;;  %v3243_v3 = vld [vmem:[#allocation8 + $0xf0] sm:$0xff]  ;;  %v3240_v5 = vld [vmem:[#allocation8 + $0xd8] sm:$0xff] }
 0x329   :  { %v3244_v6 = vld [vmem:[#allocation8 + $0xf8] sm:$0xff]  ;;  %v8129_v45 = vcombine.high %v3239_v1, %v3243_v3  ;;  %v3283_v50 = vld [vmem:[#allocation8 + $0x230] sm:$0xff] }
 0x32a   :  { %v8131_v10 = vcombine.high %v3240_v5, %v3244_v6 }
 0x32b   :  { %6477 = vmatpush1.bf16.msra.mxu0 %v8588_v13  ;;  %6641 = vmatpush1.bf16.msra.mxu1 %v8590_v57  ;;  %v3247_v13 = vld [vmem:[#allocation8 + $0x110] sm:$0xff] }
 0x32c   :  { %6478 = vmatprep.subr.bf16.mxu0 %v8597_v16  ;;  %6642 = vmatprep.subr.bf16.mxu1 %v8599_v18  ;;  %v3251_v57 = vld [vmem:[#allocation8 + $0x130] sm:$0xff]  ;;  %v8128_v16 = vcombine.low %v3239_v1, %v3243_v3  ;;  %v8130_v18 = vcombine.low %v3240_v5, %v3244_v6  ;;  %v3288_v5 = vld [vmem:[#allocation8 + $0x258] sm:$0xff] }
 0x32d   :  { %v8137_v19 = vcombine.high %v3247_v13, %v3251_v57  ;;  %v8136_v26 = vcombine.low %v3247_v13, %v3251_v57  ;;  %v3287_v1 = vld [vmem:[#allocation8 + $0x250] sm:$0xff]  ;;  %v3292_v6 = vld [vmem:[#allocation8 + $0x278] sm:$0xff] }
 0x32e   :  { %v3291_v3 = vld [vmem:[#allocation8 + $0x270] sm:$0xff] }
 0x32f   :  { %6479 = vmatpush1.bf16.msra.mxu0 %v8596_v34  ;;  %6643 = vmatpush1.bf16.msra.mxu1 %v8598_v24  ;;  %v3256_v34 = vld [vmem:[#allocation8 + $0x158] sm:$0xff]  ;;  %v3295_v13 = vld [vmem:[#allocation8 + $0x290] sm:$0xff] }
 0x330   :  { %6480 = vmatprep.subr.bf16.mxu0 %v8605_v22  ;;  %6644 = vmatprep.subr.bf16.mxu1 %v8607_v25  ;;  %v3260_v24 = vld [vmem:[#allocation8 + $0x178] sm:$0xff]  ;;  %v8145_v25 = vcombine.high %v3255_v53, %v3259_v23  ;;  %v3299_v57 = vld [vmem:[#allocation8 + $0x2b0] sm:$0xff] }
 0x331   :  { %v8147_v27 = vcombine.high %v3256_v34, %v3260_v24  ;;  %v8146_v39 = vcombine.low %v3256_v34, %v3260_v24  ;;  %v3304_v34 = vld [vmem:[#allocation8 + $0x2d8] sm:$0xff] }
 0x332   :  { %v3308_v24 = vld [vmem:[#allocation8 + $0x2f8] sm:$0xff] }
 0x333   :  { %6481 = vmatpush1.bf16.msra.mxu0 %v8604_v36  ;;  %6645 = vmatpush1.bf16.msra.mxu1 %v8606_v37  ;;  %v3268_v36 = vld [vmem:[#allocation8 + $0x1b8] sm:$0xff]  ;;  %v8144_v37 = vcombine.low %v3255_v53, %v3259_v23  ;;  %v3303_v53 = vld [vmem:[#allocation8 + $0x2d0] sm:$0xff] }
 0x334   :  { %6655 = vmatprep.subr.bf16.mxu0 %v8105_v40  ;;  %6819 = vmatprep.subr.bf16.mxu1 %v8107_v43  ;;  %v8153_v40 = vcombine.high %v3263_v33, %v3267_v29  ;;  %v8155_v43 = vcombine.high %v3264_v35, %v3268_v36  ;;  %v3307_v23 = vld [vmem:[#allocation8 + $0x2f0] sm:$0xff] }
 0x336   :  { %6483 = vmatmul.mubr.bf16.vlgmr.msra.gmra.mrb[8].mxu0 %v9426_v48  ;;  %6647 = vmatmul.mubr.bf16.vlgmr.msra.gmra.mrb[8].mxu1 %v9426_v48 }
 0x337   :  { %6656 = vmatpush1.bf16.msra.mxu0 %v8104_v47  ;;  %6687 = vmatprep.mubr.bf16.mxu0 %v9362_v2  ;;  %v8152_v47 = vcombine.low %v3263_v33, %v3267_v29  ;;  %v3311_v33 = vld [vmem:[#allocation8 + $0x310] sm:$0xff] }
 0x338   :  { %6820 = vmatpush1.bf16.msra.mxu1 %v8106_v49  ;;  %6851 = vmatprep.mubr.bf16.mxu1 %v9362_v2  ;;  %v3248_v2 = vld [vmem:[#allocation8 + $0x118] sm:$0xff]  ;;  %v8154_v49 = vcombine.low %v3264_v35, %v3268_v36  ;;  %v3315_v29 = vld [vmem:[#allocation8 + $0x330] sm:$0xff] }
 0x339   :  { %6657 = vmatprep.subr.bf16.mxu0 %v8113_v51  ;;  %6821 = vmatprep.subr.bf16.mxu1 %v8115_v52  ;;  %v8139_v21 = vcombine.high %v3248_v2, %v3252_v14  ;;  %v8138_v22 = vcombine.low %v3248_v2, %v3252_v14  ;;  %v8161_v51 = vcombine.high %v3271_v44, %v3275_v46  ;;  %v3296_v2 = vld [vmem:[#allocation8 + $0x298] sm:$0xff] }
 0x33a   :  { %v8163_v52 = vcombine.high %v3272_v42, %v3276_v41  ;;  %v3300_v14 = vld [vmem:[#allocation8 + $0x2b8] sm:$0xff] }
 0x33b   :  { %6658 = vmatpush1.bf16.msra.mxu0 %v8112_v59  ;;  %v8160_v59 = vcombine.low %v3271_v44, %v3275_v46  ;;  %v3312_v35 = vld [vmem:[#allocation8 + $0x318] sm:$0xff]  ;;  %v3319_v44 = vld [vmem:[#allocation8 + $0x350] sm:$0xff] }
 0x33c   :  { %6822 = vmatpush1.bf16.msra.mxu1 %v8114_v61  ;;  %6659 = vmatprep.subr.bf16.mxu0 %v8121_v63  ;;  %v8162_v61 = vcombine.low %v3272_v42, %v3276_v41  ;;  %v8169_v63 = vcombine.high %v3279_v54, %v3283_v50  ;;  %v3316_v36 = vld [vmem:[#allocation8 + $0x338] sm:$0xff]  ;;  %v3323_v46 = vld [vmem:[#allocation8 + $0x370] sm:$0xff] }
 0x33d   :  { %6823 = vmatprep.subr.bf16.mxu1 %v8123_v31  ;;  %v8171_v31 = vcombine.high %v3280_v56, %v3284_v58  ;;  %v3320_v42 = vld [vmem:[#allocation8 + $0x358] sm:$0xff] }
 0x33e   :  { %v3324_v41 = vld [vmem:[#allocation8 + $0x378] sm:$0xff] }
 0x33f   :  { %6660 = vmatpush1.bf16.msra.mxu0 %v8120_v7  ;;  %v8168_v7 = vcombine.low %v3279_v54, %v3283_v50  ;;  %v3327_v54 = vld [vmem:[#allocation8 + $0x390] sm:$0xff] }
 0x340   :  { %6824 = vmatpush1.bf16.msra.mxu1 %v8122_v9  ;;  %6661 = vmatprep.subr.bf16.mxu0 %v8129_v45  ;;  %v8170_v9 = vcombine.low %v3280_v56, %v3284_v58  ;;  %v8177_v45 = vcombine.high %v3287_v1, %v3291_v3  ;;  %v3331_v50 = vld [vmem:[#allocation8 + $0x3b0] sm:$0xff]  ;;  %v3328_v56 = vld [vmem:[#allocation8 + $0x398] sm:$0xff] }
 0x341   :  { %6825 = vmatprep.subr.bf16.mxu1 %v8131_v10  ;;  %v8179_v10 = vcombine.high %v3288_v5, %v3292_v6  ;;  %v3332_v58 = vld [vmem:[#allocation8 + $0x3b8] sm:$0xff] }
 0x343   :  { %6662 = vmatpush1.bf16.msra.mxu0 %v8128_v16  ;;  %v8176_v16 = vcombine.low %v3287_v1, %v3291_v3  ;;  %v3335_v1 = vld [vmem:[#allocation8 + $0x3d0] sm:$0xff] }
 0x344   :  { %6826 = vmatpush1.bf16.msra.mxu1 %v8130_v18  ;;  %6663 = vmatprep.subr.bf16.mxu0 %v8137_v19  ;;  %v8178_v18 = vcombine.low %v3288_v5, %v3292_v6  ;;  %v8185_v19 = vcombine.high %v3295_v13, %v3299_v57  ;;  %v3339_v3 = vld [vmem:[#allocation8 + $0x3f0] sm:$0xff]  ;;  %v3336_v5 = vld [vmem:[#allocation8 + $0x3d8] sm:$0xff] }
 0x345   :  { %6827 = vmatprep.subr.bf16.mxu1 %v8139_v21  ;;  %v8187_v21 = vcombine.high %v3296_v2, %v3300_v14  ;;  %v3340_v6 = vld [vmem:[#allocation8 + $0x3f8] sm:$0xff] }
 0x347   :  { %6664 = vmatpush1.bf16.msra.mxu0 %v8136_v26  ;;  %v8184_v26 = vcombine.low %v3295_v13, %v3299_v57  ;;  %v3343_v13 = vld [vmem:[#allocation8 + $0x410] sm:$0xff] }
 0x348   :  { %6828 = vmatpush1.bf16.msra.mxu1 %v8138_v22  ;;  %6665 = vmatprep.subr.bf16.mxu0 %v8145_v25  ;;  %v8186_v22 = vcombine.low %v3296_v2, %v3300_v14  ;;  %v8193_v25 = vcombine.high %v3303_v53, %v3307_v23  ;;  %v3347_v57 = vld [vmem:[#allocation8 + $0x430] sm:$0xff]  ;;  %v3344_v2 = vld [vmem:[#allocation8 + $0x418] sm:$0xff] }
 0x349   :  { %6829 = vmatprep.subr.bf16.mxu1 %v8147_v27  ;;  %v8195_v27 = vcombine.high %v3304_v34, %v3308_v24  ;;  %v3348_v14 = vld [vmem:[#allocation8 + $0x438] sm:$0xff] }
 0x34b   :  { %6666 = vmatpush1.bf16.msra.mxu0 %v8144_v37  ;;  %v8192_v37 = vcombine.low %v3303_v53, %v3307_v23  ;;  %v3351_v53 = vld [vmem:[#allocation8 + $0x450] sm:$0xff] }
 0x34c   :  { %6830 = vmatpush1.bf16.msra.mxu1 %v8146_v39  ;;  %6667 = vmatprep.subr.bf16.mxu0 %v8153_v40  ;;  %v8194_v39 = vcombine.low %v3304_v34, %v3308_v24  ;;  %v8201_v40 = vcombine.high %v3311_v33, %v3315_v29  ;;  %v3355_v23 = vld [vmem:[#allocation8 + $0x470] sm:$0xff]  ;;  %v8232_v34 = vcombine.low %v3343_v13, %v3347_v57  ;;  %v3352_v24 = vld [vmem:[#allocation8 + $0x458] sm:$0xff] }
 0x34d   :  { %6831 = vmatprep.subr.bf16.mxu1 %v8155_v43  ;;  %v8203_v43 = vcombine.high %v3312_v35, %v3316_v36 }
 0x34f   :  { %6668 = vmatpush1.bf16.msra.mxu0 %v8152_v47  ;;  %v8200_v47 = vcombine.low %v3311_v33, %v3315_v29  ;;  %v3363_v33 = vld [vmem:[#allocation8 + $0x4b0] sm:$0xff] }
 0x350   :  { %6832 = vmatpush1.bf16.msra.mxu1 %v8154_v49  ;;  %6669 = vmatprep.subr.bf16.mxu0 %v8161_v51  ;;  %v8202_v49 = vcombine.low %v3312_v35, %v3316_v36  ;;  %v8209_v51 = vcombine.high %v3319_v44, %v3323_v46  ;;  %v3360_v35 = vld [vmem:[#allocation8 + $0x498] sm:$0xff] }
 0x351   :  { %6833 = vmatprep.subr.bf16.mxu1 %v8163_v52  ;;  %v8211_v52 = vcombine.high %v3320_v42, %v3324_v41  ;;  %v3364_v36 = vld [vmem:[#allocation8 + $0x4b8] sm:$0xff] }
 0x353   :  { %6670 = vmatpush1.bf16.msra.mxu0 %v8160_v59  ;;  %v8208_v59 = vcombine.low %v3319_v44, %v3323_v46  ;;  %v3367_v44 = vld [vmem:[#allocation8 + $0x4d0] sm:$0xff] }
 0x354   :  { %6834 = vmatpush1.bf16.msra.mxu1 %v8162_v61  ;;  %6671 = vmatprep.subr.bf16.mxu0 %v8169_v63  ;;  %v8210_v61 = vcombine.low %v3320_v42, %v3324_v41  ;;  %v8217_v63 = vcombine.high %v3327_v54, %v3331_v50  ;;  %v3371_v46 = vld [vmem:[#allocation8 + $0x4f0] sm:$0xff]  ;;  %v3368_v42 = vld [vmem:[#allocation8 + $0x4d8] sm:$0xff] }
 0x355   :  { %6835 = vmatprep.subr.bf16.mxu1 %v8171_v31  ;;  %v8219_v31 = vcombine.high %v3328_v56, %v3332_v58  ;;  %v3372_v41 = vld [vmem:[#allocation8 + $0x4f8] sm:$0xff] }
 0x357   :  { %6672 = vmatpush1.bf16.msra.mxu0 %v8168_v7  ;;  %v8216_v7 = vcombine.low %v3327_v54, %v3331_v50  ;;  %v3379_v54 = vld [vmem:[#allocation8 + $0x530] sm:$0xff]  ;;  %v3376_v50 = vld [vmem:[#allocation8 + $0x518] sm:$0xff] }
 0x358   :  { %6836 = vmatpush1.bf16.msra.mxu1 %v8170_v9  ;;  %6673 = vmatprep.subr.bf16.mxu0 %v8177_v45  ;;  %v8218_v9 = vcombine.low %v3328_v56, %v3332_v58  ;;  %v8225_v45 = vcombine.high %v3335_v1, %v3339_v3  ;;  %v3380_v56 = vld [vmem:[#allocation8 + $0x538] sm:$0xff]  ;;  %v8258_v58 = vcombine.low %v3368_v42, %v3372_v41 }
 0x359   :  { %6837 = vmatprep.subr.bf16.mxu1 %v8179_v10  ;;  %v8227_v10 = vcombine.high %v3336_v5, %v3340_v6 }
 0x35b   :  { %6674 = vmatpush1.bf16.msra.mxu0 %v8176_v16  ;;  %v8224_v16 = vcombine.low %v3335_v1, %v3339_v3  ;;  %v3384_v1 = vld [vmem:[#allocation8 + $0x558] sm:$0xff] }
 0x35c   :  { %6838 = vmatpush1.bf16.msra.mxu1 %v8178_v18  ;;  %6675 = vmatprep.subr.bf16.mxu0 %v8185_v19  ;;  %v8226_v18 = vcombine.low %v3336_v5, %v3340_v6  ;;  %v8233_v19 = vcombine.high %v3343_v13, %v3347_v57  ;;  %v3388_v3 = vld [vmem:[#allocation8 + $0x578] sm:$0xff]  ;;  %v8266_v6 = vcombine.low %v3376_v50, %v3380_v56 }
 0x35d   :  { %6839 = vmatprep.subr.bf16.mxu1 %v8187_v21  ;;  %v8235_v21 = vcombine.high %v3344_v2, %v3348_v14  ;;  %v3392_v13 = vld [vmem:[#allocation8 + $0x598] sm:$0xff] }
 0x35e   :  { %v3396_v57 = vld [vmem:[#allocation8 + $0x5b8] sm:$0xff] }
 0x35f   :  { %6676 = vmatpush1.bf16.msra.mxu0 %v8184_v26  ;;  %v3356_v26 = vld [vmem:[#allocation8 + $0x478] sm:$0xff] }
 0x360   :  { %6840 = vmatpush1.bf16.msra.mxu1 %v8186_v22  ;;  %6677 = vmatprep.subr.bf16.mxu0 %v8193_v25  ;;  %v8234_v22 = vcombine.low %v3344_v2, %v3348_v14  ;;  %v8241_v25 = vcombine.high %v3351_v53, %v3355_v23  ;;  %v8243_v29 = vcombine.high %v3352_v24, %v3356_v26 }
 0x361   :  { %6841 = vmatprep.subr.bf16.mxu1 %v8195_v27  ;;  %v3359_v27 = vld [vmem:[#allocation8 + $0x490] sm:$0xff]  ;;  %v8274_v14 = vcombine.low %v3384_v1, %v3388_v3 }
 0x363   :  { %6678 = vmatpush1.bf16.msra.mxu0 %v8192_v37  ;;  %v8240_v37 = vcombine.low %v3351_v53, %v3355_v23  ;;  %v3400_v53 = vld [vmem:[#allocation8 + $0x5d8] sm:$0xff] }
 0x364   :  { %6842 = vmatpush1.bf16.msra.mxu1 %v8194_v39  ;;  %6679 = vmatprep.subr.bf16.mxu0 %v8201_v40  ;;  %v8242_v39 = vcombine.low %v3352_v24, %v3356_v26  ;;  %v8249_v40 = vcombine.high %v3359_v27, %v3363_v33  ;;  %v3404_v23 = vld [vmem:[#allocation8 + $0x5f8] sm:$0xff]  ;;  %v8282_v24 = vcombine.low %v3392_v13, %v3396_v57 }
 0x365   :  { %6843 = vmatprep.subr.bf16.mxu1 %v8203_v43  ;;  %v8251_v43 = vcombine.high %v3360_v35, %v3364_v36 }
 0x367   :  { %6680 = vmatpush1.bf16.msra.mxu0 %v8200_v47  ;;  %v8248_v47 = vcombine.low %v3359_v27, %v3363_v33  ;;  %v3411_v27 = vld [vmem:[#allocation8 + $0x630] sm:$0xff]  ;;  %v3408_v33 = vld [vmem:[#allocation8 + $0x618] sm:$0xff] }
 0x368   :  { %6844 = vmatpush1.bf16.msra.mxu1 %v8202_v49  ;;  %6681 = vmatprep.subr.bf16.mxu0 %v8209_v51  ;;  %v8257_v49 = vcombine.high %v3367_v44, %v3371_v46  ;;  %v8259_v51 = vcombine.high %v3368_v42, %v3372_v41 }
 0x369   :  { %6845 = vmatprep.subr.bf16.mxu1 %v8211_v52  ;;  %v3375_v52 = vld [vmem:[#allocation8 + $0x510] sm:$0xff] }
 0x36a   :  { %v8264_v5 = vcombine.low %v3375_v52, %v3379_v54 }
 0x36b   :  { %6682 = vmatpush1.bf16.msra.mxu0 %v8208_v59  ;;  %v8265_v59 = vcombine.high %v3375_v52, %v3379_v54  ;;  %v3424_v52 = vld [vmem:[#allocation8 + $0x698] sm:$0xff] }
 0x36c   :  { %6846 = vmatpush1.bf16.msra.mxu1 %v8210_v61  ;;  %6683 = vmatprep.subr.bf16.mxu0 %v8217_v63  ;;  %v8267_v61 = vcombine.high %v3376_v50, %v3380_v56  ;;  %v3383_v63 = vld [vmem:[#allocation8 + $0x550] sm:$0xff]  ;;  %v3428_v54 = vld [vmem:[#allocation8 + $0x6b8] sm:$0xff] }
 0x36d   :  { %6847 = vmatprep.subr.bf16.mxu1 %v8219_v31  ;;  %v3387_v31 = vld [vmem:[#allocation8 + $0x570] sm:$0xff] }
 0x36e   :  { %v8272_v2 = vcombine.low %v3383_v63, %v3387_v31 }
 0x36f   :  { %6684 = vmatpush1.bf16.msra.mxu0 %v8216_v7  ;;  %v8273_v7 = vcombine.high %v3383_v63, %v3387_v31  ;;  %v3432_v63 = vld [vmem:[#allocation8 + $0x6d8] sm:$0xff] }
 0x370   :  { %6848 = vmatpush1.bf16.msra.mxu1 %v8218_v9  ;;  %6685 = vmatprep.subr.bf16.mxu0 %v8225_v45  ;;  %v8275_v9 = vcombine.high %v3384_v1, %v3388_v3  ;;  %v3391_v45 = vld [vmem:[#allocation8 + $0x590] sm:$0xff]  ;;  %v3436_v31 = vld [vmem:[#allocation8 + $0x6f8] sm:$0xff]  ;;  %v8314_v3 = vcombine.low %v3424_v52, %v3428_v54 }
 0x371   :  { %6849 = vmatprep.subr.bf16.mxu1 %v8227_v10  ;;  %v3395_v10 = vld [vmem:[#allocation8 + $0x5b0] sm:$0xff] }
 0x373   :  { %6686 = vmatpush1.bf16.msra.mxu0 %v8224_v16  ;;  %v8281_v16 = vcombine.high %v3391_v45, %v3395_v10 }
 0x374   :  { %6850 = vmatpush1.bf16.msra.mxu1 %v8226_v18  ;;  %6696 = vmatprep.subr.bf16.mxu0 %v8233_v19  ;;  %v8283_v18 = vcombine.high %v3392_v13, %v3396_v57  ;;  %v3399_v19 = vld [vmem:[#allocation8 + $0x5d0] sm:$0xff]  ;;  %v8322_v57 = vcombine.low %v3432_v63, %v3436_v31 }
 0x375   :  { %6860 = vmatprep.subr.bf16.mxu1 %v8235_v21  ;;  %v3403_v21 = vld [vmem:[#allocation8 + $0x5f0] sm:$0xff] }
 0x376   :  { %6688 = vmatmul.mubr.bf16.vlgmr.msra.gmra.mrb[12].mxu0 %v9376_v55  ;;  %v8289_v26 = vcombine.high %v3399_v19, %v3403_v21 }
 0x377   :  { %6852 = vmatmul.mubr.bf16.vlgmr.msra.gmra.mrb[12].mxu1 %v9376_v55  ;;  %6697 = vmatpush1.bf16.msra.mxu0 %v8232_v34  ;;  %v8250_v55 = vcombine.low %v3360_v35, %v3364_v36  ;;  %v8280_v34 = vcombine.low %v3391_v45, %v3395_v10  ;;  %v8288_v35 = vcombine.low %v3399_v19, %v3403_v21  ;;  %v3440_v45 = vld [vmem:[#allocation8 + $0x718] sm:$0xff] }
 0x378   :  { %6728 = vmatprep.mubr.bf16.mxu0 %v9378_v60  ;;  %6861 = vmatpush1.bf16.msra.mxu1 %v8234_v22  ;;  %v8291_v22 = vcombine.high %v3400_v53, %v3404_v23  ;;  %v8290_v36 = vcombine.low %v3400_v53, %v3404_v23  ;;  %v3444_v10 = vld [vmem:[#allocation8 + $0x738] sm:$0xff] }
 0x379   :  { %6892 = vmatprep.mubr.bf16.mxu1 %v9378_v60  ;;  %6698 = vmatprep.subr.bf16.mxu0 %v8241_v25  ;;  %v8256_v60 = vcombine.low %v3367_v44, %v3371_v46  ;;  %v3407_v25 = vld [vmem:[#allocation8 + $0x610] sm:$0xff]  ;;  %v3416_v44 = vld [vmem:[#allocation8 + $0x658] sm:$0xff]  ;;  %v8330_v23 = vcombine.low %v3440_v45, %v3444_v10 }
 0x37a   :  { %6862 = vmatprep.subr.bf16.mxu1 %v8243_v29  ;;  %v3412_v29 = vld [vmem:[#allocation8 + $0x638] sm:$0xff]  ;;  %v8296_v42 = vcombine.low %v3407_v25, %v3411_v27 }
 0x37b   :  { %6699 = vmatpush1.bf16.msra.mxu0 %v8240_v37  ;;  %v8297_v37 = vcombine.high %v3407_v25, %v3411_v27  ;;  %v3420_v46 = vld [vmem:[#allocation8 + $0x678] sm:$0xff]  ;;  %v8298_v41 = vcombine.low %v3408_v33, %v3412_v29 }
 0x37c   :  { %6863 = vmatpush1.bf16.msra.mxu1 %v8242_v39  ;;  %6700 = vmatprep.subr.bf16.mxu0 %v8249_v40  ;;  %v8299_v39 = vcombine.high %v3408_v33, %v3412_v29  ;;  %v3415_v40 = vld [vmem:[#allocation8 + $0x650] sm:$0xff]  ;;  %v8306_v56 = vcombine.low %v3416_v44, %v3420_v46  ;;  %v3448_v19 = vld [vmem:[#allocation8 + $0x758] sm:$0xff] }
 0x37d   :  { %6864 = vmatprep.subr.bf16.mxu1 %v8251_v43  ;;  %v3419_v43 = vld [vmem:[#allocation8 + $0x670] sm:$0xff]  ;;  %v3452_v21 = vld [vmem:[#allocation8 + $0x778] sm:$0xff] }
 0x37e   :  { %v8304_v50 = vcombine.low %v3415_v40, %v3419_v43  ;;  %v3456_v25 = vld [vmem:[#allocation8 + $0x798] sm:$0xff]  ;;  %v8338_v29 = vcombine.low %v3448_v19, %v3452_v21 }
 0x37f   :  { %6701 = vmatpush1.bf16.msra.mxu0 %v8248_v47  ;;  %v8305_v47 = vcombine.high %v3415_v40, %v3419_v43  ;;  %v3460_v27 = vld [vmem:[#allocation8 + $0x7b8] sm:$0xff] }
 0x380   :  { %6865 = vmatpush1.bf16.msra.mxu1 %v8250_v55  ;;  %6702 = vmatprep.subr.bf16.mxu0 %v8257_v49  ;;  %v8307_v55 = vcombine.high %v3416_v44, %v3420_v46  ;;  %v3423_v49 = vld [vmem:[#allocation8 + $0x690] sm:$0xff]  ;;  %v3464_v40 = vld [vmem:[#allocation8 + $0x7d8] sm:$0xff]  ;;  %v8346_v46 = vcombine.low %v3456_v25, %v3460_v27 }
 0x381   :  { %6866 = vmatprep.subr.bf16.mxu1 %v8259_v51  ;;  %v3427_v51 = vld [vmem:[#allocation8 + $0x6b0] sm:$0xff]  ;;  %v3468_v43 = vld [vmem:[#allocation8 + $0x7f8] sm:$0xff] }
 0x382   :  { %v8312_v1 = vcombine.low %v3423_v49, %v3427_v51 }
 0x383   :  { %6703 = vmatpush1.bf16.msra.mxu0 %v8256_v60  ;;  %v8313_v60 = vcombine.high %v3423_v49, %v3427_v51  ;;  %v3472_v49 = vld [vmem:[#allocation8 + $0x818] sm:$0xff] }
 0x384   :  { %6867 = vmatpush1.bf16.msra.mxu1 %v8258_v58  ;;  %6704 = vmatprep.subr.bf16.mxu0 %v8265_v59  ;;  %v8315_v58 = vcombine.high %v3424_v52, %v3428_v54  ;;  %v3431_v59 = vld [vmem:[#allocation8 + $0x6d0] sm:$0xff]  ;;  %v3476_v51 = vld [vmem:[#allocation8 + $0x838] sm:$0xff]  ;;  %v8354_v54 = vcombine.low %v3464_v40, %v3468_v43 }
 0x385   :  { %6868 = vmatprep.subr.bf16.mxu1 %v8267_v61  ;;  %v3435_v61 = vld [vmem:[#allocation8 + $0x6f0] sm:$0xff] }
 0x386   :  { %v8320_v13 = vcombine.low %v3431_v59, %v3435_v61 }
 0x387   :  { %6705 = vmatpush1.bf16.msra.mxu0 %v8264_v5  ;;  %v8321_v5 = vcombine.high %v3431_v59, %v3435_v61  ;;  %v3480_v61 = vld [vmem:[#allocation8 + $0x858] sm:$0xff] }
 0x388   :  { %6869 = vmatpush1.bf16.msra.mxu1 %v8266_v6  ;;  %6706 = vmatprep.subr.bf16.mxu0 %v8273_v7  ;;  %v8323_v6 = vcombine.high %v3432_v63, %v3436_v31  ;;  %v3439_v7 = vld [vmem:[#allocation8 + $0x710] sm:$0xff]  ;;  %v3484_v63 = vld [vmem:[#allocation8 + $0x878] sm:$0xff]  ;;  %v8362_v31 = vcombine.low %v3472_v49, %v3476_v51 }
 0x389   :  { %6870 = vmatprep.subr.bf16.mxu1 %v8275_v9  ;;  %v3443_v9 = vld [vmem:[#allocation8 + $0x730] sm:$0xff] }
 0x38a   :  { %v8328_v53 = vcombine.low %v3439_v7, %v3443_v9 }
 0x38b   :  { %6707 = vmatpush1.bf16.msra.mxu0 %v8272_v2  ;;  %v8329_v2 = vcombine.high %v3439_v7, %v3443_v9  ;;  %v3488_v7 = vld [vmem:[#allocation8 + $0x898] sm:$0xff] }
 0x38c   :  { %6871 = vmatpush1.bf16.msra.mxu1 %v8274_v14  ;;  %6708 = vmatprep.subr.bf16.mxu0 %v8281_v16  ;;  %v8331_v14 = vcombine.high %v3440_v45, %v3444_v10  ;;  %v3447_v16 = vld [vmem:[#allocation8 + $0x750] sm:$0xff]  ;;  %v3492_v9 = vld [vmem:[#allocation8 + $0x8b8] sm:$0xff]  ;;  %v8370_v10 = vcombine.low %v3480_v61, %v3484_v63 }
 0x38d   :  { %6872 = vmatprep.subr.bf16.mxu1 %v8283_v18  ;;  %v3451_v18 = vld [vmem:[#allocation8 + $0x770] sm:$0xff] }
 0x38e   :  { %v8336_v33 = vcombine.low %v3447_v16, %v3451_v18 }
 0x38f   :  { %6709 = vmatpush1.bf16.msra.mxu0 %v8280_v34  ;;  %v8337_v34 = vcombine.high %v3447_v16, %v3451_v18  ;;  %v3496_v16 = vld [vmem:[#allocation8 + $0x8d8] sm:$0xff] }
 0x390   :  { %6873 = vmatpush1.bf16.msra.mxu1 %v8282_v24  ;;  %6710 = vmatprep.subr.bf16.mxu0 %v8289_v26  ;;  %v8339_v24 = vcombine.high %v3448_v19, %v3452_v21  ;;  %v3455_v26 = vld [vmem:[#allocation8 + $0x790] sm:$0xff]  ;;  %v3500_v18 = vld [vmem:[#allocation8 + $0x8f8] sm:$0xff] }
 0x391   :  { %6874 = vmatprep.subr.bf16.mxu1 %v8291_v22  ;;  %v3459_v22 = vld [vmem:[#allocation8 + $0x7b0] sm:$0xff] }
 0x392   :  { %v8344_v44 = vcombine.low %v3455_v26, %v3459_v22 }
 0x393   :  { %6711 = vmatpush1.bf16.msra.mxu0 %v8288_v35  ;;  %v8345_v35 = vcombine.high %v3455_v26, %v3459_v22  ;;  %v3508_v26 = vld [vmem:[#allocation8 + $0x938] sm:$0xff]  ;;  %v8386_v22 = vcombine.low %v3496_v16, %v3500_v18 }
 0x394   :  { %6875 = vmatpush1.bf16.msra.mxu1 %v8290_v36  ;;  %6712 = vmatprep.subr.bf16.mxu0 %v8297_v37  ;;  %v8347_v36 = vcombine.high %v3456_v25, %v3460_v27  ;;  %v3463_v37 = vld [vmem:[#allocation8 + $0x7d0] sm:$0xff] }
 0x395   :  { %6876 = vmatprep.subr.bf16.mxu1 %v8299_v39  ;;  %v3467_v39 = vld [vmem:[#allocation8 + $0x7f0] sm:$0xff] }
 0x396   :  { %v8352_v52 = vcombine.low %v3463_v37, %v3467_v39 }
 0x397   :  { %6713 = vmatpush1.bf16.msra.mxu0 %v8296_v42  ;;  %v8353_v42 = vcombine.high %v3463_v37, %v3467_v39 }
 0x398   :  { %6877 = vmatpush1.bf16.msra.mxu1 %v8298_v41  ;;  %6714 = vmatprep.subr.bf16.mxu0 %v8305_v47  ;;  %v8355_v41 = vcombine.high %v3464_v40, %v3468_v43  ;;  %v3471_v47 = vld [vmem:[#allocation8 + $0x810] sm:$0xff] }
 0x399   :  { %6878 = vmatprep.subr.bf16.mxu1 %v8307_v55  ;;  %v3475_v55 = vld [vmem:[#allocation8 + $0x830] sm:$0xff] }
 0x39a   :  { %v8360_v59 = vcombine.low %v3471_v47, %v3475_v55 }
 0x39b   :  { %6715 = vmatpush1.bf16.msra.mxu0 %v8304_v50  ;;  %v8361_v50 = vcombine.high %v3471_v47, %v3475_v55 }
 0x39c   :  { %6879 = vmatpush1.bf16.msra.mxu1 %v8306_v56  ;;  %6716 = vmatprep.subr.bf16.mxu0 %v8313_v60  ;;  %v8363_v56 = vcombine.high %v3472_v49, %v3476_v51  ;;  %v3479_v60 = vld [vmem:[#allocation8 + $0x850] sm:$0xff] }
 0x39d   :  { %6880 = vmatprep.subr.bf16.mxu1 %v8315_v58  ;;  %v3483_v58 = vld [vmem:[#allocation8 + $0x870] sm:$0xff] }
 0x39e   :  { %v8368_v45 = vcombine.low %v3479_v60, %v3483_v58 }
 0x39f   :  { %6717 = vmatpush1.bf16.msra.mxu0 %v8312_v1  ;;  %v8369_v1 = vcombine.high %v3479_v60, %v3483_v58 }
 0x3a0   :  { %6881 = vmatpush1.bf16.msra.mxu1 %v8314_v3  ;;  %6718 = vmatprep.subr.bf16.mxu0 %v8321_v5  ;;  %v3487_v3 = vld [vmem:[#allocation8 + $0x890] sm:$0xff] }
 0x3a1   :  { %6882 = vmatprep.subr.bf16.mxu1 %v8323_v6  ;;  %v3491_v5 = vld [vmem:[#allocation8 + $0x8b0] sm:$0xff]  ;;  %v8371_v6 = vcombine.high %v3480_v61, %v3484_v63 }
 0x3a2   :  { %v8376_v19 = vcombine.low %v3487_v3, %v3491_v5  ;;  %v3535_v63 = vld [vmem:[#allocation8 + $0xa10] sm:$0xff] }
 0x3a3   :  { %6719 = vmatpush1.bf16.msra.mxu0 %v8320_v13  ;;  %v8377_v13 = vcombine.high %v3487_v3, %v3491_v5  ;;  %v3540_v3 = vld [vmem:[#allocation8 + $0xa38] sm:$0xff] }
 0x3a4   :  { %6883 = vmatpush1.bf16.msra.mxu1 %v8322_v57  ;;  %6720 = vmatprep.subr.bf16.mxu0 %v8329_v2  ;;  %v8379_v57 = vcombine.high %v3488_v7, %v3492_v9  ;;  %v3495_v2 = vld [vmem:[#allocation8 + $0x8d0] sm:$0xff] }
 0x3a5   :  { %6884 = vmatprep.subr.bf16.mxu1 %v8331_v14  ;;  %v3499_v14 = vld [vmem:[#allocation8 + $0x8f0] sm:$0xff] }
 0x3a6   :  { %v8385_v21 = vcombine.high %v3495_v2, %v3499_v14 }
 0x3a7   :  { %6721 = vmatpush1.bf16.msra.mxu0 %v8328_v53  ;;  %v8387_v53 = vcombine.high %v3496_v16, %v3500_v18 }
 0x3a8   :  { %6885 = vmatpush1.bf16.msra.mxu1 %v8330_v23  ;;  %6722 = vmatprep.subr.bf16.mxu0 %v8337_v34  ;;  %v3503_v23 = vld [vmem:[#allocation8 + $0x910] sm:$0xff] }
 0x3a9   :  { %6886 = vmatprep.subr.bf16.mxu1 %v8339_v24  ;;  %v3507_v34 = vld [vmem:[#allocation8 + $0x930] sm:$0xff]  ;;  %v3504_v24 = vld [vmem:[#allocation8 + $0x918] sm:$0xff] }
 0x3aa   :  { %v8393_v25 = vcombine.high %v3503_v23, %v3507_v34  ;;  %v8395_v27 = vcombine.high %v3504_v24, %v3508_v26  ;;  %v8392_v37 = vcombine.low %v3503_v23, %v3507_v34  ;;  %v8394_v39 = vcombine.low %v3504_v24, %v3508_v26 }
 0x3ab   :  { %6723 = vmatpush1.bf16.msra.mxu0 %v8336_v33  ;;  %v3511_v33 = vld [vmem:[#allocation8 + $0x950] sm:$0xff] }
 0x3ac   :  { %6887 = vmatpush1.bf16.msra.mxu1 %v8338_v29  ;;  %6724 = vmatprep.subr.bf16.mxu0 %v8345_v35  ;;  %v3515_v29 = vld [vmem:[#allocation8 + $0x970] sm:$0xff]  ;;  %v3512_v35 = vld [vmem:[#allocation8 + $0x958] sm:$0xff] }
 0x3ad   :  { %6888 = vmatprep.subr.bf16.mxu1 %v8347_v36  ;;  %v3516_v36 = vld [vmem:[#allocation8 + $0x978] sm:$0xff]  ;;  %v8401_v40 = vcombine.high %v3511_v33, %v3515_v29  ;;  %v8400_v47 = vcombine.low %v3511_v33, %v3515_v29 }
 0x3ae   :  { %v8403_v43 = vcombine.high %v3512_v35, %v3516_v36  ;;  %v8402_v55 = vcombine.low %v3512_v35, %v3516_v36 }
 0x3af   :  { %6725 = vmatpush1.bf16.msra.mxu0 %v8344_v44  ;;  %v3519_v44 = vld [vmem:[#allocation8 + $0x990] sm:$0xff] }
 0x3b0   :  { %6889 = vmatpush1.bf16.msra.mxu1 %v8346_v46  ;;  %6726 = vmatprep.subr.bf16.mxu0 %v8353_v42  ;;  %v3523_v46 = vld [vmem:[#allocation8 + $0x9b0] sm:$0xff]  ;;  %v3520_v42 = vld [vmem:[#allocation8 + $0x998] sm:$0xff] }
 0x3b1   :  { %6890 = vmatprep.subr.bf16.mxu1 %v8355_v41  ;;  %v3524_v41 = vld [vmem:[#allocation8 + $0x9b8] sm:$0xff]  ;;  %v8409_v49 = vcombine.high %v3519_v44, %v3523_v46  ;;  %v8408_v60 = vcombine.low %v3519_v44, %v3523_v46 }
 0x3b2   :  { %v8411_v51 = vcombine.high %v3520_v42, %v3524_v41  ;;  %v8410_v58 = vcombine.low %v3520_v42, %v3524_v41 }
 0x3b3   :  { %6727 = vmatpush1.bf16.msra.mxu0 %v8352_v52  ;;  %v3527_v52 = vld [vmem:[#allocation8 + $0x9d0] sm:$0xff] }
 0x3b4   :  { %6891 = vmatpush1.bf16.msra.mxu1 %v8354_v54  ;;  %6737 = vmatprep.subr.bf16.mxu0 %v8361_v50  ;;  %v3531_v54 = vld [vmem:[#allocation8 + $0x9f0] sm:$0xff]  ;;  %v3528_v50 = vld [vmem:[#allocation8 + $0x9d8] sm:$0xff] }
 0x3b5   :  { %6901 = vmatprep.subr.bf16.mxu1 %v8363_v56  ;;  %v3532_v56 = vld [vmem:[#allocation8 + $0x9f8] sm:$0xff]  ;;  %v8416_v5 = vcombine.low %v3527_v52, %v3531_v54 }
 0x3b6   :  { %6729 = vmatmul.mubr.bf16.vlgmr.msra.gmra.mrb[12].mxu0 %v9389_v12  ;;  %v8419_v61 = vcombine.high %v3528_v50, %v3532_v56 }
 0x3b7   :  { %6893 = vmatmul.mubr.bf16.vlgmr.msra.gmra.mrb[12].mxu1 %v9389_v12  ;;  %6738 = vmatpush1.bf16.msra.mxu0 %v8360_v59  ;;  %v8378_v12 = vcombine.low %v3488_v7, %v3492_v9  ;;  %v8417_v59 = vcombine.high %v3527_v52, %v3531_v54 }
 0x3b8   :  { %6769 = vmatprep.mubr.bf16.mxu0 %v9409_v62  ;;  %6902 = vmatpush1.bf16.msra.mxu1 %v8362_v31  ;;  %v3539_v31 = vld [vmem:[#allocation8 + $0xa30] sm:$0xff] }
 0x3b9   :  { %6933 = vmatprep.mubr.bf16.mxu1 %v9409_v62  ;;  %6739 = vmatprep.subr.bf16.mxu0 %v8369_v1  ;;  %v8384_v62 = vcombine.low %v3495_v2, %v3499_v14  ;;  %v3536_v1 = vld [vmem:[#allocation8 + $0xa18] sm:$0xff]  ;;  %v8425_v7 = vcombine.high %v3535_v63, %v3539_v31  ;;  %v8424_v2 = vcombine.low %v3535_v63, %v3539_v31 }
 0x3ba   :  { %6903 = vmatprep.subr.bf16.mxu1 %v8371_v6  ;;  %v8418_v6 = vcombine.low %v3528_v50, %v3532_v56  ;;  %v8427_v9 = vcombine.high %v3536_v1, %v3540_v3  ;;  %v8426_v14 = vcombine.low %v3536_v1, %v3540_v3 }
 0x3bb   :  { %6740 = vmatpush1.bf16.msra.mxu0 %v8368_v45  ;;  %v3543_v45 = vld [vmem:[#allocation8 + $0xa50] sm:$0xff] }
 0x3bc   :  { %6904 = vmatpush1.bf16.msra.mxu1 %v8370_v10  ;;  %6741 = vmatprep.subr.bf16.mxu0 %v8377_v13  ;;  %v3547_v10 = vld [vmem:[#allocation8 + $0xa70] sm:$0xff]  ;;  %v3544_v13 = vld [vmem:[#allocation8 + $0xa58] sm:$0xff] }
 0x3bd   :  { %6905 = vmatprep.subr.bf16.mxu1 %v8379_v57  ;;  %v3548_v57 = vld [vmem:[#allocation8 + $0xa78] sm:$0xff]  ;;  %v8433_v16 = vcombine.high %v3543_v45, %v3547_v10  ;;  %v8432_v23 = vcombine.low %v3543_v45, %v3547_v10 }
 0x3be   :  { %v8435_v18 = vcombine.high %v3544_v13, %v3548_v57  ;;  %v8434_v34 = vcombine.low %v3544_v13, %v3548_v57 }
 0x3bf   :  { %6742 = vmatpush1.bf16.msra.mxu0 %v8376_v19  ;;  %v3551_v19 = vld [vmem:[#allocation8 + $0xa90] sm:$0xff] }
 0x3c0   :  { %6906 = vmatpush1.bf16.msra.mxu1 %v8378_v12  ;;  %6743 = vmatprep.subr.bf16.mxu0 %v8385_v21  ;;  %v3555_v12 = vld [vmem:[#allocation8 + $0xab0] sm:$0xff]  ;;  %v3552_v21 = vld [vmem:[#allocation8 + $0xa98] sm:$0xff] }
 0x3c1   :  { %6907 = vmatprep.subr.bf16.mxu1 %v8387_v53  ;;  %v3556_v53 = vld [vmem:[#allocation8 + $0xab8] sm:$0xff]  ;;  %v8441_v24 = vcombine.high %v3551_v19, %v3555_v12  ;;  %v8440_v33 = vcombine.low %v3551_v19, %v3555_v12 }
 0x3c2   :  { %v8443_v26 = vcombine.high %v3552_v21, %v3556_v53  ;;  %v8442_v29 = vcombine.low %v3552_v21, %v3556_v53 }
 0x3c3   :  { %6744 = vmatpush1.bf16.msra.mxu0 %v8384_v62  ;;  %v3559_v62 = vld [vmem:[#allocation8 + $0xad0] sm:$0xff] }
 0x3c4   :  { %6908 = vmatpush1.bf16.msra.mxu1 %v8386_v22  ;;  %6745 = vmatprep.subr.bf16.mxu0 %v8393_v25  ;;  %v3563_v22 = vld [vmem:[#allocation8 + $0xaf0] sm:$0xff]  ;;  %v3560_v25 = vld [vmem:[#allocation8 + $0xad8] sm:$0xff] }
 0x3c5   :  { %6909 = vmatprep.subr.bf16.mxu1 %v8395_v27  ;;  %v3564_v27 = vld [vmem:[#allocation8 + $0xaf8] sm:$0xff]  ;;  %v8449_v35 = vcombine.high %v3559_v62, %v3563_v22  ;;  %v8448_v44 = vcombine.low %v3559_v62, %v3563_v22 }
 0x3c6   :  { %v8451_v36 = vcombine.high %v3560_v25, %v3564_v27  ;;  %v8450_v46 = vcombine.low %v3560_v25, %v3564_v27  ;;  %v3612_v62 = vld [vmem:[#allocation8 + $0xc78] sm:$0xff]  ;;  %v3615_v27 = vld [vmem:[#allocation8 + $0xc90] sm:$0xff] }
 0x3c7   :  { %6746 = vmatpush1.bf16.msra.mxu0 %v8392_v37  ;;  %v3567_v37 = vld [vmem:[#allocation8 + $0xb10] sm:$0xff] }
 0x3c8   :  { %6910 = vmatpush1.bf16.msra.mxu1 %v8394_v39  ;;  %6747 = vmatprep.subr.bf16.mxu0 %v8401_v40  ;;  %v3571_v39 = vld [vmem:[#allocation8 + $0xb30] sm:$0xff]  ;;  %v3568_v40 = vld [vmem:[#allocation8 + $0xb18] sm:$0xff] }
 0x3c9   :  { %6911 = vmatprep.subr.bf16.mxu1 %v8403_v43  ;;  %v3572_v43 = vld [vmem:[#allocation8 + $0xb38] sm:$0xff]  ;;  %v8457_v42 = vcombine.high %v3567_v37, %v3571_v39  ;;  %v8456_v52 = vcombine.low %v3567_v37, %v3571_v39 }
 0x3ca   :  { %v8459_v41 = vcombine.high %v3568_v40, %v3572_v43  ;;  %v8458_v54 = vcombine.low %v3568_v40, %v3572_v43 }
 0x3cb   :  { %6748 = vmatpush1.bf16.msra.mxu0 %v8400_v47  ;;  %v3575_v47 = vld [vmem:[#allocation8 + $0xb50] sm:$0xff] }
 0x3cc   :  { %6912 = vmatpush1.bf16.msra.mxu1 %v8402_v55  ;;  %6749 = vmatprep.subr.bf16.mxu0 %v8409_v49  ;;  %v3579_v55 = vld [vmem:[#allocation8 + $0xb70] sm:$0xff]  ;;  %v3576_v49 = vld [vmem:[#allocation8 + $0xb58] sm:$0xff] }
 0x3cd   :  { %6913 = vmatprep.subr.bf16.mxu1 %v8411_v51  ;;  %v3580_v51 = vld [vmem:[#allocation8 + $0xb78] sm:$0xff]  ;;  %v8465_v50 = vcombine.high %v3575_v47, %v3579_v55  ;;  %v8464_v63 = vcombine.low %v3575_v47, %v3579_v55 }
 0x3ce   :  { %v8467_v56 = vcombine.high %v3576_v49, %v3580_v51  ;;  %v8466_v31 = vcombine.low %v3576_v49, %v3580_v51  ;;  %v3631_v51 = vld [vmem:[#allocation8 + $0xd10] sm:$0xff] }
 0x3cf   :  { %6750 = vmatpush1.bf16.msra.mxu0 %v8408_v60  ;;  %v3583_v60 = vld [vmem:[#allocation8 + $0xb90] sm:$0xff] }
 0x3d0   :  { %6914 = vmatpush1.bf16.msra.mxu1 %v8410_v58  ;;  %6751 = vmatprep.subr.bf16.mxu0 %v8417_v59  ;;  %v3587_v58 = vld [vmem:[#allocation8 + $0xbb0] sm:$0xff]  ;;  %v3584_v59 = vld [vmem:[#allocation8 + $0xb98] sm:$0xff] }
 0x3d1   :  { %6915 = vmatprep.subr.bf16.mxu1 %v8419_v61  ;;  %v3588_v61 = vld [vmem:[#allocation8 + $0xbb8] sm:$0xff]  ;;  %v8473_v1 = vcombine.high %v3583_v60, %v3587_v58  ;;  %v8472_v45 = vcombine.low %v3583_v60, %v3587_v58 }
 0x3d2   :  { %v8475_v3 = vcombine.high %v3584_v59, %v3588_v61  ;;  %v8474_v10 = vcombine.low %v3584_v59, %v3588_v61  ;;  %v3639_v59 = vld [vmem:[#allocation8 + $0xd50] sm:$0xff] }
 0x3d3   :  { %6752 = vmatpush1.bf16.msra.mxu0 %v8416_v5  ;;  %v3591_v5 = vld [vmem:[#allocation8 + $0xbd0] sm:$0xff] }
 0x3d4   :  { %6916 = vmatpush1.bf16.msra.mxu1 %v8418_v6  ;;  %6753 = vmatprep.subr.bf16.mxu0 %v8425_v7  ;;  %v3595_v6 = vld [vmem:[#allocation8 + $0xbf0] sm:$0xff]  ;;  %v3592_v7 = vld [vmem:[#allocation8 + $0xbd8] sm:$0xff] }
 0x3d5   :  { %6917 = vmatprep.subr.bf16.mxu1 %v8427_v9  ;;  %v3596_v9 = vld [vmem:[#allocation8 + $0xbf8] sm:$0xff]  ;;  %v8481_v13 = vcombine.high %v3591_v5, %v3595_v6  ;;  %v8480_v19 = vcombine.low %v3591_v5, %v3595_v6  ;;  %v3643_v61 = vld [vmem:[#allocation8 + $0xd70] sm:$0xff] }
 0x3d6   :  { %v8483_v57 = vcombine.high %v3592_v7, %v3596_v9  ;;  %v8482_v12 = vcombine.low %v3592_v7, %v3596_v9  ;;  %v8529_v5 = vcombine.high %v3639_v59, %v3643_v61  ;;  %v3647_v7 = vld [vmem:[#allocation8 + $0xd90] sm:$0xff] }
 0x3d7   :  { %6754 = vmatpush1.bf16.msra.mxu0 %v8424_v2  ;;  %v3599_v2 = vld [vmem:[#allocation8 + $0xc10] sm:$0xff] }
 0x3d8   :  { %6918 = vmatpush1.bf16.msra.mxu1 %v8426_v14  ;;  %6755 = vmatprep.subr.bf16.mxu0 %v8433_v16  ;;  %v3603_v14 = vld [vmem:[#allocation8 + $0xc30] sm:$0xff]  ;;  %v3600_v16 = vld [vmem:[#allocation8 + $0xc18] sm:$0xff] }
 0x3d9   :  { %6919 = vmatprep.subr.bf16.mxu1 %v8435_v18  ;;  %v3604_v18 = vld [vmem:[#allocation8 + $0xc38] sm:$0xff]  ;;  %v8489_v21 = vcombine.high %v3599_v2, %v3603_v14  ;;  %v3651_v9 = vld [vmem:[#allocation8 + $0xdb0] sm:$0xff] }
 0x3da   :  { %v8491_v53 = vcombine.high %v3600_v16, %v3604_v18  ;;  %v8490_v22 = vcombine.low %v3600_v16, %v3604_v18 }
 0x3db   :  { %6756 = vmatpush1.bf16.msra.mxu0 %v8432_v23  ;;  %v3607_v23 = vld [vmem:[#allocation8 + $0xc50] sm:$0xff] }
 0x3dc   :  { %6920 = vmatpush1.bf16.msra.mxu1 %v8434_v34  ;;  %6757 = vmatprep.subr.bf16.mxu0 %v8441_v24  ;;  %v3611_v34 = vld [vmem:[#allocation8 + $0xc70] sm:$0xff]  ;;  %v8488_v24 = vcombine.low %v3599_v2, %v3603_v14  ;;  %v8537_v2 = vcombine.high %v3647_v7, %v3651_v9 }
 0x3dd   :  { %6921 = vmatprep.subr.bf16.mxu1 %v8443_v26  ;;  %v3608_v26 = vld [vmem:[#allocation8 + $0xc58] sm:$0xff]  ;;  %v8497_v25 = vcombine.high %v3607_v23, %v3611_v34  ;;  %v8496_v37 = vcombine.low %v3607_v23, %v3611_v34 }
 0x3de   :  { %v8498_v39 = vcombine.low %v3608_v26, %v3612_v62  ;;  %v3656_v23 = vld [vmem:[#allocation8 + $0xdd8] sm:$0xff] }
 0x3df   :  { %6758 = vmatpush1.bf16.msra.mxu0 %v8440_v33  ;;  %v3619_v33 = vld [vmem:[#allocation8 + $0xcb0] sm:$0xff]  ;;  %v3660_v34 = vld [vmem:[#allocation8 + $0xdf8] sm:$0xff] }
 0x3e0   :  { %6922 = vmatpush1.bf16.msra.mxu1 %v8442_v29  ;;  %6759 = vmatprep.subr.bf16.mxu0 %v8449_v35  ;;  %v8499_v29 = vcombine.high %v3608_v26, %v3612_v62  ;;  %v3616_v35 = vld [vmem:[#allocation8 + $0xc98] sm:$0xff]  ;;  %v8505_v40 = vcombine.high %v3615_v27, %v3619_v33  ;;  %v8504_v47 = vcombine.low %v3615_v27, %v3619_v33 }
 0x3e1   :  { %6923 = vmatprep.subr.bf16.mxu1 %v8451_v36  ;;  %v3620_v36 = vld [vmem:[#allocation8 + $0xcb8] sm:$0xff]  ;;  %v8536_v62 = vcombine.low %v3647_v7, %v3651_v9 }
 0x3e2   :  { %v8507_v43 = vcombine.high %v3616_v35, %v3620_v36 }
 0x3e3   :  { %6760 = vmatpush1.bf16.msra.mxu0 %v8448_v44  ;;  %v3623_v44 = vld [vmem:[#allocation8 + $0xcd0] sm:$0xff] }
 0x3e4   :  { %6924 = vmatpush1.bf16.msra.mxu1 %v8450_v46  ;;  %6761 = vmatprep.subr.bf16.mxu0 %v8457_v42  ;;  %v3627_v46 = vld [vmem:[#allocation8 + $0xcf0] sm:$0xff]  ;;  %v3624_v42 = vld [vmem:[#allocation8 + $0xcd8] sm:$0xff] }
 0x3e5   :  { %6925 = vmatprep.subr.bf16.mxu1 %v8459_v41  ;;  %v3628_v41 = vld [vmem:[#allocation8 + $0xcf8] sm:$0xff]  ;;  %v8513_v55 = vcombine.high %v3623_v44, %v3627_v46 }
 0x3e6   :  { %v8515_v49 = vcombine.high %v3624_v42, %v3628_v41 }
 0x3e7   :  { %6762 = vmatpush1.bf16.msra.mxu0 %v8456_v52  ;;  %v3635_v52 = vld [vmem:[#allocation8 + $0xd30] sm:$0xff] }
 0x3e8   :  { %6926 = vmatpush1.bf16.msra.mxu1 %v8458_v54  ;;  %6763 = vmatprep.subr.bf16.mxu0 %v8465_v50  ;;  %v3632_v54 = vld [vmem:[#allocation8 + $0xd18] sm:$0xff]  ;;  %v8521_v60 = vcombine.high %v3631_v51, %v3635_v52 }
 0x3e9   :  { %6927 = vmatprep.subr.bf16.mxu1 %v8467_v56  ;;  %v3636_v50 = vld [vmem:[#allocation8 + $0xd38] sm:$0xff]  ;;  %v8514_v56 = vcombine.low %v3624_v42, %v3628_v41  ;;  %v3671_v42 = vld [vmem:[#allocation8 + $0xe50] sm:$0xff] }
 0x3ea   :  { %v8523_v58 = vcombine.high %v3632_v54, %v3636_v50  ;;  %v3675_v41 = vld [vmem:[#allocation8 + $0xe70] sm:$0xff] }
 0x3eb   :  { %6764 = vmatpush1.bf16.msra.mxu0 %v8464_v63  ;;  %v3640_v63 = vld [vmem:[#allocation8 + $0xd58] sm:$0xff] }
 0x3ec   :  { %6928 = vmatpush1.bf16.msra.mxu1 %v8466_v31  ;;  %6765 = vmatprep.subr.bf16.mxu0 %v8473_v1  ;;  %v3644_v31 = vld [vmem:[#allocation8 + $0xd78] sm:$0xff]  ;;  %v8520_v1 = vcombine.low %v3631_v51, %v3635_v52  ;;  %v8561_v51 = vcombine.high %v3671_v42, %v3675_v41 }
 0x3ed   :  { %6929 = vmatprep.subr.bf16.mxu1 %v8475_v3  ;;  %v8522_v3 = vcombine.low %v3632_v54, %v3636_v50  ;;  %v8531_v6 = vcombine.high %v3640_v63, %v3644_v31  ;;  %v3679_v54 = vld [vmem:[#allocation8 + $0xe90] sm:$0xff] }
 0x3ee   :  { %v3683_v50 = vld [vmem:[#allocation8 + $0xeb0] sm:$0xff] }
 0x3ef   :  { %6766 = vmatpush1.bf16.msra.mxu0 %v8472_v45  ;;  %v3648_v45 = vld [vmem:[#allocation8 + $0xd98] sm:$0xff] }
 0x3f0   :  { %6930 = vmatpush1.bf16.msra.mxu1 %v8474_v10  ;;  %6767 = vmatprep.subr.bf16.mxu0 %v8481_v13  ;;  %v3652_v10 = vld [vmem:[#allocation8 + $0xdb8] sm:$0xff]  ;;  %v8528_v13 = vcombine.low %v3639_v59, %v3643_v61  ;;  %v8569_v59 = vcombine.high %v3679_v54, %v3683_v50 }
 0x3f1   :  { %6931 = vmatprep.subr.bf16.mxu1 %v8483_v57  ;;  %v8530_v57 = vcombine.low %v3640_v63, %v3644_v31  ;;  %v8539_v18 = vcombine.high %v3648_v45, %v3652_v10  ;;  %v8538_v27 = vcombine.low %v3648_v45, %v3652_v10  ;;  %v3687_v63 = vld [vmem:[#allocation8 + $0xed0] sm:$0xff] }
 0x3f2   :  { %v3691_v31 = vld [vmem:[#allocation8 + $0xef0] sm:$0xff] }
 0x3f3   :  { %6768 = vmatpush1.bf16.msra.mxu0 %v8480_v19  ;;  %v3655_v19 = vld [vmem:[#allocation8 + $0xdd0] sm:$0xff]  ;;  %v8577_v7 = vcombine.high %v3687_v63, %v3691_v31 }
 0x3f4   :  { %6932 = vmatpush1.bf16.msra.mxu1 %v8482_v12  ;;  %6778 = vmatprep.subr.bf16.mxu0 %v8489_v21  ;;  %v3659_v12 = vld [vmem:[#allocation8 + $0xdf0] sm:$0xff] }
 0x3f5   :  { %6942 = vmatprep.subr.bf16.mxu1 %v8491_v53  ;;  %v8545_v33 = vcombine.high %v3655_v19, %v3659_v12  ;;  %v3695_v45 = vld [vmem:[#allocation8 + $0xf10] sm:$0xff] }
 0x3f6   :  { %6770 = vmatmul.mubr.bf16.vlgmr.msra.gmra.mrb[12].mxu0 %v9411_v0  ;;  %v3699_v10 = vld [vmem:[#allocation8 + $0xf30] sm:$0xff] }
 0x3f7   :  { %6934 = vmatmul.mubr.bf16.vlgmr.msra.gmra.mrb[12].mxu1 %v9411_v0  ;;  %6779 = vmatpush1.bf16.msra.mxu0 %v8488_v24  ;;  %v8506_v0 = vcombine.low %v3616_v35, %v3620_v36  ;;  %v3663_v35 = vld [vmem:[#allocation8 + $0xe10] sm:$0xff] }
 0x3f8   :  { %6810 = vmatprep.mubr.bf16.mxu0 %v9415_v8  ;;  %6943 = vmatpush1.bf16.msra.mxu1 %v8490_v22  ;;  %v3667_v36 = vld [vmem:[#allocation8 + $0xe30] sm:$0xff] }
 0x3f9   :  { %6974 = vmatprep.mubr.bf16.mxu1 %v9415_v8  ;;  %6780 = vmatprep.subr.bf16.mxu0 %v8497_v25  ;;  %v8512_v8 = vcombine.low %v3623_v44, %v3627_v46  ;;  %v8553_v44 = vcombine.high %v3663_v35, %v3667_v36 }
 0x3fa   :  { %6944 = vmatprep.subr.bf16.mxu1 %v8499_v29  ;;  %v8547_v29 = vcombine.high %v3656_v23, %v3660_v34 }
 0x3fb   :  { %6781 = vmatpush1.bf16.msra.mxu0 %v8496_v37  ;;  %v3664_v37 = vld [vmem:[#allocation8 + $0xe18] sm:$0xff] }
 0x3fc   :  { %6945 = vmatpush1.bf16.msra.mxu1 %v8498_v39  ;;  %6782 = vmatprep.subr.bf16.mxu0 %v8505_v40  ;;  %v3668_v39 = vld [vmem:[#allocation8 + $0xe38] sm:$0xff]  ;;  %v8544_v40 = vcombine.low %v3655_v19, %v3659_v12  ;;  %v8585_v19 = vcombine.high %v3695_v45, %v3699_v10 }
 0x3fd   :  { %6946 = vmatprep.subr.bf16.mxu1 %v8507_v43  ;;  %v8546_v43 = vcombine.low %v3656_v23, %v3660_v34  ;;  %v8555_v46 = vcombine.high %v3664_v37, %v3668_v39  ;;  %v3703_v23 = vld [vmem:[#allocation8 + $0xf50] sm:$0xff] }
 0x3fe   :  { %v3707_v34 = vld [vmem:[#allocation8 + $0xf70] sm:$0xff] }
 0x3ff   :  { %6783 = vmatpush1.bf16.msra.mxu0 %v8504_v47  ;;  %v3672_v47 = vld [vmem:[#allocation8 + $0xe58] sm:$0xff] }
 0x400   :  { %6947 = vmatpush1.bf16.msra.mxu1 %v8506_v0  ;;  %6784 = vmatprep.subr.bf16.mxu0 %v8513_v55  ;;  %v3676_v0 = vld [vmem:[#allocation8 + $0xe78] sm:$0xff]  ;;  %v8552_v55 = vcombine.low %v3663_v35, %v3667_v36 }
 0x401   :  { %6948 = vmatprep.subr.bf16.mxu1 %v8515_v49  ;;  %v8554_v49 = vcombine.low %v3664_v37, %v3668_v39  ;;  %v8563_v52 = vcombine.high %v3672_v47, %v3676_v0  ;;  %v3712_v35 = vld [vmem:[#allocation8 + $0xf98] sm:$0xff]  ;;  %v9452_v37 = vld [vmem:[#allocation10] sm:$0xff]  ;;  %v8592_v39 = vcombine.low %v3703_v23, %v3707_v34 }
 0x402   :  { %v3716_v36 = vld [vmem:[#allocation8 + $0xfb8] sm:$0xff] }
 0x403   :  { %6785 = vmatpush1.bf16.msra.mxu0 %v8512_v8  ;;  %v3680_v8 = vld [vmem:[#allocation8 + $0xe98] sm:$0xff] }
 0x404   :  { %6949 = vmatpush1.bf16.msra.mxu1 %v8514_v56  ;;  %6786 = vmatprep.subr.bf16.mxu0 %v8521_v60  ;;  %v3684_v56 = vld [vmem:[#allocation8 + $0xeb8] sm:$0xff]  ;;  %v8560_v60 = vcombine.low %v3671_v42, %v3675_v41  ;;  %v3723_v42 = vld [vmem:[#allocation8 + $0xff0] sm:$0xff]  ;;  %v3734_v41 = vrot.slane %v9452_v37, %v519_v28 }
 0x405   :  { %6950 = vmatprep.subr.bf16.mxu1 %v8523_v58  ;;  %v8562_v58 = vcombine.low %v3672_v47, %v3676_v0  ;;  %v8571_v61 = vcombine.high %v3680_v8, %v3684_v56  ;;  %v3720_v47 = vld [vmem:[#allocation8 + $0xfd8] sm:$0xff] }
 0x406   :  { %v3724_v0 = vld [vmem:[#allocation8 + $0xff8] sm:$0xff] }
 0x407   :  { %6787 = vmatpush1.bf16.msra.mxu0 %v8520_v1  ;;  %v3688_v1 = vld [vmem:[#allocation8 + $0xed8] sm:$0xff] }
 0x408   :  { %6951 = vmatpush1.bf16.msra.mxu1 %v8522_v3  ;;  %6788 = vmatprep.subr.bf16.mxu0 %v8529_v5  ;;  %v3692_v3 = vld [vmem:[#allocation8 + $0xef8] sm:$0xff]  ;;  %v8568_v5 = vcombine.low %v3679_v54, %v3683_v50  ;;  %v8611_v54 = vcombine.high %v3720_v47, %v3724_v0 }
 0x409   :  { %v9444_v14 = vpop.f32.mrb[8].mxu0  ;;  %v9446_v16 = vpop.f32.mrb[8].mxu1  ;;  %6952 = vmatprep.subr.bf16.mxu1 %v8531_v6  ;;  %v8570_v6 = vcombine.low %v3680_v8, %v3684_v56  ;;  %v8579_v9 = vcombine.high %v3688_v1, %v3692_v3  ;;  %v8610_v56 = vcombine.low %v3720_v47, %v3724_v0  ;;  %v8932_v47 = vld [vmem:[#allocation11 + $0x180] sm:$0xff]   ;;  %v8933_v0 = vld [vmem:[#allocation11 + $0x148] sm:$0xff]  }
 0x40a   :  { %v9448_v21 = vpop.f32.mrb[9].mxu0  ;;  %v9450_v53 = vpop.f32.mrb[9].mxu1 }
 0x40b   :  { %v6488_v24 = vpop.f32.mrb[10].mxu0  ;;  %v6652_v26 = vpop.f32.mrb[10].mxu1  ;;  %6789 = vmatpush1.bf16.msra.mxu0 %v8528_v13  ;;  %v3696_v13 = vld [vmem:[#allocation8 + $0xf18] sm:$0xff]  ;;  %v8774_v50 = vadd.f32 %v9448_v21, %v3734_v41 }
 0x40c   :  { %6953 = vmatpush1.bf16.msra.mxu1 %v8530_v57  ;;  %v6489_v22 = vpop.f32.mrb[11].mxu0  ;;  %v6653_v25 = vpop.f32.mrb[11].mxu1  ;;  %6790 = vmatprep.subr.bf16.mxu0 %v8537_v2  ;;  %v3700_v57 = vld [vmem:[#allocation8 + $0xf38] sm:$0xff]  ;;  %v8576_v2 = vcombine.low %v3687_v63, %v3691_v31  ;;  %v8900_v63 = vld [vmem:[#allocation11 + $0x80] sm:$0xff]   ;;  %v8901_v31 = vld [vmem:[#allocation11 + $0x48] sm:$0xff]  }
 0x40d   :  { %6954 = vmatprep.subr.bf16.mxu1 %v8539_v18  ;;  %v8578_v18 = vcombine.low %v3688_v1, %v3692_v3  ;;  %v8587_v12 = vcombine.high %v3696_v13, %v3700_v57  ;;  %v3704_v24 = vld [vmem:[#allocation8 + $0xf58] sm:$0xff]  ;;  %v8586_v22 = vcombine.low %v3696_v13, %v3700_v57  ;;  %v8593_v25 = vcombine.high %v3703_v23, %v3707_v34  ;;  %v8903_v3 = vld [vmem:[#allocation11 + $0x8] sm:$0xff]   ;;  %v8910_v13 = vld [vmem:[#allocation11 + $0xd8] sm:$0xff]  }
 0x40e   :  { %v3708_v26 = vld [vmem:[#allocation8 + $0xf78] sm:$0xff]  ;;  %v8912_v57 = vld [vmem:[#allocation11 + $0x98] sm:$0xff]   ;;  %v8917_v23 = vld [vmem:[#allocation11 + $0x68] sm:$0xff]  }
 0x40f   :  { %6791 = vmatpush1.bf16.msra.mxu0 %v8536_v62  ;;  %v8584_v62 = vcombine.low %v3695_v45, %v3699_v10  ;;  %v8908_v45 = vld [vmem:[#allocation11 + $0x90] sm:$0xff]   ;;  %v8909_v10 = vld [vmem:[#allocation11 + $0x58] sm:$0xff]   ;;  %v8918_v34 = vld [vmem:[#allocation11 + $0xe8] sm:$0xff]  }
 0x410   :  { %6955 = vmatpush1.bf16.msra.mxu1 %v8538_v27  ;;  %6792 = vmatprep.subr.bf16.mxu0 %v8545_v33  ;;  %v8595_v27 = vcombine.high %v3704_v24, %v3708_v26  ;;  %v3711_v33 = vld [vmem:[#allocation8 + $0xf90] sm:$0xff] }
 0x411   :  { %6956 = vmatprep.subr.bf16.mxu1 %v8547_v29  ;;  %v3715_v29 = vld [vmem:[#allocation8 + $0xfb0] sm:$0xff] }
 0x413   :  { %6793 = vmatpush1.bf16.msra.mxu0 %v8544_v40  ;;  %v8594_v40 = vcombine.low %v3704_v24, %v3708_v26  ;;  %v8919_v24 = vld [vmem:[#allocation11 + $0x28] sm:$0xff]   ;;  %v3730_v26 = vrot.slane %v9452_v37, %v515_v11 }
 0x414   :  { %6957 = vmatpush1.bf16.msra.mxu1 %v8546_v43  ;;  %6794 = vmatprep.subr.bf16.mxu0 %v8553_v44  ;;  %v8601_v43 = vcombine.high %v3711_v33, %v3715_v29  ;;  %v8603_v44 = vcombine.high %v3712_v35, %v3716_v36 }
 0x415   :  { %6958 = vmatprep.subr.bf16.mxu1 %v8555_v46  ;;  %v3719_v46 = vld [vmem:[#allocation8 + $0xfd0] sm:$0xff] }
 0x416   :  { %v8608_v28 = vcombine.low %v3719_v46, %v3723_v42 }
 0x417   :  { %6795 = vmatpush1.bf16.msra.mxu0 %v8552_v55  ;;  %v3742_v55 = vrot.slane %v9452_v37, %v527_v17  ;;  %v8898_v17 = vld [vmem:[#allocation11 + $0xc0] sm:$0xff]  }
 0x418   :  { %6959 = vmatpush1.bf16.msra.mxu1 %v8554_v49  ;;  %6796 = vmatprep.subr.bf16.mxu0 %v8561_v51  ;;  %v8600_v49 = vcombine.low %v3711_v33, %v3715_v29  ;;  %v8602_v51 = vcombine.low %v3712_v35, %v3716_v36  ;;  %v8923_v33 = vld [vmem:[#allocation11 + $0x30] sm:$0xff]   ;;  %v8773_v29 = vadd.f32 %v9444_v14, %v3730_v26  ;;  %v8925_v36 = vld [vmem:[#allocation11 + $0x78] sm:$0xff]   ;;  %v8931_v14 = vld [vmem:[#allocation11 + $0x100] sm:$0xff]  }
 0x419   :  { %6960 = vmatprep.subr.bf16.mxu1 %v8563_v52  ;;  %v8609_v52 = vcombine.high %v3719_v46, %v3723_v42  ;;  %v8776_v8 = vadd.f32 %v9450_v53, %v3742_v55  ;;  %v8902_v53 = vld [vmem:[#allocation11 + $0xc8] sm:$0xff]   ;;  %v8924_v35 = vld [vmem:[#allocation11 + $0xb0] sm:$0xff]   ;;  %v8930_v42 = vld [vmem:[#allocation11 + $0x1c0] sm:$0xff]  }
 0x41a   :  { %v8934_v55 = vld [vmem:[#allocation11 + $0x1c8] sm:$0xff]  }
 0x41b   :  { %6797 = vmatpush1.bf16.msra.mxu0 %v8560_v60  ;;  %v8897_v60 = vld [vmem:[#allocation11 + $0x40] sm:$0xff]  }
 0x41c   :  { %6961 = vmatpush1.bf16.msra.mxu1 %v8562_v58  ;;  %6798 = vmatprep.subr.bf16.mxu0 %v8569_v59  ;;  %v6984_v58 = vmax.f32 %v8774_v50, 0.0  ;;  %v6986_v59 = vmax.f32 %v8776_v8, 0.0  ;;  %v8939_v50 = vld [vmem:[#allocation11 + $0x110] sm:$0xff]  }
 0x41d   :  { %6962 = vmatprep.subr.bf16.mxu1 %v8571_v61  ;;  %v8899_v61 = vld [vmem:[#allocation11] sm:$0xff]   ;;  %v8940_v8 = vld [vmem:[#allocation11 + $0x190] sm:$0xff]  }
 0x41e   :  { %v6992_v21 = vpack.c.bf16 %v6984_v58, %v6984_v58  ;;  %v6994_v1 = vpack.c.bf16 %v6986_v59, %v6986_v59  ;;  %v8945_v58 = vld [vmem:[#allocation11 + $0x160] sm:$0xff]  }
 0x41f   :  { %6799 = vmatpush1.bf16.msra.mxu0 %v8568_v5  ;;  %v8904_v5 = vld [vmem:[#allocation11 + $0x88] sm:$0xff]   ;;  %v8946_v59 = vld [vmem:[#allocation11 + $0x1e0] sm:$0xff]  }
 0x420   :  { %6963 = vmatpush1.bf16.msra.mxu1 %v8570_v6  ;;  %6800 = vmatprep.subr.bf16.mxu0 %v8577_v7  ;;  %v8905_v6 = vld [vmem:[#allocation11 + $0x50] sm:$0xff]  }
 0x421   :  { %6964 = vmatprep.subr.bf16.mxu1 %v8579_v9  ;;  %v8906_v7 = vld [vmem:[#allocation11 + $0xd0] sm:$0xff]  }
 0x422   :  { %v8907_v9 = vld [vmem:[#allocation11 + $0x10] sm:$0xff]  }
 0x423   :  { %6801 = vmatpush1.bf16.msra.mxu0 %v8576_v2  ;;  %v8913_v2 = vld [vmem:[#allocation11 + $0x60] sm:$0xff]  }
 0x424   :  { %6965 = vmatpush1.bf16.msra.mxu1 %v8578_v18  ;;  %6802 = vmatprep.subr.bf16.mxu0 %v8585_v19  ;;  %v8914_v18 = vld [vmem:[#allocation11 + $0xe0] sm:$0xff]  }
 0x425   :  { %6966 = vmatprep.subr.bf16.mxu1 %v8587_v12  ;;  %v8915_v19 = vld [vmem:[#allocation11 + $0x20] sm:$0xff]  }
 0x426   :  { %v8916_v12 = vld [vmem:[#allocation11 + $0xa0] sm:$0xff]  }
 0x427   :  { %6803 = vmatpush1.bf16.msra.mxu0 %v8584_v62  ;;  %v8920_v62 = vld [vmem:[#allocation11 + $0xa8] sm:$0xff]  }
 0x428   :  { %6967 = vmatpush1.bf16.msra.mxu1 %v8586_v22  ;;  %6804 = vmatprep.subr.bf16.mxu0 %v8593_v25  ;;  %v8921_v22 = vld [vmem:[#allocation11 + $0x70] sm:$0xff]   ;;  %v3738_v25 = vrot.slane %v9452_v37, %v523_v38  ;;  %v8928_v38 = vld [vmem:[#allocation11 + $0xb8] sm:$0xff]  }
 0x429   :  { %6968 = vmatprep.subr.bf16.mxu1 %v8595_v27  ;;  %v8922_v27 = vld [vmem:[#allocation11 + $0xf0] sm:$0xff]  }
 0x42a   :  { %v8775_v11 = vadd.f32 %v9446_v16, %v3738_v25 }
 0x42b   :  { %6805 = vmatpush1.bf16.msra.mxu0 %v8592_v39  ;;  %v8926_v39 = vld [vmem:[#allocation11 + $0xf8] sm:$0xff]  }
 0x42c   :  { %6969 = vmatpush1.bf16.msra.mxu1 %v8594_v40  ;;  %6806 = vmatprep.subr.bf16.mxu0 %v8601_v43  ;;  %v8927_v40 = vld [vmem:[#allocation11 + $0x38] sm:$0xff]   ;;  %v6983_v43 = vmax.f32 %v8773_v29, 0.0  ;;  %v6985_v46 = vmax.f32 %v8775_v11, 0.0 }
 0x42d   :  { %6970 = vmatprep.subr.bf16.mxu1 %v8603_v44  ;;  %v8929_v44 = vld [vmem:[#allocation11 + $0x140] sm:$0xff]  }
 0x42e   :  { %v6991_v41 = vpack.c.bf16 %v6983_v43, %v6983_v43  ;;  %v6993_v16 = vpack.c.bf16 %v6985_v46, %v6985_v46 }
 0x42f   :  { %6807 = vmatpush1.bf16.msra.mxu0 %v8600_v49  ;;  %v8935_v49 = vld [vmem:[#allocation11 + $0x108] sm:$0xff]  }
 0x430   :  { %6971 = vmatpush1.bf16.msra.mxu1 %v8602_v51  ;;  %6808 = vmatprep.subr.bf16.mxu0 %v8609_v52  ;;  %v8936_v51 = vld [vmem:[#allocation11 + $0x188] sm:$0xff]   ;;  %v8937_v52 = vld [vmem:[#allocation11 + $0x150] sm:$0xff]  }
 0x431   :  { %6972 = vmatprep.subr.bf16.mxu1 %v8611_v54  ;;  %v8938_v54 = vld [vmem:[#allocation11 + $0x1d0] sm:$0xff]  }
 0x433   :  { %6809 = vmatpush1.bf16.msra.mxu0 %v8608_v28  ;;  %v8941_v28 = vld [vmem:[#allocation11 + $0x158] sm:$0xff]  }
 0x434   :  { %6973 = vmatpush1.bf16.msra.mxu1 %v8610_v56  ;;  %8677 = vmatprep.subr.bf16.mxu0 %v8897_v60  ;;  %v8942_v56 = vld [vmem:[#allocation11 + $0x1d8] sm:$0xff]  }
 0x435   :  { %8699 = vmatprep.subr.bf16.mxu1 %v8898_v17  ;;  %v8943_v60 = vld [vmem:[#allocation11 + $0x118] sm:$0xff]  }
 0x436   :  { %6811 = vmatmul.mubr.bf16.vlgmr.msra.gmra.mrb[12].mxu0 %v9426_v48  ;;  %v8944_v17 = vld [vmem:[#allocation11 + $0x198] sm:$0xff]  }
 0x437   :  { %6975 = vmatmul.mubr.bf16.vlgmr.msra.gmra.mrb[12].mxu1 %v9426_v48  ;;  %8678 = vmatpush3.bf16.msra.mxu0 %v8899_v61  ;;  %v8911_v48 = vld [vmem:[#allocation11 + $0x18] sm:$0xff]   ;;  %v8947_v61 = vld [vmem:[#allocation11 + $0x120] sm:$0xff]  }
 0x438   :  { %7550 = vmatprep.mubr.bf16.mxu0 %v6992_v21  ;;  %8700 = vmatpush3.bf16.msra.mxu1 %v8900_v63  ;;  %v8948_v63 = vld [vmem:[#allocation11 + $0x1a0] sm:$0xff]   ;;  %v8950_v21 = vld [vmem:[#allocation11 + $0x1e8] sm:$0xff]  }
 0x439   :  { %7590 = vmatprep.mubr.bf16.mxu1 %v6994_v1  ;;  %8679 = vmatprep.subr.bf16.mxu0 %v8901_v31  ;;  %v8949_v31 = vld [vmem:[#allocation11 + $0x168] sm:$0xff]  }
 0x43a   :  { %8701 = vmatprep.subr.bf16.mxu1 %v8902_v53  ;;  %v8951_v53 = vld [vmem:[#allocation11 + $0x128] sm:$0xff]  }
 0x43b   :  { %8680 = vmatpush3.bf16.msra.mxu0 %v8903_v3  ;;  %v8952_v1 = vld [vmem:[#allocation11 + $0x1a8] sm:$0xff]   ;;  %v8953_v3 = vld [vmem:[#allocation11 + $0x170] sm:$0xff]  }
 0x43c   :  { %8702 = vmatpush3.bf16.msra.mxu1 %v8904_v5  ;;  %8681 = vmatprep.subr.bf16.mxu0 %v8905_v6  ;;  %v8954_v5 = vld [vmem:[#allocation11 + $0x1f0] sm:$0xff]  }
 0x43d   :  { %8703 = vmatprep.subr.bf16.mxu1 %v8906_v7  ;;  %v8955_v6 = vld [vmem:[#allocation11 + $0x130] sm:$0xff]  }
 0x43e   :  { %v8956_v7 = vld [vmem:[#allocation11 + $0x1b0] sm:$0xff]  }
 0x43f   :  { %8682 = vmatpush3.bf16.msra.mxu0 %v8907_v9  ;;  %v8957_v9 = vld [vmem:[#allocation11 + $0x178] sm:$0xff]  }
 0x440   :  { %8704 = vmatpush3.bf16.msra.mxu1 %v8908_v45  ;;  %8683 = vmatprep.subr.bf16.mxu0 %v8909_v10  ;;  %v8958_v45 = vld [vmem:[#allocation11 + $0x1f8] sm:$0xff]  }
 0x441   :  { %8705 = vmatprep.subr.bf16.mxu1 %v8910_v13  ;;  %v8959_v10 = vld [vmem:[#allocation11 + $0x138] sm:$0xff]  }
 0x442   :  { %v8960_v13 = vld [vmem:[#allocation11 + $0x1b8] sm:$0xff]  }
 0x443   :  { %8684 = vmatpush3.bf16.msra.mxu0 %v8911_v48  ;;  %v3746_v48 = vrot.slane %v9452_v37, %v531_v30 }
 0x444   :  { %8706 = vmatpush3.bf16.msra.mxu1 %v8912_v57  ;;  %8685 = vmatprep.subr.bf16.mxu0 %v8913_v2  ;;  %v3754_v57 = vrot.slane %v9452_v37, %v539_v4  ;;  %v3750_v2 = vrot.slane %v9452_v37, %v535_v15 }
 0x445   :  { %8707 = vmatprep.subr.bf16.mxu1 %v8914_v18  ;;  %v3758_v18 = vrot.slane %v9452_v37, %v543_v32 }
 0x447   :  { %8686 = vmatpush3.bf16.msra.mxu0 %v8915_v19 }
 0x448   :  { %8708 = vmatpush3.bf16.msra.mxu1 %v8916_v12  ;;  %8687 = vmatprep.subr.bf16.mxu0 %v8917_v23 }
 0x449   :  { %8709 = vmatprep.subr.bf16.mxu1 %v8918_v34 }
 0x44b   :  { %8688 = vmatpush3.bf16.msra.mxu0 %v8919_v24 }
 0x44c   :  { %8710 = vmatpush3.bf16.msra.mxu1 %v8920_v62  ;;  %8689 = vmatprep.subr.bf16.mxu0 %v8921_v22 }
 0x44d   :  { %8711 = vmatprep.subr.bf16.mxu1 %v8922_v27 }
 0x44f   :  { %8690 = vmatpush3.bf16.msra.mxu0 %v8923_v33 }
 0x450   :  { %8712 = vmatpush3.bf16.msra.mxu1 %v8924_v35  ;;  %8691 = vmatprep.subr.bf16.mxu0 %v8925_v36 }
 0x451   :  { %8713 = vmatprep.subr.bf16.mxu1 %v8926_v39 }
 0x453   :  { %8692 = vmatpush3.bf16.msra.mxu0 %v8927_v40  ;;  %v8612_v40 = vld [vmem:[#allocation13] ss:$0 sm:$0xff] }
 0x454   :  { %8714 = vmatpush3.bf16.msra.mxu1 %v8928_v38  ;;  %8721 = vmatprep.subr.bf16.mxu0 %v8929_v44 }
 0x455   :  { %8743 = vmatprep.subr.bf16.mxu1 %v8930_v42 }
 0x456   :  { %7551 = vmatmul.mubr.bf16.vlgmr.msra.gmra.mrb[16].mxu0 %v6991_v41 }
 0x457   :  { %7591 = vmatmul.mubr.bf16.vlgmr.msra.gmra.mrb[16].mxu1 %v6993_v16  ;;  %8722 = vmatpush3.bf16.msra.mxu0 %v8931_v14 }
 0x458   :  { %8744 = vmatpush3.bf16.msra.mxu1 %v8932_v47  ;;  %8723 = vmatprep.subr.bf16.mxu0 %v8933_v0 }
 0x459   :  { %8745 = vmatprep.subr.bf16.mxu1 %v8934_v55 }
 0x45b   :  { %8724 = vmatpush3.bf16.msra.mxu0 %v8935_v49 }
 0x45c   :  { %8746 = vmatpush3.bf16.msra.mxu1 %v8936_v51  ;;  %8725 = vmatprep.subr.bf16.mxu0 %v8937_v52 }
 0x45d   :  { %8747 = vmatprep.subr.bf16.mxu1 %v8938_v54 }
 0x45f   :  { %8726 = vmatpush3.bf16.msra.mxu0 %v8939_v50 }
 0x460   :  { %8748 = vmatpush3.bf16.msra.mxu1 %v8940_v8  ;;  %8727 = vmatprep.subr.bf16.mxu0 %v8941_v28 }
 0x461   :  { %8749 = vmatprep.subr.bf16.mxu1 %v8942_v56 }
 0x463   :  { %8728 = vmatpush3.bf16.msra.mxu0 %v8943_v60 }
 0x464   :  { %8750 = vmatpush3.bf16.msra.mxu1 %v8944_v17  ;;  %8729 = vmatprep.subr.bf16.mxu0 %v8945_v58 }
 0x465   :  { %8751 = vmatprep.subr.bf16.mxu1 %v8946_v59 }
 0x467   :  { %8730 = vmatpush3.bf16.msra.mxu0 %v8947_v61 }
 0x468   :  { %8752 = vmatpush3.bf16.msra.mxu1 %v8948_v63  ;;  %8731 = vmatprep.subr.bf16.mxu0 %v8949_v31 }
 0x469   :  { %8753 = vmatprep.subr.bf16.mxu1 %v8950_v21 }
 0x46b   :  { %8732 = vmatpush3.bf16.msra.mxu0 %v8951_v53 }
 0x46c   :  { %8754 = vmatpush3.bf16.msra.mxu1 %v8952_v1  ;;  %8733 = vmatprep.subr.bf16.mxu0 %v8953_v3 }
 0x46d   :  { %8755 = vmatprep.subr.bf16.mxu1 %v8954_v5 }
 0x46f   :  { %8734 = vmatpush3.bf16.msra.mxu0 %v8955_v6 }
 0x470   :  { %8756 = vmatpush3.bf16.msra.mxu1 %v8956_v7  ;;  %8735 = vmatprep.subr.bf16.mxu0 %v8957_v9 }
 0x471   :  { %8757 = vmatprep.subr.bf16.mxu1 %v8958_v45 }
 0x473   :  { %8736 = vmatpush3.bf16.msra.mxu0 %v8959_v10 }
 0x474   :  { %8758 = vmatpush3.bf16.msra.mxu1 %v8960_v13 }
 0x509   :  { %v6812_v19 = vpop.f32.mrb[12].mxu0 }
 0x50a   :  { %v8777_v12 = vadd.f32 %v6812_v19, %v3746_v48  ;;  %v6976_v23 = vpop.f32.mrb[12].mxu1  ;;  %v6814_v34 = vpop.f32.mrb[13].mxu0 }
 0x50b   :  { %v8779_v24 = vadd.f32 %v6976_v23, %v3754_v57  ;;  %v8778_v26 = vadd.f32 %v6814_v34, %v3750_v2  ;;  %v6978_v62 = vpop.f32.mrb[13].mxu1  ;;  %v6816_v30 = vpop.f32.mrb[14].mxu0 }
 0x50c   :  { %v6987_v22 = vmax.f32 %v8777_v12, 0.0  ;;  %v8780_v25 = vadd.f32 %v6978_v62, %v3758_v18  ;;  %v6980_v27 = vpop.f32.mrb[14].mxu1  ;;  %v6817_v4 = vpop.f32.mrb[15].mxu0 }
 0x50d   :  { %v6989_v33 = vmax.f32 %v8779_v24, 0.0  ;;  %v6988_v29 = vmax.f32 %v8778_v26, 0.0  ;;  %v6981_v35 = vpop.f32.mrb[15].mxu1 }
 0x50e   :  { %v6990_v15 = vmax.f32 %v8780_v25, 0.0  ;;  %v6995_v20 = vpack.c.bf16 %v6987_v22, %v6987_v22 }
 0x50f   :  { %v6996_v36 = vpack.c.bf16 %v6988_v29, %v6988_v29  ;;  %v6997_v32 = vpack.c.bf16 %v6989_v33, %v6989_v33 }
 0x510   :  { %v6998_v11 = vpack.c.bf16 %v6990_v15, %v6990_v15 }
 0x511   :  { %7630 = vmatprep.mubr.bf16.mxu0 %v6996_v36 }
 0x512   :  { %7670 = vmatprep.mubr.bf16.mxu1 %v6998_v11  ;;  %7631 = vmatmul.mubr.bf16.vlgmr.msra.gmra.mrb[20].mxu0 %v6995_v20 }
 0x513   :  { %7671 = vmatmul.mubr.bf16.vlgmr.msra.gmra.mrb[20].mxu1 %v6997_v32 }
 0x529   :  { %v8693_v37 = vpop.f32.mrb[16].mxu0 }
 0x52a   :  { %v8715_v39 = vpop.f32.mrb[16].mxu1  ;;  %v8694_v43 = vpop.f32.mrb[17].mxu0 }
 0x52b   :  { %v8695_v38 = vadd.f32 %v8694_v43, %v8693_v37  ;;  %v8716_v44 = vpop.f32.mrb[17].mxu1  ;;  %v8696_v46 = vpop.f32.mrb[18].mxu0 }
 0x52c   :  { %v8717_v42 = vadd.f32 %v8716_v44, %v8715_v39  ;;  %v8718_v14 = vpop.f32.mrb[18].mxu1  ;;  %v8697_v41 = vpop.f32.mrb[19].mxu0 }
 0x52d   :  { %v7553_v47 = vadd.f32 %v8695_v38, %v8612_v40  ;;  %v8719_v0 = vpop.f32.mrb[19].mxu1 }
 0x52f   :  { %v7593_v16 = vadd.f32 %v8717_v42, %v7553_v47 }
 0x5e5   :  { %v8737_v55 = vpop.f32.mrb[20].mxu0 }
 0x5e6   :  { %v8759_v49 = vpop.f32.mrb[20].mxu1  ;;  %v8738_v51 = vpop.f32.mrb[21].mxu0 }
 0x5e7   :  { %v8739_v52 = vadd.f32 %v8738_v51, %v8737_v55  ;;  %v8760_v54 = vpop.f32.mrb[21].mxu1  ;;  %v8740_v50 = vpop.f32.mrb[22].mxu0 }
 0x5e8   :  { %v8761_v8 = vadd.f32 %v8760_v54, %v8759_v49  ;;  %v8762_v28 = vpop.f32.mrb[22].mxu1  ;;  %v8741_v56 = vpop.f32.mrb[23].mxu0 }
 0x5e9   :  { %v7633_v60 = vadd.f32 %v8739_v52, %v7593_v16  ;;  %v8763_v17 = vpop.f32.mrb[23].mxu1 }
 0x5eb   :  { %v7673_v58 = vadd.f32 %v8761_v8, %v7633_v60 }
 0x5ed   :  { %7678 = vst [vmem:[#allocation14] sm:$0xff] %v7673_v58 }
 0x5ee   :  { %9128 = shalt.err (!%p9125_p4)
}
 0x5ef   :  { %s9129_s11 = scalar_lea.hbm %s9503_s7, 128 }
 0x5f0   :  { %p9130_p5 = scmp.ne.s32.totalorder %s9503_s7, %s9129_s11  ;;  %p9133_p6 = scmp.lt.u32.totalorder %s9129_s11, %s9503_s7 }
 0x5f2   :  { %p9135_p7 = pnand %p9133_p6, %p9130_p5 }
 0x5f4   :  { %9138 = shalt.err (!%p9135_p7)
}
 0x5f5   :  { %7688 = dma.vmem_to_hbm [thread:$0]  %s7686_s13, 128, %s9503_s7, [#allocation4]  }
 0x5f6   :  { %9147 = dma.done.wait [#allocation4], 128  }
 0x5f7   :  { %9148 = vsyncadd [#allocation4], 4294967168 }
 0x5f8   :  { %7692 = vsyncpa [#allocation3], 1 }
 0x5f9   :  { %7693 = vsyncpa [#allocation6], 1 }
 0x5fa   :  { %7694 = vsyncpa [#allocation9], 1 }
 0x5fb   :  { %7695 = vsyncpa [#allocation12], 1 }
 0x5fc   :  { %7696 = vsyncpa [#allocation4], 1 }

</bundles_post_ra>
